<compile_context>
chip_gen: v5e
topology: v5e:2x2
jax: 0.10.0
libtpu: 0.0.40
codegen_flags: <defaults>
</compile_context>

<pallas_src>
import jax
import jax.numpy as jnp
from jax.experimental import pallas as pl
from jax.experimental.pallas import tpu as pltpu

# ---- module hyper-parameters (match nn.Module __init__) ---------------------
DIM = 32                     # channels of x
HEADS = 4
DIM_HEAD = 32
HIDDEN = HEADS * DIM_HEAD    # 128
NUM_GROUPS = 8
CS = DIM // NUM_GROUPS       # channels per group
SCALE = DIM_HEAD ** (-0.5)
EPS = 1e-5                   # nn.GroupNorm default


def _vmem_limit_bytes():
    """Scoped-VMEM budget: ~3/4 of physical, clamped to [32, 96] MiB.

    v5e/v6e have 128 MiB physical VMEM (-> 96 MiB budget); v7x has 64 MiB
    (-> 48 MiB).  Falls back to a v7x-safe 48 MiB if the query fails."""
    try:
        phys = getattr(pltpu.get_tpu_info(), "vmem_capacity_bytes",
                       64 * 1024 * 1024)
    except Exception:
        phys = 64 * 1024 * 1024
    return int(min(96 * 1024 * 1024, max(32 * 1024 * 1024, phys * 3 // 4)))


def attention_kernel(x_ref, gpool_ref, gnw_ref, gnb_ref, wqkv_ref, bout_ref,
                     o_ref):
    """One batch element per grid step; all tiles are (rows, N) channel-major.

      x_ref    : (1, C, N)              f32   activations, N = H*W on lanes
      gpool_ref: (C, C)                 f32   same-group mask / (CS*N)
      gnw/gnb  : (C, 1)                 f32   GroupNorm affine
      wqkv_ref : (2*HIDDEN+HEADS*C, C)  bf16  fused weights: q rows pre-scaled,
                                              v rows pre-folded with Wout
      bout_ref : (C, 1)                 f32   output bias
      o_ref    : (1, C, N)                    output (lane-dense)
    """
    x = x_ref[0]                                                    # (C, N) f32

    # ---- GroupNorm: f32 lane reductions + tiny group-pool dots --------------
    sum_c = jnp.sum(x, axis=1, keepdims=True)                       # (C, 1)
    mu_c = jnp.dot(gpool_ref[...], sum_c,
                   preferred_element_type=jnp.float32)              # group mean
    xc = x - mu_c                                                   # (C, N)
    ss_c = jnp.sum(xc * xc, axis=1, keepdims=True)                  # (C, 1)
    var_c = jnp.dot(gpool_ref[...], ss_c,
                    preferred_element_type=jnp.float32)             # group var
    inv_c = jax.lax.rsqrt(jnp.maximum(var_c, 0.0) + EPS)            # (C, 1)
    xn = (xc * (inv_c * gnw_ref[...]) + gnb_ref[...]).astype(jnp.bfloat16)

    # ---- fused projection: q (scaled), k, per-head Wout-folded v ------------
    qkv = jnp.dot(wqkv_ref[...], xn,
                  preferred_element_type=jnp.float32).astype(jnp.bfloat16)

    # ---- per-head attention: keys on sublanes, queries on lanes -------------
    acc = None
    for h in range(HEADS):
        qh = qkv[h * DIM_HEAD:(h + 1) * DIM_HEAD, :]                # (d, Nq)
        kh = qkv[HIDDEN + h * DIM_HEAD:HIDDEN + (h + 1) * DIM_HEAD, :]
        vph = qkv[2 * HIDDEN + h * DIM:2 * HIDDEN + (h + 1) * DIM, :]  # (C, Nk)

        # sim[j, i] = sum_d k[d, j] * q[d, i]  (scale folded into Wq rows);
        # contracting dim 0 of both -> no materialized transpose.
        sim = jax.lax.dot_general(kh, qh, (((0,), (0,)), ((), ())),
                                  preferred_element_type=jnp.float32)  # (Nk, Nq)
        sim = sim - jnp.max(sim, axis=0, keepdims=True)             # per-query
        p = jnp.exp(sim)                                            # (Nk, Nq) f32
        inv_den = pl.reciprocal(jnp.sum(p, axis=0, keepdims=True),
                                approx=True)                        # (1, Nq)

        # out_h[c, i] = sum_j v'[c, j] * p[j, i]; normalize afterwards on the
        # small (C, N) result (deferred softmax normalization).
        contrib = jnp.dot(vph, p.astype(jnp.bfloat16),
                          preferred_element_type=jnp.float32)       # (C, Nq)
        contrib = contrib * inv_den
        acc = contrib if acc is None else acc + contrib

    o_ref[0] = (acc + bout_ref[...]).astype(o_ref.dtype)


@jax.jit
def attention_forward(x_nchw, params):
    """x_nchw: (B, C, H, W) float32.  Params in native PyTorch layouts:
       gn_weight (C,), gn_bias (C,), w_qkv (3*HIDDEN, C), w_out (C, HIDDEN),
       b_out (C,)."""
    gnw, gnb, wqkv, wout, bout = params
    B, C, H, W = x_nchw.shape
    assert C == DIM
    N = H * W

    # Pure reshape (no transpose, no HBM relayout): NCHW -> (B, C, N).
    x_cn = x_nchw.reshape(B, C, N)

    # Fold the attention scale into q rows and the output projection into the
    # v rows (W'_h = Wout_h @ Wv_h), done once in f32, then cast to bf16.
    wq = wqkv[:HIDDEN] * SCALE                                      # (128, C)
    wk = wqkv[HIDDEN:2 * HIDDEN]                                    # (128, C)
    wv = wqkv[2 * HIDDEN:].reshape(HEADS, DIM_HEAD, C)              # (h, d, C)
    wo = wout.reshape(C, HEADS, DIM_HEAD)                           # (o, h, d)
    wv_fold = jnp.einsum('ohd,hdc->hoc', wo, wv,
                         precision=jax.lax.Precision.HIGHEST)       # (h, C, C)
    wqkv_eff = jnp.concatenate(
        [wq, wk, wv_fold.reshape(HEADS * C, C)], axis=0).astype(jnp.bfloat16)
    rows = 2 * HIDDEN + HEADS * C                                   # 384

    # Group-pool matrix: same-group one-hot / (CS*N).  Built once (constant
    # block across the grid); exact 1.0 / power-of-two-ish entries.
    cidx = jnp.arange(C) // CS
    gpool = (cidx[:, None] == cidx[None, :]).astype(jnp.float32) / (CS * N)

    out_cn = pl.pallas_call(
        attention_kernel,
        out_shape=jax.ShapeDtypeStruct((B, C, N), x_nchw.dtype),
        grid_spec=pltpu.PrefetchScalarGridSpec(
            num_scalar_prefetch=0,
            grid=(B,),
            in_specs=[
                pl.BlockSpec((1, C, N), lambda b: (b, 0, 0)),        # x
                pl.BlockSpec((C, C), lambda b: (0, 0)),              # group pool
                pl.BlockSpec((C, 1), lambda b: (0, 0)),              # gn weight
                pl.BlockSpec((C, 1), lambda b: (0, 0)),              # gn bias
                pl.BlockSpec((rows, C), lambda b: (0, 0)),           # fused W (bf16)
                pl.BlockSpec((C, 1), lambda b: (0, 0)),              # out bias
            ],
            out_specs=pl.BlockSpec((1, C, N), lambda b: (b, 0, 0)),
        ),
        compiler_params=pltpu.CompilerParams(
            dimension_semantics=("parallel",),
            vmem_limit_bytes=_vmem_limit_bytes()),
    )(x_cn, gpool, gnw.reshape(C, 1), gnb.reshape(C, 1), wqkv_eff,
      bout.reshape(C, 1))

    # Pure reshape back to NCHW (no transpose).
    return out_cn.reshape(B, C, H, W)


def attention_ref(x_nchw, params):
    """Pure-JAX reference mirroring the PyTorch forward exactly."""
    gnw, gnb, wqkv, wout, bout = params
    B, C, H, W = x_nchw.shape
    N = H * W
    x = jnp.transpose(x_nchw.reshape(B, C, N), (0, 2, 1))       # (B, N, C)
    cs = C // NUM_GROUPS
    xg = x.reshape(B, N, NUM_GROUPS, cs)
    mu = xg.mean(axis=(1, 3), keepdims=True)
    var = ((xg - mu) ** 2).mean(axis=(1, 3), keepdims=True)
    xn = ((xg - mu) / jnp.sqrt(var + EPS)).reshape(B, N, C) * gnw + gnb
    qkv = xn @ wqkv.T                                           # (B, N, 3*HIDDEN)
    q, k, v = jnp.split(qkv, 3, axis=-1)

    def split_heads(t):
        return jnp.transpose(t.reshape(B, N, HEADS, DIM_HEAD), (0, 2, 1, 3))

    q, k, v = split_heads(q) * SCALE, split_heads(k), split_heads(v)
    sim = jnp.einsum('bhid,bhjd->bhij', q, k)
    sim = sim - sim.max(axis=-1, keepdims=True)
    attn = jax.nn.softmax(sim, axis=-1)
    out = jnp.einsum('bhij,bhjd->bhid', attn, v)                # (B, H, N, d)
    out = jnp.transpose(out, (0, 2, 1, 3)).reshape(B, N, HIDDEN)
    y = out @ wout.T + bout
    return jnp.transpose(y, (0, 2, 1)).reshape(B, C, H, W)


if __name__ == "__main__":
    key = jax.random.PRNGKey(0)
    kx, k1, k2, k3, k4, k5 = jax.random.split(key, 6)

    B, H, W = 2, 16, 16              # N = 256 (lane-dense)
    x = jax.random.normal(kx, (B, DIM, H, W), dtype=jnp.float32)

    # Deterministic synthetic parameters in native PyTorch layouts.
    gn_weight = 1.0 + 0.05 * jax.random.normal(k1, (DIM,), dtype=jnp.float32)
    gn_bias = 0.05 * jax.random.normal(k2, (DIM,), dtype=jnp.float32)
    # to_qkv: Conv2d(dim, 3*hidden, 1, bias=False) -> weight (3*HIDDEN, DIM)
    w_qkv = 0.05 * jax.random.normal(k3, (3 * HIDDEN, DIM), dtype=jnp.float32)
    # to_out: Conv2d(hidden, dim, 1) -> weight (DIM, HIDDEN) + bias (DIM,)
    w_out = 0.05 * jax.random.normal(k4, (DIM, HIDDEN), dtype=jnp.float32)
    b_out = 0.05 * jax.random.normal(k5, (DIM,), dtype=jnp.float32)

    params = (gn_weight, gn_bias, w_qkv, w_out, b_out)

    y = attention_forward(x, params)
    jax.block_until_ready(y)

    with jax.default_matmul_precision("highest"):
        y_ref = attention_ref(x, params)

    assert y.shape == (B, DIM, H, W)
    err = float(jnp.max(jnp.abs(y - y_ref)))
    assert jnp.allclose(y, y_ref, atol=2e-2, rtol=2e-2), err

    print("KERNEL_OK")
</pallas_src>

<mosaic_0001>
module attributes {stable_mosaic.version = 11 : i64} {
  func.func @attention_kernel(%arg0: i32, %arg1: memref<1x32x256xf32, #tpu.memory_space<vmem>>, %arg2: memref<32x32xf32, #tpu.memory_space<vmem>>, %arg3: memref<32x1xf32, #tpu.memory_space<vmem>>, %arg4: memref<32x1xf32, #tpu.memory_space<vmem>>, %arg5: memref<384x32xbf16, #tpu.memory_space<vmem>>, %arg6: memref<32x1xf32, #tpu.memory_space<vmem>>, %arg7: memref<1x32x256xf32, #tpu.memory_space<vmem>>) attributes {dimension_semantics = [#tpu.dimension_semantics<parallel>], iteration_bounds = array<i64: 2>, scalar_prefetch = 0 : i64, scratch_operands = 0 : i64, tpu.core_type = #tpu.core_type<tc>, window_params = [{transform_indices = @transform_0, window_bounds = array<i64: 1, 32, 256>}, {pipeline_mode = #tpu.pipeline_mode<synchronous>, transform_indices = @transform_1, window_bounds = array<i64: 32, 32>}, {pipeline_mode = #tpu.pipeline_mode<synchronous>, transform_indices = @transform_2, window_bounds = array<i64: 32, 1>}, {pipeline_mode = #tpu.pipeline_mode<synchronous>, transform_indices = @transform_3, window_bounds = array<i64: 32, 1>}, {pipeline_mode = #tpu.pipeline_mode<synchronous>, transform_indices = @transform_4, window_bounds = array<i64: 384, 32>}, {pipeline_mode = #tpu.pipeline_mode<synchronous>, transform_indices = @transform_5, window_bounds = array<i64: 32, 1>}, {transform_indices = @transform_6, window_bounds = array<i64: 1, 32, 256>}]} {
    %c0 = arith.constant 0 : index
    %c0_0 = arith.constant 0 : index
    %c0_1 = arith.constant 0 : index
    %0 = vector.load %arg1[%c0, %c0_0, %c0_1] : memref<1x32x256xf32, #tpu.memory_space<vmem>>, vector<1x32x256xf32>
    %1 = vector.shape_cast %0 : vector<1x32x256xf32> to vector<32x256xf32>
    %cst = arith.constant dense<0.000000e+00> : vector<32xf32>
    %2 = vector.multi_reduction <add>, %1, %cst [1] : vector<32x256xf32> to vector<32xf32>
    %3 = vector.shape_cast %2 : vector<32xf32> to vector<32x1xf32>
    %c0_2 = arith.constant 0 : index
    %c0_3 = arith.constant 0 : index
    %4 = vector.load %arg2[%c0_2, %c0_3] : memref<32x32xf32, #tpu.memory_space<vmem>>, vector<32x32xf32>
    %cst_4 = arith.constant dense<0.000000e+00> : vector<32x1xf32>
    %5 = tpu.matmul %4, %3, %cst_4 {dimension_numbers = #tpu.dot_dimension_numbers<[1], [0], [0], [1], [0, 0, 1, 1], [], []>} : vector<32x32xf32>, vector<32x1xf32>, vector<32x1xf32> -> vector<32x1xf32>
    %6 = vector.broadcast %5 : vector<32x1xf32> to vector<32x256xf32>
    %7 = arith.subf %1, %6 : vector<32x256xf32>
    %8 = arith.mulf %7, %7 : vector<32x256xf32>
    %cst_5 = arith.constant dense<0.000000e+00> : vector<32xf32>
    %9 = vector.multi_reduction <add>, %8, %cst_5 [1] : vector<32x256xf32> to vector<32xf32>
    %10 = vector.shape_cast %9 : vector<32xf32> to vector<32x1xf32>
    %c0_6 = arith.constant 0 : index
    %c0_7 = arith.constant 0 : index
    %11 = vector.load %arg2[%c0_6, %c0_7] : memref<32x32xf32, #tpu.memory_space<vmem>>, vector<32x32xf32>
    %cst_8 = arith.constant dense<0.000000e+00> : vector<32x1xf32>
    %12 = tpu.matmul %11, %10, %cst_8 {dimension_numbers = #tpu.dot_dimension_numbers<[1], [0], [0], [1], [0, 0, 1, 1], [], []>} : vector<32x32xf32>, vector<32x1xf32>, vector<32x1xf32> -> vector<32x1xf32>
    %cst_9 = arith.constant 0.000000e+00 : f32
    %13 = vector.broadcast %cst_9 : f32 to vector<32x1xf32>
    %14 = arith.maximumf %12, %13 : vector<32x1xf32>
    %cst_10 = arith.constant 9.99999974E-6 : f32
    %15 = vector.broadcast %cst_10 : f32 to vector<32x1xf32>
    %16 = arith.addf %14, %15 : vector<32x1xf32>
    %17 = math.rsqrt %16 : vector<32x1xf32>
    %c0_11 = arith.constant 0 : index
    %c0_12 = arith.constant 0 : index
    %18 = vector.load %arg3[%c0_11, %c0_12] : memref<32x1xf32, #tpu.memory_space<vmem>>, vector<32x1xf32>
    %19 = arith.mulf %17, %18 : vector<32x1xf32>
    %20 = vector.broadcast %19 : vector<32x1xf32> to vector<32x256xf32>
    %21 = arith.mulf %7, %20 : vector<32x256xf32>
    %c0_13 = arith.constant 0 : index
    %c0_14 = arith.constant 0 : index
    %22 = vector.load %arg4[%c0_13, %c0_14] : memref<32x1xf32, #tpu.memory_space<vmem>>, vector<32x1xf32>
    %23 = vector.broadcast %22 : vector<32x1xf32> to vector<32x256xf32>
    %24 = arith.addf %21, %23 : vector<32x256xf32>
    %25 = arith.truncf %24 : vector<32x256xf32> to vector<32x256xbf16>
    %c0_15 = arith.constant 0 : index
    %c0_16 = arith.constant 0 : index
    %26 = vector.load %arg5[%c0_15, %c0_16] : memref<384x32xbf16, #tpu.memory_space<vmem>>, vector<384x32xbf16>
    %cst_17 = arith.constant dense<0.000000e+00> : vector<384x256xf32>
    %27 = tpu.matmul %26, %25, %cst_17 {dimension_numbers = #tpu.dot_dimension_numbers<[1], [0], [0], [1], [0, 0, 1, 1], [], []>} : vector<384x32xbf16>, vector<32x256xbf16>, vector<384x256xf32> -> vector<384x256xf32>
    %28 = arith.truncf %27 : vector<384x256xf32> to vector<384x256xbf16>
    %29 = vector.extract_strided_slice %28 {offsets = [0, 0], sizes = [32, 256], strides = [1, 1]} : vector<384x256xbf16> to vector<32x256xbf16>
    %30 = vector.extract_strided_slice %28 {offsets = [128, 0], sizes = [32, 256], strides = [1, 1]} : vector<384x256xbf16> to vector<32x256xbf16>
    %31 = vector.extract_strided_slice %28 {offsets = [256, 0], sizes = [32, 256], strides = [1, 1]} : vector<384x256xbf16> to vector<32x256xbf16>
    %cst_18 = arith.constant dense<0.000000e+00> : vector<256x256xf32>
    %32 = tpu.matmul %30, %29, %cst_18 {dimension_numbers = #tpu.dot_dimension_numbers<[0], [0], [1], [1], [0, 1, 1, 1], [], []>} : vector<32x256xbf16>, vector<32x256xbf16>, vector<256x256xf32> -> vector<256x256xf32>
    %cst_19 = arith.constant dense<0xFF800000> : vector<256xf32>
    %33 = vector.multi_reduction <maximumf>, %32, %cst_19 [0] : vector<256x256xf32> to vector<256xf32>
    %34 = vector.shape_cast %33 : vector<256xf32> to vector<1x256xf32>
    %35 = vector.broadcast %34 : vector<1x256xf32> to vector<256x256xf32>
    %36 = arith.subf %32, %35 : vector<256x256xf32>
    %37 = math.exp %36 : vector<256x256xf32>
    %cst_20 = arith.constant dense<0.000000e+00> : vector<256xf32>
    %38 = vector.multi_reduction <add>, %37, %cst_20 [0] : vector<256x256xf32> to vector<256xf32>
    %39 = vector.shape_cast %38 : vector<256xf32> to vector<1x256xf32>
    %40 = tpu.reciprocal %39 {approx = true} : vector<1x256xf32> -> vector<1x256xf32>
    %41 = arith.truncf %37 : vector<256x256xf32> to vector<256x256xbf16>
    %cst_21 = arith.constant dense<0.000000e+00> : vector<32x256xf32>
    %42 = tpu.matmul %31, %41, %cst_21 {dimension_numbers = #tpu.dot_dimension_numbers<[1], [0], [0], [1], [0, 0, 1, 1], [], []>} : vector<32x256xbf16>, vector<256x256xbf16>, vector<32x256xf32> -> vector<32x256xf32>
    %43 = vector.broadcast %40 : vector<1x256xf32> to vector<32x256xf32>
    %44 = arith.mulf %42, %43 : vector<32x256xf32>
    %45 = vector.extract_strided_slice %28 {offsets = [32, 0], sizes = [32, 256], strides = [1, 1]} : vector<384x256xbf16> to vector<32x256xbf16>
    %46 = vector.extract_strided_slice %28 {offsets = [160, 0], sizes = [32, 256], strides = [1, 1]} : vector<384x256xbf16> to vector<32x256xbf16>
    %47 = vector.extract_strided_slice %28 {offsets = [288, 0], sizes = [32, 256], strides = [1, 1]} : vector<384x256xbf16> to vector<32x256xbf16>
    %cst_22 = arith.constant dense<0.000000e+00> : vector<256x256xf32>
    %48 = tpu.matmul %46, %45, %cst_22 {dimension_numbers = #tpu.dot_dimension_numbers<[0], [0], [1], [1], [0, 1, 1, 1], [], []>} : vector<32x256xbf16>, vector<32x256xbf16>, vector<256x256xf32> -> vector<256x256xf32>
    %cst_23 = arith.constant dense<0xFF800000> : vector<256xf32>
    %49 = vector.multi_reduction <maximumf>, %48, %cst_23 [0] : vector<256x256xf32> to vector<256xf32>
    %50 = vector.shape_cast %49 : vector<256xf32> to vector<1x256xf32>
    %51 = vector.broadcast %50 : vector<1x256xf32> to vector<256x256xf32>
    %52 = arith.subf %48, %51 : vector<256x256xf32>
    %53 = math.exp %52 : vector<256x256xf32>
    %cst_24 = arith.constant dense<0.000000e+00> : vector<256xf32>
    %54 = vector.multi_reduction <add>, %53, %cst_24 [0] : vector<256x256xf32> to vector<256xf32>
    %55 = vector.shape_cast %54 : vector<256xf32> to vector<1x256xf32>
    %56 = tpu.reciprocal %55 {approx = true} : vector<1x256xf32> -> vector<1x256xf32>
    %57 = arith.truncf %53 : vector<256x256xf32> to vector<256x256xbf16>
    %cst_25 = arith.constant dense<0.000000e+00> : vector<32x256xf32>
    %58 = tpu.matmul %47, %57, %cst_25 {dimension_numbers = #tpu.dot_dimension_numbers<[1], [0], [0], [1], [0, 0, 1, 1], [], []>} : vector<32x256xbf16>, vector<256x256xbf16>, vector<32x256xf32> -> vector<32x256xf32>
    %59 = vector.broadcast %56 : vector<1x256xf32> to vector<32x256xf32>
    %60 = arith.mulf %58, %59 : vector<32x256xf32>
    %61 = arith.addf %44, %60 : vector<32x256xf32>
    %62 = vector.extract_strided_slice %28 {offsets = [64, 0], sizes = [32, 256], strides = [1, 1]} : vector<384x256xbf16> to vector<32x256xbf16>
    %63 = vector.extract_strided_slice %28 {offsets = [192, 0], sizes = [32, 256], strides = [1, 1]} : vector<384x256xbf16> to vector<32x256xbf16>
    %64 = vector.extract_strided_slice %28 {offsets = [320, 0], sizes = [32, 256], strides = [1, 1]} : vector<384x256xbf16> to vector<32x256xbf16>
    %cst_26 = arith.constant dense<0.000000e+00> : vector<256x256xf32>
    %65 = tpu.matmul %63, %62, %cst_26 {dimension_numbers = #tpu.dot_dimension_numbers<[0], [0], [1], [1], [0, 1, 1, 1], [], []>} : vector<32x256xbf16>, vector<32x256xbf16>, vector<256x256xf32> -> vector<256x256xf32>
    %cst_27 = arith.constant dense<0xFF800000> : vector<256xf32>
    %66 = vector.multi_reduction <maximumf>, %65, %cst_27 [0] : vector<256x256xf32> to vector<256xf32>
    %67 = vector.shape_cast %66 : vector<256xf32> to vector<1x256xf32>
    %68 = vector.broadcast %67 : vector<1x256xf32> to vector<256x256xf32>
    %69 = arith.subf %65, %68 : vector<256x256xf32>
    %70 = math.exp %69 : vector<256x256xf32>
    %cst_28 = arith.constant dense<0.000000e+00> : vector<256xf32>
    %71 = vector.multi_reduction <add>, %70, %cst_28 [0] : vector<256x256xf32> to vector<256xf32>
    %72 = vector.shape_cast %71 : vector<256xf32> to vector<1x256xf32>
    %73 = tpu.reciprocal %72 {approx = true} : vector<1x256xf32> -> vector<1x256xf32>
    %74 = arith.truncf %70 : vector<256x256xf32> to vector<256x256xbf16>
    %cst_29 = arith.constant dense<0.000000e+00> : vector<32x256xf32>
    %75 = tpu.matmul %64, %74, %cst_29 {dimension_numbers = #tpu.dot_dimension_numbers<[1], [0], [0], [1], [0, 0, 1, 1], [], []>} : vector<32x256xbf16>, vector<256x256xbf16>, vector<32x256xf32> -> vector<32x256xf32>
    %76 = vector.broadcast %73 : vector<1x256xf32> to vector<32x256xf32>
    %77 = arith.mulf %75, %76 : vector<32x256xf32>
    %78 = arith.addf %61, %77 : vector<32x256xf32>
    %79 = vector.extract_strided_slice %28 {offsets = [96, 0], sizes = [32, 256], strides = [1, 1]} : vector<384x256xbf16> to vector<32x256xbf16>
    %80 = vector.extract_strided_slice %28 {offsets = [224, 0], sizes = [32, 256], strides = [1, 1]} : vector<384x256xbf16> to vector<32x256xbf16>
    %81 = vector.extract_strided_slice %28 {offsets = [352, 0], sizes = [32, 256], strides = [1, 1]} : vector<384x256xbf16> to vector<32x256xbf16>
    %cst_30 = arith.constant dense<0.000000e+00> : vector<256x256xf32>
    %82 = tpu.matmul %80, %79, %cst_30 {dimension_numbers = #tpu.dot_dimension_numbers<[0], [0], [1], [1], [0, 1, 1, 1], [], []>} : vector<32x256xbf16>, vector<32x256xbf16>, vector<256x256xf32> -> vector<256x256xf32>
    %cst_31 = arith.constant dense<0xFF800000> : vector<256xf32>
    %83 = vector.multi_reduction <maximumf>, %82, %cst_31 [0] : vector<256x256xf32> to vector<256xf32>
    %84 = vector.shape_cast %83 : vector<256xf32> to vector<1x256xf32>
    %85 = vector.broadcast %84 : vector<1x256xf32> to vector<256x256xf32>
    %86 = arith.subf %82, %85 : vector<256x256xf32>
    %87 = math.exp %86 : vector<256x256xf32>
    %cst_32 = arith.constant dense<0.000000e+00> : vector<256xf32>
    %88 = vector.multi_reduction <add>, %87, %cst_32 [0] : vector<256x256xf32> to vector<256xf32>
    %89 = vector.shape_cast %88 : vector<256xf32> to vector<1x256xf32>
    %90 = tpu.reciprocal %89 {approx = true} : vector<1x256xf32> -> vector<1x256xf32>
    %91 = arith.truncf %87 : vector<256x256xf32> to vector<256x256xbf16>
    %cst_33 = arith.constant dense<0.000000e+00> : vector<32x256xf32>
    %92 = tpu.matmul %81, %91, %cst_33 {dimension_numbers = #tpu.dot_dimension_numbers<[1], [0], [0], [1], [0, 0, 1, 1], [], []>} : vector<32x256xbf16>, vector<256x256xbf16>, vector<32x256xf32> -> vector<32x256xf32>
    %93 = vector.broadcast %90 : vector<1x256xf32> to vector<32x256xf32>
    %94 = arith.mulf %92, %93 : vector<32x256xf32>
    %95 = arith.addf %78, %94 : vector<32x256xf32>
    %c0_34 = arith.constant 0 : index
    %c0_35 = arith.constant 0 : index
    %96 = vector.load %arg6[%c0_34, %c0_35] : memref<32x1xf32, #tpu.memory_space<vmem>>, vector<32x1xf32>
    %97 = vector.broadcast %96 : vector<32x1xf32> to vector<32x256xf32>
    %98 = arith.addf %95, %97 : vector<32x256xf32>
    %c0_36 = arith.constant 0 : index
    %c0_37 = arith.constant 0 : index
    %c0_38 = arith.constant 0 : index
    %99 = vector.load %arg7[%c0_36, %c0_37, %c0_38] : memref<1x32x256xf32, #tpu.memory_space<vmem>>, vector<1x32x256xf32>
    %100 = vector.shape_cast %99 : vector<1x32x256xf32> to vector<32x256xf32>
    %101 = vector.shape_cast %98 : vector<32x256xf32> to vector<1x32x256xf32>
    tpu.vector_store %arg7[%c0_36, %c0_37, %c0_38], %101 {strides = array<i32>} : memref<1x32x256xf32, #tpu.memory_space<vmem>>, vector<1x32x256xf32>,
    return
  }
  func.func @transform_0(%arg0: i32) -> (i32, i32, i32) {
    %c0_i32 = arith.constant 0 : i32
    %c0_i32_0 = arith.constant 0 : i32
    %c0_i32_1 = arith.constant 0 : i32
    return %arg0, %c0_i32, %c0_i32_0 : i32, i32, i32
  }
  func.func @transform_1(%arg0: i32) -> (i32, i32) {
    %c0_i32 = arith.constant 0 : i32
    %c0_i32_0 = arith.constant 0 : i32
    %c0_i32_1 = arith.constant 0 : i32
    return %c0_i32, %c0_i32_0 : i32, i32
  }
  func.func @transform_2(%arg0: i32) -> (i32, i32) {
    %c0_i32 = arith.constant 0 : i32
    %c0_i32_0 = arith.constant 0 : i32
    %c0_i32_1 = arith.constant 0 : i32
    return %c0_i32, %c0_i32_0 : i32, i32
  }
  func.func @transform_3(%arg0: i32) -> (i32, i32) {
    %c0_i32 = arith.constant 0 : i32
    %c0_i32_0 = arith.constant 0 : i32
    %c0_i32_1 = arith.constant 0 : i32
    return %c0_i32, %c0_i32_0 : i32, i32
  }
  func.func @transform_4(%arg0: i32) -> (i32, i32) {
    %c0_i32 = arith.constant 0 : i32
    %c0_i32_0 = arith.constant 0 : i32
    %c0_i32_1 = arith.constant 0 : i32
    return %c0_i32, %c0_i32_0 : i32, i32
  }
  func.func @transform_5(%arg0: i32) -> (i32, i32) {
    %c0_i32 = arith.constant 0 : i32
    %c0_i32_0 = arith.constant 0 : i32
    %c0_i32_1 = arith.constant 0 : i32
    return %c0_i32, %c0_i32_0 : i32, i32
  }
  func.func @transform_6(%arg0: i32) -> (i32, i32, i32) {
    %c0_i32 = arith.constant 0 : i32
    %c0_i32_0 = arith.constant 0 : i32
    %c0_i32_1 = arith.constant 0 : i32
    return %arg0, %c0_i32, %c0_i32_0 : i32, i32, i32
  }
}

</mosaic_0001>

<bundles_post_ra>
// kernel: attention_forward.1
= control target key start
LH: loop header
LB: loop body
LE: loop exit
PB: predicated region body
PF: predicated region fallthrough
CT: control target
= control target key end

     0   :  { %s5166_s21 = smov 0   ;;  %s8060_s0 = inlined_call_operand.vmem [shape: f32[2,32,256], index: 0, kind: input, shape index: {}]   ;;  %s8061_s1 = inlined_call_operand.vmem [shape: f32[32,32], index: 1, kind: input, shape index: {}]   ;;  %s8062_s2 = inlined_call_operand.vmem [shape: f32[32,1], index: 2, kind: input, shape index: {}]   ;;  %s8063_s3 = inlined_call_operand.vmem [shape: f32[32,1], index: 3, kind: input, shape index: {}]   ;;  %s8064_s4 = inlined_call_operand.vmem [shape: bf16[384,32], index: 4, kind: input, shape index: {}]   ;;  %s8065_s5 = inlined_call_operand.vmem [shape: f32[32,1], index: 5, kind: input, shape index: {}]   ;;  %s8066_s6 = inlined_call_operand.vmem [shape: f32[2,32,256], index: 6, kind: output, shape index: {}]  }
   0x1 LB: > { %s4253_s22 = sadd.s32 4294967295, %s5128_s21   ;;  %p4257_p0 = scmp.ge.s32.totalorder %s5128_s21, 1  ;;  %s5128_s21 = sphi %s5166_s21, %s16_s21  }
   0x2   : > { %p212_p1 = scmp.lt.s32.totalorder %s5128_s21, 3 }
   0x4   : > { %p213_p2 = pnand %p4257_p0, %p212_p1 }
   0x6   : > { %216 = sbr.rel (%p213_p2) target bundleno = 3457 (0xd81), region = 44 }
   0xb   : > { %p242_p3 = scmp.lt.s32.totalorder %s4253_s22, 1  ;;  %v5130_v14 = vmov 0   ;;  %v273_v17 = vld [vmem:[%s8061_s1] sm:$0xff]  ;;  %vm277_vm0 = vcmask 261120   ;;  %v274_v18 = vld [vmem:[%s8061_s1 + $0x8] sm:$0xff]  ;;  %v275_v19 = vld [vmem:[%s8061_s1 + $0x10] sm:$0xff] }
   0xc   : > { %4585 = vset.pattern.permute.xlu1 %v5130_v14  ;;  %4584 = vset.pattern.permute.xlu0 %v5130_v14  ;;  %v276_v20 = vld [vmem:[%s8061_s1 + $0x18] sm:$0xff]  ;;  %v482_v49 = vld [vmem:[%s8063_s3 + $0x10] sm:$0xff] }
   0xd   : > { %s8499_s22 = smov (!%p242_p3, %s4253_s22), 1  ;;  %4583 = vset.pattern.permute.xlu2 %v5130_v14  ;;  %v483_v50 = vld [vmem:[%s8063_s3 + $0x18] sm:$0xff] }
   0xe   : > { %s4544_s23 = sshll.u32 %s8499_s22, 6 }
   0xf   : > { %s246_s26 = scalar_lea.vmem %s8060_s0, %s4544_s23  ;;  %s8040_s25 = scalar_lea.vmem %s8066_s6, %s4544_s23 }
  0x10   : > { %v259_v0 = vld [vmem:[%s246_s26 + $0x30] sm:$0xff]  ;;  %v260_v1 = vld [vmem:[%s246_s26 + $0x38] sm:$0xff]  ;;  %v257_v6 = vld [vmem:[%s246_s26 + $0x20] sm:$0xff] }
  0x11   : > { %v255_v2 = vld [vmem:[%s246_s26 + $0x10] sm:$0xff]  ;;  %v270_v3 = vadd.f32 %v260_v1, %v259_v0  ;;  %v256_v4 = vld [vmem:[%s246_s26 + $0x18] sm:$0xff]  ;;  %v258_v7 = vld [vmem:[%s246_s26 + $0x28] sm:$0xff] }
  0x12   : > { %v264_v5 = vadd.f32 %v256_v4, %v255_v2  ;;  %v253_v8 = vld [vmem:[%s246_s26] sm:$0xff]  ;;  %v254_v9 = vld [vmem:[%s246_s26 + $0x8] sm:$0xff]  ;;  %v267_v10 = vadd.f32 %v258_v7, %v257_v6 }
  0x13   : > { %271 = vadd.xlane.f32.xlu0 %v270_v3  ;;  %v261_v11 = vadd.f32 %v254_v9, %v253_v8 }
  0x14   : > { %265 = vadd.xlane.f32.xlu1 %v264_v5 }
  0x1b   : > { %268 = vadd.xlane.f32.xlu0 %v267_v10 }
  0x1c   : > { %262 = vadd.xlane.f32.xlu1 %v261_v11 }
  0x86   : > { %v272_v12 = vpop.xlane.xlu0 %271 }
  0x87   : > { %302 = vmatpush.msra.mxu0 %v272_v12  ;;  %v266_v13 = vpop.xlane.xlu1 %265 }
  0x8e   : > { %v269_v15 = vpop.xlane.xlu0 %268 }
  0x8f   : > { %303 = vmatpush.msra.mxu0 %v269_v15  ;;  %v263_v16 = vpop.xlane.xlu1 %262 }
  0x91   : > { %304 = vmatpush.msra.mxu0 %v266_v13 }
  0x93   : > { %305 = vmatpush.msra.mxu0 %v263_v16 }
  0x94   : > { %4262 = vmatmul.msk.f32.vlgmr.msra.gmra.mxu0 %vm277_vm0, %v273_v17 }
  0x9c   : > { %4263 = vmatmul.msk.f32.gmra.mxu0 %vm277_vm0, %v274_v18 }
  0xa4   : > { %4264 = vmatmul.msk.f32.gmra.mxu0 %vm277_vm0, %v275_v19 }
  0xac   : > { %4265 = vmatmul.msk.f32.gmra.mxu0 %vm277_vm0, %v276_v20 }
 0x111   : > { %v307_v21 = vpop.f32.mrf.mxu0 }
 0x112   : > { %321 = vperm.xlu1 %4585, %v307_v21  }
 0x119   : > { %v310_v22 = vpop.f32.mrf.mxu0 }
 0x11a   : > { %326 = vperm.xlu0 %4584, %v310_v22  }
 0x121   : > { %v313_v23 = vpop.f32.mrf.mxu0 }
 0x129   : > { %v316_v24 = vpop.f32.mrf.mxu0 }
 0x12a   : > { %336 = vperm.xlu2 %4583, %v316_v24  }
 0x132   : > { %331 = vperm.xlu2 %4583, %v313_v23  }
 0x184   : > { %v337_v25 = vpop.permute.xlu2 %336  ;;  %v322_v26 = vpop.permute.xlu1 %321 }
 0x185   : > { %v5198_v27 = vsub.f32 %v259_v0, %v337_v25  ;;  %v5200_v28 = vsub.f32 %v260_v1, %v337_v25  ;;  %v5206_v31 = vsub.f32 %v253_v8, %v322_v26  ;;  %v5208_v32 = vsub.f32 %v254_v9, %v322_v26  ;;  %v444_v8 = vld [vmem:[%s8062_s2] sm:$0xff] }
 0x187   : > { %v353_v29 = vmul.f32 %v5198_v27, %v5198_v27  ;;  %v354_v30 = vmul.f32 %v5200_v28, %v5200_v28  ;;  %v347_v36 = vmul.f32 %v5206_v31, %v5206_v31  ;;  %v348_v37 = vmul.f32 %v5208_v32, %v5208_v32 }
 0x189   : > { %v364_v33 = vadd.f32 %v354_v30, %v353_v29  ;;  %v355_v47 = vadd.f32 %v348_v37, %v347_v36 }
 0x18b   : > { %365 = vadd.xlane.f32.xlu2 %v364_v33  ;;  %v446_v33 = vld [vmem:[%s8062_s2 + $0x10] sm:$0xff] }
 0x18c   : > { %v327_v34 = vpop.permute.xlu0 %326  ;;  %v332_v35 = vpop.permute.xlu2 %331 }
 0x18d   : > { %v5214_v38 = vsub.f32 %v255_v2, %v327_v34  ;;  %v5216_v39 = vsub.f32 %v256_v4, %v327_v34  ;;  %v5218_v40 = vsub.f32 %v257_v6, %v332_v35  ;;  %v5220_v41 = vsub.f32 %v258_v7, %v332_v35 }
 0x18f   : > { %v349_v42 = vmul.f32 %v5214_v38, %v5214_v38  ;;  %v350_v43 = vmul.f32 %v5216_v39, %v5216_v39  ;;  %v351_v44 = vmul.f32 %v5218_v40, %v5218_v40  ;;  %v352_v45 = vmul.f32 %v5220_v41, %v5220_v41 }
 0x191   : > { %v358_v46 = vadd.f32 %v350_v43, %v349_v42  ;;  %v361_v48 = vadd.f32 %v352_v45, %v351_v44  ;;  %v447_v44 = vld [vmem:[%s8062_s2 + $0x18] sm:$0xff]  ;;  %v481_v45 = vld [vmem:[%s8063_s3 + $0x8] sm:$0xff] }
 0x193   : > { %359 = vadd.xlane.f32.xlu0 %v358_v46  ;;  %356 = vadd.xlane.f32.xlu2 %v355_v47 }
 0x194   : > { %362 = vadd.xlane.f32.xlu1 %v361_v48  ;;  %v480_v48 = vld [vmem:[%s8063_s3] sm:$0xff] }
 0x1ab   : > { %496 = vperm.xlu2 %4583, %v482_v49  }
 0x1b3   : > { %501 = vperm.xlu2 %4583, %v483_v50  }
 0x1fe   : > { %v366_v51 = vpop.xlane.xlu2 %365 }
 0x1ff   : > { %379 = vmatpush.msra.mxu1 %v366_v51 }
 0x206   : > { %v360_v53 = vpop.xlane.xlu0 %359  ;;  %v357_v54 = vpop.xlane.xlu2 %356 }
 0x207   : > { %v363_v52 = vpop.xlane.xlu1 %362 }
 0x208   : > { %380 = vmatpush.msra.mxu1 %v363_v52 }
 0x20a   : > { %381 = vmatpush.msra.mxu1 %v360_v53 }
 0x20c   : > { %382 = vmatpush.msra.mxu1 %v357_v54 }
 0x20d   : > { %4266 = vmatmul.msk.f32.vlgmr.msra.gmra.mxu1 %vm277_vm0, %v273_v17 }
 0x20e   : > { %v497_v49 = vpop.permute.xlu2 %496 }
 0x215   : > { %4267 = vmatmul.msk.f32.gmra.mxu1 %vm277_vm0, %v274_v18 }
 0x216   : > { %v502_v50 = vpop.permute.xlu2 %501 }
 0x21d   : > { %4268 = vmatmul.msk.f32.gmra.mxu1 %vm277_vm0, %v275_v19 }
 0x225   : > { %4269 = vmatmul.msk.f32.gmra.mxu1 %vm277_vm0, %v276_v20  ;;  %v445_v20 = vld [vmem:[%s8062_s2 + $0x8] sm:$0xff] }
 0x28a   : > { %v384_v55 = vpop.f32.mrf.mxu1 }
 0x28b   : > { %v396_v56 = vmax.f32 %v384_v55, 0.0 }
 0x28d   : > { %v400_v57 = vadd.f32 1e-05, %v396_v56 }
 0x28f   : > { %4586 = vrsqrt.f32 %v400_v57  ;;  %vm410_vm2 = vweird.f32 %v400_v57 }
 0x292   : > { %v387_v58 = vpop.f32.mrf.mxu1 }
 0x293   : > { %v397_v59 = vmax.f32 %v387_v58, 0.0 }
 0x295   : > { %v4587_v60 = vpop.eup %4586  ;;  %v401_v61 = vadd.f32 1e-05, %v397_v59 }
 0x296   : > { %v405_v62 = vmul.f32 %v4587_v60, %v400_v57  ;;  %vm411_vm1 = vweird.f32 %v4587_v60 }
 0x297   : > { %4588 = vrsqrt.f32 %v401_v61  ;;  %vm412_vm3 = vmor %vm410_vm2, %vm411_vm1  ;;  %vm420_vm5 = vweird.f32 %v401_v61 }
 0x298   : > { %v406_v63 = vmul.f32 %v4587_v60, %v405_v62 }
 0x29a   : > { %v407_v0 = vmul.f32 0.5, %v406_v63  ;;  %v390_v1 = vpop.f32.mrf.mxu1 }
 0x29b   : > { %v398_v2 = vmax.f32 %v390_v1, 0.0 }
 0x29c   : > { %v408_v3 = vsub.f32 1.5, %v407_v0 }
 0x29d   : > { %v4589_v4 = vpop.eup %4588  ;;  %v402_v5 = vadd.f32 1e-05, %v398_v2 }
 0x29e   : > { %v415_v6 = vmul.f32 %v4589_v4, %v401_v61  ;;  %v409_v7 = vmul.f32 %v4587_v60, %v408_v3  ;;  %vm421_vm4 = vweird.f32 %v4589_v4 }
 0x29f   : > { %4590 = vrsqrt.f32 %v402_v5  ;;  %vm422_vm6 = vmor %vm420_vm5, %vm421_vm4  ;;  %vm430_vm8 = vweird.f32 %v402_v5 }
 0x2a0   : > { %v416_v9 = vmul.f32 %v4589_v4, %v415_v6  ;;  %v413_v10 = vsel %vm412_vm3, %v4587_v60, %v409_v7 }
 0x2a1   : > { %v448_v11 = vmul.f32 %v444_v8, %v413_v10  ;;  %v4551_v10 = vld [vmem:[%s8064_s4 + $0x28] sm:$0xff] }
 0x2a2   : > { %v417_v12 = vmul.f32 0.5, %v416_v9  ;;  %v393_v13 = vpop.f32.mrf.mxu1  ;;  %v4550_v9 = vld [vmem:[%s8064_s4 + $0x20] sm:$0xff] }
 0x2a3   : > { %v399_v14 = vmax.f32 %v393_v13, 0.0  ;;  %454 = vperm.xlu0 %4584, %v448_v11   ;;  %v4552_v11 = vld [vmem:[%s8064_s4 + $0x30] sm:$0xff]  ;;  %v4554_v13 = vld [vmem:[%s8064_s4 + $0x40] sm:$0xff] }
 0x2a4   : > { %v418_v15 = vsub.f32 1.5, %v417_v12  ;;  %v4553_v12 = vld [vmem:[%s8064_s4 + $0x38] sm:$0xff] }
 0x2a5   : > { %v4591_v16 = vpop.eup %4590  ;;  %v403_v17 = vadd.f32 1e-05, %v399_v14 }
 0x2a6   : > { %v425_v18 = vmul.f32 %v4591_v16, %v402_v5  ;;  %v419_v19 = vmul.f32 %v4589_v4, %v418_v15  ;;  %vm431_vm7 = vweird.f32 %v4591_v16 }
 0x2a7   : > { %4592 = vrsqrt.f32 %v403_v17  ;;  %vm432_vm9 = vmor %vm430_vm8, %vm431_vm7  ;;  %vm440_vm11 = vweird.f32 %v403_v17 }
 0x2a8   : > { %v426_v21 = vmul.f32 %v4591_v16, %v425_v18  ;;  %v423_v22 = vsel %vm422_vm6, %v4589_v4, %v419_v19  ;;  %v4555_v18 = vld [vmem:[%s8064_s4 + $0x48] sm:$0xff] }
 0x2a9   : > { %v449_v23 = vmul.f32 %v445_v20, %v423_v22 }
 0x2aa   : > { %v427_v24 = vmul.f32 0.5, %v426_v21 }
 0x2ab   : > { %459 = vperm.xlu2 %4583, %v449_v23  }
 0x2ac   : > { %v428_v25 = vsub.f32 1.5, %v427_v24 }
 0x2ad   : > { %v4593_v26 = vpop.eup %4592 }
 0x2ae   : > { %v435_v29 = vmul.f32 %v4593_v26, %v403_v17  ;;  %v429_v30 = vmul.f32 %v4591_v16, %v428_v25  ;;  %vm441_vm10 = vweird.f32 %v4593_v26 }
 0x2af   : > { %vm442_vm12 = vmor %vm440_vm11, %vm441_vm10 }
 0x2b0   : > { %v436_v34 = vmul.f32 %v4593_v26, %v435_v29  ;;  %v433_v35 = vsel %vm432_vm9, %v4591_v16, %v429_v30 }
 0x2b1   : > { %v450_v36 = vmul.f32 %v446_v33, %v433_v35 }
 0x2b2   : > { %v437_v37 = vmul.f32 0.5, %v436_v34 }
 0x2b3   : > { %464 = vperm.xlu2 %4583, %v450_v36  }
 0x2b4   : > { %v438_v42 = vsub.f32 1.5, %v437_v37 }
 0x2b6   : > { %v439_v43 = vmul.f32 %v4593_v26, %v438_v42 }
 0x2b8   : > { %v443_v46 = vsel %vm442_vm12, %v4593_v26, %v439_v43  ;;  %v4556_v26 = vld [vmem:[%s8064_s4 + $0x50] sm:$0xff] }
 0x2b9   : > { %v451_v47 = vmul.f32 %v447_v44, %v443_v46 }
 0x2bb   : > { %491 = vperm.xlu2 %4583, %v481_v45   ;;  %469 = vperm.xlu1 %4585, %v451_v47  }
 0x2c3   : > { %486 = vperm.xlu1 %4585, %v480_v48  }
 0x305   : > { %v460_v51 = vpop.permute.xlu2 %459 }
 0x306   : > { %v474_v1 = vmul.f32 %v460_v51, %v5214_v38  ;;  %v475_v3 = vmul.f32 %v460_v51, %v5216_v39  ;;  %v4546_v38 = vld [vmem:[%s8064_s4] sm:$0xff]  ;;  %v4549_v39 = vld [vmem:[%s8064_s4 + $0x18] sm:$0xff] }
 0x30d   : > { %v465_v52 = vpop.permute.xlu2 %464 }
 0x30e   : > { %v476_v53 = vmul.f32 %v465_v52, %v5218_v40  ;;  %v477_v54 = vmul.f32 %v465_v52, %v5220_v41 }
 0x310   : > { %v508_v58 = vadd.f32 %v497_v49, %v476_v53  ;;  %v509_v60 = vadd.f32 %v497_v49, %v477_v54  ;;  %v4557_v53 = vld [vmem:[%s8064_s4 + $0x58] sm:$0xff] }
 0x315   : > { %v455_v62 = vpop.permute.xlu0 %454  ;;  %v492_v2 = vpop.permute.xlu2 %491 }
 0x316   : > { %v472_v40 = vmul.f32 %v455_v62, %v5206_v31  ;;  %v473_v41 = vmul.f32 %v455_v62, %v5208_v32  ;;  %v507_v4 = vadd.f32 %v492_v2, %v475_v3  ;;  %v4547_v31 = vld [vmem:[%s8064_s4 + $0x8] sm:$0xff]  ;;  %v4548_v32 = vld [vmem:[%s8064_s4 + $0x10] sm:$0xff] }
 0x32d   : > { %v470_v55 = vpop.permute.xlu1 %469 }
 0x32e   : > { %v478_v56 = vmul.f32 %v470_v55, %v5198_v27  ;;  %v479_v57 = vmul.f32 %v470_v55, %v5200_v28  ;;  %v506_v28 = vadd.f32 %v492_v2, %v474_v1  ;;  %v4559_v1 = vld [vmem:[%s8064_s4 + $0x68] sm:$0xff] }
 0x330   : > { %v510_v59 = vadd.f32 %v502_v50, %v478_v56  ;;  %v511_v61 = vadd.f32 %v502_v50, %v479_v57 }
 0x332   : > { %v514_v63 = vpack.c.bf16 %v510_v59, %v508_v58  ;;  %v515_v0 = vpack.c.bf16 %v511_v61, %v509_v60  ;;  %v4558_v59 = vld [vmem:[%s8064_s4 + $0x60] sm:$0xff] }
 0x334   : > { %762 = vmatpush.bf16.msra.mxu2 %v514_v63  ;;  %891 = vmatpush.bf16.msra.mxu3 %v515_v0 }
 0x335   : > { %v487_v27 = vpop.permute.xlu1 %486 }
 0x336   : > { %v504_v5 = vadd.f32 %v487_v27, %v472_v40  ;;  %v505_v6 = vadd.f32 %v487_v27, %v473_v41 }
 0x338   : > { %v512_v7 = vpack.c.bf16 %v506_v28, %v504_v5  ;;  %v513_v8 = vpack.c.bf16 %v507_v4, %v505_v6 }
 0x33a   : > { %763 = vmatpush.bf16.msra.mxu2 %v512_v7  ;;  %892 = vmatpush.bf16.msra.mxu3 %v513_v8 }
 0x33d   : > { %4366 = vmatmul.msk.bf16.vlgmr.msra.gmra.mxu2 %vm277_vm0, %v4546_v38  ;;  %4390 = vmatmul.msk.bf16.vlgmr.msra.gmra.mxu3 %vm277_vm0, %v4546_v38 }
 0x34d   : > { %4367 = vmatmul.msk.bf16.gmra.mxu2 %vm277_vm0, %v4547_v31  ;;  %4391 = vmatmul.msk.bf16.gmra.mxu3 %vm277_vm0, %v4547_v31 }
 0x35d   : > { %4368 = vmatmul.msk.bf16.gmra.mxu2 %vm277_vm0, %v4548_v32  ;;  %4392 = vmatmul.msk.bf16.gmra.mxu3 %vm277_vm0, %v4548_v32 }
 0x36d   : > { %4369 = vmatmul.msk.bf16.gmra.mxu2 %vm277_vm0, %v4549_v39  ;;  %4393 = vmatmul.msk.bf16.gmra.mxu3 %vm277_vm0, %v4549_v39 }
 0x37d   : > { %4370 = vmatmul.msk.bf16.gmra.mxu2 %vm277_vm0, %v4550_v9  ;;  %4394 = vmatmul.msk.bf16.gmra.mxu3 %vm277_vm0, %v4550_v9  ;;  %v4560_v9 = vld [vmem:[%s8064_s4 + $0x70] sm:$0xff] }
 0x38d   : > { %4371 = vmatmul.msk.bf16.gmra.mxu2 %vm277_vm0, %v4551_v10  ;;  %4395 = vmatmul.msk.bf16.gmra.mxu3 %vm277_vm0, %v4551_v10 }
 0x39d   : > { %4372 = vmatmul.msk.bf16.gmra.mxu2 %vm277_vm0, %v4552_v11  ;;  %4396 = vmatmul.msk.bf16.gmra.mxu3 %vm277_vm0, %v4552_v11 }
 0x3ad   : > { %4373 = vmatmul.msk.bf16.gmra.mxu2 %vm277_vm0, %v4553_v12  ;;  %4397 = vmatmul.msk.bf16.gmra.mxu3 %vm277_vm0, %v4553_v12 }
 0x3bd   : > { %4374 = vmatmul.msk.bf16.gmra.mxu2 %vm277_vm0, %v4554_v13  ;;  %4398 = vmatmul.msk.bf16.gmra.mxu3 %vm277_vm0, %v4554_v13 }
 0x3c0   : > { %v765_v14 = vpop.f32.mrf.mxu2  ;;  %v894_v15 = vpop.f32.mrf.mxu3 }
 0x3c1   : > { %v1014_v29 = vpack.c.bf16 %v894_v15, %v765_v14 }
 0x3c3   : > { %v1110_v44 = vunpack.c.l.b16 %v1014_v29  ;;  %v1111_v45 = vunpack.c.h.b16 %v1014_v29 }
 0x3c8   : > { %v767_v16 = vpop.f32.mrf.mxu2  ;;  %v896_v17 = vpop.f32.mrf.mxu3 }
 0x3c9   : > { %v1015_v24 = vpack.c.bf16 %v896_v17, %v767_v16 }
 0x3cb   : > { %v1112_v42 = vunpack.c.l.b16 %v1015_v24  ;;  %v1113_v43 = vunpack.c.h.b16 %v1015_v24 }
 0x3cd   : > { %4375 = vmatmul.msk.bf16.gmra.mxu2 %vm277_vm0, %v4555_v18  ;;  %4399 = vmatmul.msk.bf16.gmra.mxu3 %vm277_vm0, %v4555_v18  ;;  %v1118_v49 = vpack.c.b16 %v1112_v42, %v1110_v44  ;;  %v1119_v50 = vpack.c.b16 %v1113_v43, %v1111_v45 }
 0x3d0   : > { %v770_v19 = vpop.f32.mrf.mxu2  ;;  %v899_v20 = vpop.f32.mrf.mxu3 }
 0x3d1   : > { %v1016_v21 = vpack.c.bf16 %v899_v20, %v770_v19  ;;  %v4561_v20 = vld [vmem:[%s8064_s4 + $0x78] sm:$0xff] }
 0x3d3   : > { %v1114_v30 = vunpack.c.l.b16 %v1016_v21  ;;  %v1115_v33 = vunpack.c.h.b16 %v1016_v21 }
 0x3d8   : > { %v772_v22 = vpop.f32.mrf.mxu2  ;;  %v901_v23 = vpop.f32.mrf.mxu3 }
 0x3d9   : > { %v1017_v25 = vpack.c.bf16 %v901_v23, %v772_v22 }
 0x3db   : > { %v1116_v34 = vunpack.c.l.b16 %v1017_v25  ;;  %v1117_v35 = vunpack.c.h.b16 %v1017_v25 }
 0x3dd   : > { %4376 = vmatmul.msk.bf16.gmra.mxu2 %vm277_vm0, %v4556_v26  ;;  %4400 = vmatmul.msk.bf16.gmra.mxu3 %vm277_vm0, %v4556_v26  ;;  %v1120_v36 = vpack.c.b16 %v1116_v34, %v1114_v30  ;;  %v1121_v37 = vpack.c.b16 %v1117_v35, %v1115_v33 }
 0x3df   : > { %1180 = vmatpush.bf16.msrb.mxu0 %v1120_v36  ;;  %4570 = vmatpush.bf16.msrb.mxu2 %v1120_v36 }
 0x3e0   : > { %1269 = vmatpush.bf16.msrb.mxu1 %v1121_v37  ;;  %4572 = vmatpush.bf16.msrb.mxu3 %v1121_v37  ;;  %v775_v46 = vpop.f32.mrf.mxu2  ;;  %v904_v47 = vpop.f32.mrf.mxu3 }
 0x3e1   : > { %v5321_v48 = vpack.c.bf16 %v904_v47, %v775_v46 }
 0x3e3   : > { %8172 = vst [vmem:[#allocation2_spill] sm:$0xff] %v5321_v48  ;;  %1181 = vmatpush.bf16.msrb.mxu0 %v1118_v49  ;;  %4571 = vmatpush.bf16.msrb.mxu2 %v1118_v49 }
 0x3e4   : > { %1270 = vmatpush.bf16.msrb.mxu1 %v1119_v50  ;;  %4573 = vmatpush.bf16.msrb.mxu3 %v1119_v50 }
 0x3e8   : > { %v5323_v51 = vpop.f32.mrf.mxu2  ;;  %v5325_v52 = vpop.f32.mrf.mxu3 }
 0x3e9   : > { %8173 = vst [vmem:[#allocation3_spill] sm:$0xff] %v5323_v51 }
 0x3ea   : > { %8174 = vst [vmem:[#allocation4_spill] sm:$0xff] %v5325_v52 }
 0x3ed   : > { %4377 = vmatmul.msk.bf16.gmra.mxu2 %vm277_vm0, %v4557_v53  ;;  %4401 = vmatmul.msk.bf16.gmra.mxu3 %vm277_vm0, %v4557_v53 }
 0x3f0   : > { %v780_v54 = vpop.f32.mrf.mxu2  ;;  %v909_v55 = vpop.f32.mrf.mxu3 }
 0x3f1   : > { %v5332_v56 = vpack.c.bf16 %v909_v55, %v780_v54 }
 0x3f3   : > { %8175 = vst [vmem:[#allocation5_spill] sm:$0xff] %v5332_v56 }
 0x3f8   : > { %v5334_v57 = vpop.f32.mrf.mxu2  ;;  %v5336_v58 = vpop.f32.mrf.mxu3 }
 0x3f9   : > { %8176 = vst [vmem:[#allocation6_spill] sm:$0xff] %v5334_v57 }
 0x3fa   : > { %8177 = vst [vmem:[#allocation7_spill] sm:$0xff] %v5336_v58 }
 0x3fd   : > { %4378 = vmatmul.msk.bf16.gmra.mxu2 %vm277_vm0, %v4558_v59  ;;  %4402 = vmatmul.msk.bf16.gmra.mxu3 %vm277_vm0, %v4558_v59 }
 0x400   : > { %v785_v60 = vpop.f32.mrf.mxu2  ;;  %v914_v61 = vpop.f32.mrf.mxu3 }
 0x401   : > { %v5343_v62 = vpack.c.bf16 %v914_v61, %v785_v60 }
 0x403   : > { %8178 = vst [vmem:[#allocation8_spill] sm:$0xff] %v5343_v62 }
 0x408   : > { %v5345_v63 = vpop.f32.mrf.mxu2  ;;  %v5347_v0 = vpop.f32.mrf.mxu3 }
 0x409   : > { %8179 = vst [vmem:[#allocation9_spill] sm:$0xff] %v5345_v63 }
 0x40a   : > { %8180 = vst [vmem:[#allocation10_spill] sm:$0xff] %v5347_v0 }
 0x40d   : > { %4379 = vmatmul.msk.bf16.gmra.mxu2 %vm277_vm0, %v4559_v1  ;;  %4403 = vmatmul.msk.bf16.gmra.mxu3 %vm277_vm0, %v4559_v1 }
 0x410   : > { %v790_v2 = vpop.f32.mrf.mxu2  ;;  %v919_v3 = vpop.f32.mrf.mxu3 }
 0x411   : > { %v5354_v40 = vpack.c.bf16 %v919_v3, %v790_v2 }
 0x413   : > { %8181 = vst [vmem:[#allocation11_spill] sm:$0xff] %v5354_v40 }
 0x418   : > { %v5356_v41 = vpop.f32.mrf.mxu2  ;;  %v5358_v27 = vpop.f32.mrf.mxu3 }
 0x419   : > { %8182 = vst [vmem:[#allocation12_spill] sm:$0xff] %v5356_v41 }
 0x41a   : > { %8183 = vst [vmem:[#allocation13_spill] sm:$0xff] %v5358_v27 }
 0x41d   : > { %4380 = vmatmul.msk.bf16.gmra.mxu2 %vm277_vm0, %v4560_v9  ;;  %4404 = vmatmul.msk.bf16.gmra.mxu3 %vm277_vm0, %v4560_v9 }
 0x420   : > { %v795_v28 = vpop.f32.mrf.mxu2  ;;  %v924_v4 = vpop.f32.mrf.mxu3 }
 0x421   : > { %v5360_v5 = vpack.c.bf16 %v924_v4, %v795_v28 }
 0x423   : > { %8184 = vst [vmem:[#allocation14_spill] sm:$0xff] %v5360_v5 }
 0x428   : > { %v5362_v6 = vpop.f32.mrf.mxu2  ;;  %v5364_v7 = vpop.f32.mrf.mxu3 }
 0x429   : > { %8185 = vst [vmem:[#allocation15_spill] sm:$0xff] %v5362_v6 }
 0x42a   : > { %8186 = vst [vmem:[#allocation16_spill] sm:$0xff] %v5364_v7 }
 0x42d   : > { %4381 = vmatmul.msk.bf16.gmra.mxu2 %vm277_vm0, %v4561_v20  ;;  %4405 = vmatmul.msk.bf16.gmra.mxu3 %vm277_vm0, %v4561_v20 }
 0x430   : > { %v800_v8 = vpop.f32.mrf.mxu2  ;;  %v929_v38 = vpop.f32.mrf.mxu3 }
 0x431   : > { %v5366_v31 = vpack.c.bf16 %v929_v38, %v800_v8 }
 0x433   : > { %8187 = vst [vmem:[#allocation17_spill] sm:$0xff] %v5366_v31 }
 0x438   : > { %v5368_v32 = vpop.f32.mrf.mxu2  ;;  %v5370_v39 = vpop.f32.mrf.mxu3 }
 0x439   : > { %8188 = vst [vmem:[#allocation18_spill] sm:$0xff] %v5368_v32 }
 0x43a   : > { %8189 = vst [vmem:[#allocation19_spill] sm:$0xff] %v5370_v39 }
 0x440   : > { %v805_v10 = vpop.f32.mrf.mxu2  ;;  %v934_v11 = vpop.f32.mrf.mxu3 }
 0x441   : > { %v1030_v12 = vpack.c.bf16 %v934_v11, %v805_v10 }
 0x443   : > { %v1066_v16 = vunpack.c.l.b16 %v1030_v12  ;;  %v1067_v17 = vunpack.c.h.b16 %v1030_v12 }
 0x448   : > { %v807_v13 = vpop.f32.mrf.mxu2  ;;  %v936_v14 = vpop.f32.mrf.mxu3 }
 0x449   : > { %v1031_v15 = vpack.c.bf16 %v936_v14, %v807_v13  ;;  %v4562_v13 = vld [vmem:[%s8064_s4 + $0x80] sm:$0xff] }
 0x44a   : > { %4382 = vmatmul.msk.bf16.gmra.mxu2 %vm277_vm0, %v4562_v13  ;;  %4406 = vmatmul.msk.bf16.gmra.mxu3 %vm277_vm0, %v4562_v13 }
 0x44b   : > { %v1068_v18 = vunpack.c.l.b16 %v1031_v15  ;;  %v1069_v19 = vunpack.c.h.b16 %v1031_v15 }
 0x44d   : > { %v1074_v21 = vpack.c.b16 %v1068_v18, %v1066_v16  ;;  %v1075_v22 = vpack.c.b16 %v1069_v19, %v1067_v17 }
 0x44f   : > { %1082 = vxpose.binary.xlu1.c.b16.start [1/4] (short) %v1075_v22, %v1074_v21, 128 }
 0x450   : > { %v810_v23 = vpop.f32.mrf.mxu2  ;;  %v939_v24 = vpop.f32.mrf.mxu3 }
 0x451   : > { %v1032_v25 = vpack.c.bf16 %v939_v24, %v810_v23 }
 0x453   : > { %v1070_v33 = vunpack.c.l.b16 %v1032_v25  ;;  %v1071_v34 = vunpack.c.h.b16 %v1032_v25 }
 0x458   : > { %v812_v26 = vpop.f32.mrf.mxu2  ;;  %v941_v29 = vpop.f32.mrf.mxu3 }
 0x459   : > { %v1033_v30 = vpack.c.bf16 %v941_v29, %v812_v26  ;;  %v4563_v26 = vld [vmem:[%s8064_s4 + $0x88] sm:$0xff] }
 0x45a   : > { %4383 = vmatmul.msk.bf16.gmra.mxu2 %vm277_vm0, %v4563_v26  ;;  %4407 = vmatmul.msk.bf16.gmra.mxu3 %vm277_vm0, %v4563_v26 }
 0x45b   : > { %v1072_v35 = vunpack.c.l.b16 %v1033_v30  ;;  %v1073_v36 = vunpack.c.h.b16 %v1033_v30 }
 0x45d   : > { %v1076_v37 = vpack.c.b16 %v1072_v35, %v1070_v33  ;;  %v1077_v42 = vpack.c.b16 %v1073_v36, %v1071_v34 }
 0x45f   : > { %1083 = vxpose.binary.xlu1.c.b16.end [2/4] (short) %v1077_v42, %v1076_v37, 128 }
 0x460   : > { %v815_v43 = vpop.f32.mrf.mxu2  ;;  %v944_v44 = vpop.f32.mrf.mxu3 }
 0x461   : > { %v1034_v45 = vpack.c.bf16 %v944_v44, %v815_v43 }
 0x463   : > { %v1834_v49 = vunpack.c.l.b16 %v1034_v45  ;;  %v1835_v50 = vunpack.c.h.b16 %v1034_v45 }
 0x468   : > { %v817_v46 = vpop.f32.mrf.mxu2  ;;  %v946_v47 = vpop.f32.mrf.mxu3 }
 0x469   : > { %v1035_v53 = vpack.c.bf16 %v946_v47, %v817_v46  ;;  %v4564_v47 = vld [vmem:[%s8064_s4 + $0x90] sm:$0xff] }
 0x46a   : > { %4384 = vmatmul.msk.bf16.gmra.mxu2 %vm277_vm0, %v4564_v47  ;;  %4408 = vmatmul.msk.bf16.gmra.mxu3 %vm277_vm0, %v4564_v47 }
 0x46b   : > { %v1836_v54 = vunpack.c.l.b16 %v1035_v53  ;;  %v1837_v55 = vunpack.c.h.b16 %v1035_v53 }
 0x46d   : > { %v1842_v59 = vpack.c.b16 %v1836_v54, %v1834_v49  ;;  %v1843_v60 = vpack.c.b16 %v1837_v55, %v1835_v50  ;;  %v4565_v49 = vld [vmem:[%s8064_s4 + $0x98] sm:$0xff]  ;;  %v4566_v50 = vld [vmem:[%s8064_s4 + $0xa0] sm:$0xff] }
 0x46f   : > { %1850 = vxpose.binary.xlu0.c.b16.start [1/4] (short) %v1843_v60, %v1842_v59, 128 }
 0x470   : > { %v820_v61 = vpop.f32.mrf.mxu2  ;;  %v949_v1 = vpop.f32.mrf.mxu3 }
 0x471   : > { %v1036_v2 = vpack.c.bf16 %v949_v1, %v820_v61  ;;  %v4567_v1 = vld [vmem:[%s8064_s4 + $0xa8] sm:$0xff] }
 0x473   : > { %v1838_v4 = vunpack.c.l.b16 %v1036_v2  ;;  %v1839_v8 = vunpack.c.h.b16 %v1036_v2 }
 0x478   : > { %v822_v3 = vpop.f32.mrf.mxu2  ;;  %v951_v28 = vpop.f32.mrf.mxu3 }
 0x479   : > { %v1037_v38 = vpack.c.bf16 %v951_v28, %v822_v3 }
 0x47a   : > { %4385 = vmatmul.msk.bf16.gmra.mxu2 %vm277_vm0, %v4565_v49  ;;  %4409 = vmatmul.msk.bf16.gmra.mxu3 %vm277_vm0, %v4565_v49 }
 0x47b   : > { %v1840_v9 = vunpack.c.l.b16 %v1037_v38  ;;  %v1841_v10 = vunpack.c.h.b16 %v1037_v38 }
 0x47d   : > { %v1844_v11 = vpack.c.b16 %v1840_v9, %v1838_v4  ;;  %v1845_v12 = vpack.c.b16 %v1841_v10, %v1839_v8 }
 0x47f   : > { %1851 = vxpose.binary.xlu0.c.b16.end [2/4] (short) %v1845_v12, %v1844_v11, 128 }
 0x480   : > { %v825_v14 = vpop.f32.mrf.mxu2  ;;  %v954_v15 = vpop.f32.mrf.mxu3 }
 0x481   : > { %v1038_v16 = vpack.c.bf16 %v954_v15, %v825_v14  ;;  %v4568_v15 = vld [vmem:[%s8064_s4 + $0xb0] sm:$0xff] }
 0x483   : > { %v2610_v19 = vunpack.c.l.b16 %v1038_v16  ;;  %v2611_v20 = vunpack.c.h.b16 %v1038_v16 }
 0x488   : > { %v827_v17 = vpop.f32.mrf.mxu2  ;;  %v956_v18 = vpop.f32.mrf.mxu3 }
 0x489   : > { %v1039_v21 = vpack.c.bf16 %v956_v18, %v827_v17 }
 0x48a   : > { %4386 = vmatmul.msk.bf16.gmra.mxu2 %vm277_vm0, %v4566_v50  ;;  %4410 = vmatmul.msk.bf16.gmra.mxu3 %vm277_vm0, %v4566_v50 }
 0x48b   : > { %v2612_v22 = vunpack.c.l.b16 %v1039_v21  ;;  %v2613_v23 = vunpack.c.h.b16 %v1039_v21 }
 0x48d   : > { %v2618_v24 = vpack.c.b16 %v2612_v22, %v2610_v19  ;;  %v2619_v25 = vpack.c.b16 %v2613_v23, %v2611_v20 }
 0x48f   : > { %2626 = vxpose.binary.xlu2.c.b16.start [1/4] (short) %v2619_v25, %v2618_v24, 128  ;;  %v4569_v24 = vld [vmem:[%s8064_s4 + $0xb8] sm:$0xff] }
 0x490   : > { %v830_v29 = vpop.f32.mrf.mxu2  ;;  %v959_v30 = vpop.f32.mrf.mxu3 }
 0x491   : > { %v1040_v33 = vpack.c.bf16 %v959_v30, %v830_v29 }
 0x493   : > { %v2614_v36 = vunpack.c.l.b16 %v1040_v33  ;;  %v2615_v37 = vunpack.c.h.b16 %v1040_v33 }
 0x498   : > { %v832_v34 = vpop.f32.mrf.mxu2  ;;  %v961_v35 = vpop.f32.mrf.mxu3 }
 0x499   : > { %v1041_v42 = vpack.c.bf16 %v961_v35, %v832_v34  ;;  %v4159_v34 = vld [vmem:[%s8065_s5 + $0x8] sm:$0xff] }
 0x49a   : > { %4387 = vmatmul.msk.bf16.gmra.mxu2 %vm277_vm0, %v4567_v1  ;;  %4411 = vmatmul.msk.bf16.gmra.mxu3 %vm277_vm0, %v4567_v1 }
 0x49b   : > { %v2616_v43 = vunpack.c.l.b16 %v1041_v42  ;;  %v2617_v44 = vunpack.c.h.b16 %v1041_v42  ;;  %v4161_v42 = vld [vmem:[%s8065_s5 + $0x18] sm:$0xff] }
 0x49d   : > { %v2620_v45 = vpack.c.b16 %v2616_v43, %v2614_v36  ;;  %v2621_v46 = vpack.c.b16 %v2617_v44, %v2615_v37 }
 0x49f   : > { %2627 = vxpose.binary.xlu2.c.b16.end [2/4] (short) %v2621_v46, %v2620_v45, 128 }
 0x4a0   : > { %v835_v53 = vpop.f32.mrf.mxu2  ;;  %v964_v54 = vpop.f32.mrf.mxu3 }
 0x4a1   : > { %v1042_v60 = vpack.c.bf16 %v964_v54, %v835_v53 }
 0x4a3   : > { %v3386_v28 = vunpack.c.l.b16 %v1042_v60  ;;  %v3387_v4 = vunpack.c.h.b16 %v1042_v60 }
 0x4a8   : > { %v837_v55 = vpop.f32.mrf.mxu2  ;;  %v966_v59 = vpop.f32.mrf.mxu3 }
 0x4a9   : > { %v1043_v61 = vpack.c.bf16 %v966_v59, %v837_v55 }
 0x4aa   : > { %4388 = vmatmul.msk.bf16.gmra.mxu2 %vm277_vm0, %v4568_v15  ;;  %4412 = vmatmul.msk.bf16.gmra.mxu3 %vm277_vm0, %v4568_v15 }
 0x4ab   : > { %v3388_v8 = vunpack.c.l.b16 %v1043_v61  ;;  %v3389_v38 = vunpack.c.h.b16 %v1043_v61 }
 0x4ad   : > { %v3394_v9 = vpack.c.b16 %v3388_v8, %v3386_v28  ;;  %v3395_v10 = vpack.c.b16 %v3389_v38, %v3387_v4 }
 0x4b0   : > { %v840_v2 = vpop.f32.mrf.mxu2  ;;  %v969_v3 = vpop.f32.mrf.mxu3 }
 0x4b1   : > { %v1044_v13 = vpack.c.bf16 %v969_v3, %v840_v2 }
 0x4b3   : > { %v3390_v16 = vunpack.c.l.b16 %v1044_v13  ;;  %v3391_v17 = vunpack.c.h.b16 %v1044_v13 }
 0x4b8   : > { %v842_v11 = vpop.f32.mrf.mxu2  ;;  %v971_v12 = vpop.f32.mrf.mxu3 }
 0x4b9   : > { %v1045_v14 = vpack.c.bf16 %v971_v12, %v842_v11 }
 0x4ba   : > { %4389 = vmatmul.msk.bf16.gmra.mxu2 %vm277_vm0, %v4569_v24  ;;  %4413 = vmatmul.msk.bf16.gmra.mxu3 %vm277_vm0, %v4569_v24 }
 0x4bb   : > { %v3392_v18 = vunpack.c.l.b16 %v1045_v14  ;;  %v3393_v19 = vunpack.c.h.b16 %v1045_v14 }
 0x4bd   : > { %v3396_v20 = vpack.c.b16 %v3392_v18, %v3390_v16  ;;  %v3397_v21 = vpack.c.b16 %v3393_v19, %v3391_v17  ;;  %v4158_v18 = vld [vmem:[%s8065_s5] sm:$0xff] }
 0x4cd   : > { %v845_v29 = vpop.f32.mrf.mxu2  ;;  %v974_v30 = vpop.f32.mrf.mxu3 }
 0x4ce   : > { %v5430_v33 = vpack.c.bf16 %v974_v30, %v845_v29 }
 0x4d0   : > { %8190 = vst [vmem:[#allocation20_spill] sm:$0xff] %v5430_v33 }
 0x4d5   : > { %v5437_v36 = vpop.f32.mrf.mxu3  ;;  %v5439_v37 = vpop.f32.mrf.mxu2 }
 0x4d6   : > { %8191 = vst [vmem:[#allocation21_spill] sm:$0xff] %v5437_v36 }
 0x4d7   : > { %8192 = vst [vmem:[#allocation22_spill] sm:$0xff] %v5439_v37 }
 0x4dd   : > { %v979_v44 = vpop.f32.mrf.mxu3  ;;  %v850_v45 = vpop.f32.mrf.mxu2 }
 0x4de   : > { %v5446_v46 = vpack.c.bf16 %v979_v44, %v850_v45 }
 0x4e0   : > { %8193 = vst [vmem:[#allocation23_spill] sm:$0xff] %v5446_v46 }
 0x4e5   : > { %v5450_v49 = vpop.f32.mrf.mxu3  ;;  %v5452_v50 = vpop.f32.mrf.mxu2 }
 0x4e6   : > { %8194 = vst [vmem:[#allocation24_spill] sm:$0xff] %v5450_v49 }
 0x4e7   : > { %8195 = vst [vmem:[#allocation25_spill] sm:$0xff] %v5452_v50 }
 0x4ed   : > { %v984_v54 = vpop.f32.mrf.mxu3  ;;  %v855_v55 = vpop.f32.mrf.mxu2 }
 0x4ee   : > { %v5456_v59 = vpack.c.bf16 %v984_v54, %v855_v55 }
 0x4ef   : > { %3402 = vxpose.binary.xlu0.c.b16.start [1/4] (short) %v3395_v10, %v3394_v9, 128 }
 0x4f0   : > { %8196 = vst [vmem:[#allocation26_spill] sm:$0xff] %v5456_v59 }
 0x4f5   : > { %v5460_v61 = vpop.f32.mrf.mxu3  ;;  %v5462_v1 = vpop.f32.mrf.mxu2 }
 0x4f6   : > { %8197 = vst [vmem:[#allocation27_spill] sm:$0xff] %v5460_v61 }
 0x4f7   : > { %8198 = vst [vmem:[#allocation28_spill] sm:$0xff] %v5462_v1 }
 0x4fb   : > { %v1090_v22 = vpop.trf.xlu1 }
 0x4fc   : > { %4414 = vmatmul.msk.bf16.vlgmr.msrb.gmra.mxu0 %vm277_vm0, %v1090_v22  ;;  %4430 = vmatmul.msk.bf16.vlgmr.msrb.gmra.mxu1 %vm277_vm0, %v1090_v22 }
 0x4fd   : > { %v989_v3 = vpop.f32.mrf.mxu3  ;;  %v860_v28 = vpop.f32.mrf.mxu2 }
 0x4fe   : > { %v5466_v4 = vpack.c.bf16 %v989_v3, %v860_v28 }
 0x4ff   : > { %3403 = vxpose.binary.xlu0.c.b16.end [2/4] (short) %v3397_v21, %v3396_v20, 128 }
 0x500   : > { %8199 = vst [vmem:[#allocation29_spill] sm:$0xff] %v5466_v4 }
 0x503   : > { %v5419_v23 = vpop.trf.xlu1 }
 0x505   : > { %v5470_v38 = vpop.f32.mrf.mxu3  ;;  %v5472_v9 = vpop.f32.mrf.mxu2 }
 0x506   : > { %8200 = vst [vmem:[#allocation30_spill] sm:$0xff] %v5470_v38 }
 0x507   : > { %8201 = vst [vmem:[#allocation31_spill] sm:$0xff] %v5472_v9 }
 0x50b   : > { %v1092_v25 = vpop.trf.xlu1 }
 0x50c   : > { %4415 = vmatmul.msk.bf16.gmra.mxu0 %vm277_vm0, %v1092_v25  ;;  %4431 = vmatmul.msk.bf16.gmra.mxu1 %vm277_vm0, %v1092_v25 }
 0x50d   : > { %v994_v11 = vpop.f32.mrf.mxu3  ;;  %v865_v12 = vpop.f32.mrf.mxu2 }
 0x50e   : > { %v5476_v13 = vpack.c.bf16 %v994_v11, %v865_v12 }
 0x510   : > { %8202 = vst [vmem:[#allocation32_spill] sm:$0xff] %v5476_v13 }
 0x513   : > { %v5428_v26 = vpop.trf.xlu1 }
 0x515   : > { %v5480_v15 = vpop.f32.mrf.mxu3  ;;  %v5482_v16 = vpop.f32.mrf.mxu2 }
 0x516   : > { %8203 = vst [vmem:[#allocation33_spill] sm:$0xff] %v5480_v15 }
 0x517   : > { %8204 = vst [vmem:[#allocation34_spill] sm:$0xff] %v5482_v16 }
 0x519   : > { %4169 = vperm.xlu1 %4585, %v4159_v34  }
 0x51b   : > { %v1094_v35 = vpop.trf.xlu1 }
 0x51c   : > { %4416 = vmatmul.msk.bf16.gmra.mxu0 %vm277_vm0, %v1094_v35  ;;  %4432 = vmatmul.msk.bf16.gmra.mxu1 %vm277_vm0, %v1094_v35 }
 0x51d   : > { %v999_v19 = vpop.f32.mrf.mxu3  ;;  %v870_v20 = vpop.f32.mrf.mxu2 }
 0x51e   : > { %v5489_v21 = vpack.c.bf16 %v999_v19, %v870_v20 }
 0x520   : > { %8205 = vst [vmem:[#allocation35_spill] sm:$0xff] %v5489_v21 }
 0x521   : > { %4179 = vperm.xlu1 %4585, %v4161_v42  }
 0x523   : > { %v5444_v43 = vpop.trf.xlu1 }
 0x525   : > { %v5493_v24 = vpop.f32.mrf.mxu3  ;;  %v5495_v25 = vpop.f32.mrf.mxu2 }
 0x526   : > { %8206 = vst [vmem:[#allocation36_spill] sm:$0xff] %v5493_v24 }
 0x527   : > { %8207 = vst [vmem:[#allocation37_spill] sm:$0xff] %v5495_v25 }
 0x52b   : > { %v1096_v47 = vpop.trf.xlu1 }
 0x52c   : > { %4417 = vmatmul.msk.bf16.gmra.mxu0 %vm277_vm0, %v1096_v47  ;;  %4433 = vmatmul.msk.bf16.gmra.mxu1 %vm277_vm0, %v1096_v47 }
 0x52d   : > { %v1004_v30 = vpop.f32.mrf.mxu3  ;;  %v875_v42 = vpop.f32.mrf.mxu2 }
 0x52e   : > { %v5503_v44 = vpack.c.bf16 %v1004_v30, %v875_v42 }
 0x530   : > { %8208 = vst [vmem:[#allocation38_spill] sm:$0xff] %v5503_v44 }
 0x533   : > { %v1097_v53 = vpop.trf.xlu1 }
 0x534   : > { %4425 = vmatmul.msk.bf16.vlgmr.msrb.gmra.mxu2 %vm277_vm0, %v1097_v53  ;;  %4441 = vmatmul.msk.bf16.vlgmr.msrb.gmra.mxu3 %vm277_vm0, %v1097_v53 }
 0x535   : > { %v5509_v45 = vpop.f32.mrf.mxu3  ;;  %v5515_v54 = vpop.f32.mrf.mxu2 }
 0x536   : > { %8209 = vst [vmem:[#allocation39_spill] sm:$0xff] %v5509_v45 }
 0x537   : > { %8211 = vst [vmem:[#allocation41_spill] sm:$0xff] %v5515_v54 }
 0x53b   : > { %v1098_v60 = vpop.trf.xlu1 }
 0x53c   : > { %4418 = vmatmul.msk.bf16.gmra.mxu0 %vm277_vm0, %v1098_v60  ;;  %4434 = vmatmul.msk.bf16.gmra.mxu1 %vm277_vm0, %v1098_v60 }
 0x53d   : > { %v880_v3 = vpop.f32.mrf.mxu2 }
 0x543   : > { %v1099_v2 = vpop.trf.xlu1 }
 0x544   : > { %4426 = vmatmul.msk.bf16.gmra.mxu2 %vm277_vm0, %v1099_v2  ;;  %4442 = vmatmul.msk.bf16.gmra.mxu3 %vm277_vm0, %v1099_v2  ;;  %v1009_v2 = vpop.f32.mrf.mxu3 }
 0x545   : > { %v5521_v28 = vpack.c.bf16 %v1009_v2, %v880_v3  ;;  %v4160_v3 = vld [vmem:[%s8065_s5 + $0x10] sm:$0xff] }
 0x547   : > { %8213 = vst [vmem:[#allocation43_spill] sm:$0xff] %v5521_v28 }
 0x54b   : > { %v1100_v8 = vpop.trf.xlu1 }
 0x54c   : > { %4419 = vmatmul.msk.bf16.gmra.mxu0 %vm277_vm0, %v1100_v8  ;;  %4435 = vmatmul.msk.bf16.gmra.mxu1 %vm277_vm0, %v1100_v8 }
 0x553   : > { %v1101_v10 = vpop.trf.xlu1 }
 0x554   : > { %4427 = vmatmul.msk.bf16.gmra.mxu2 %vm277_vm0, %v1101_v10  ;;  %4443 = vmatmul.msk.bf16.gmra.mxu3 %vm277_vm0, %v1101_v10 }
 0x55b   : > { %v1102_v14 = vpop.trf.xlu1 }
 0x55c   : > { %4420 = vmatmul.msk.bf16.gmra.mxu0 %vm277_vm0, %v1102_v14  ;;  %4436 = vmatmul.msk.bf16.gmra.mxu1 %vm277_vm0, %v1102_v14 }
 0x563   : > { %v1103_v17 = vpop.trf.xlu1 }
 0x564   : > { %4428 = vmatmul.msk.bf16.gmra.mxu2 %vm277_vm0, %v1103_v17  ;;  %4444 = vmatmul.msk.bf16.gmra.mxu3 %vm277_vm0, %v1103_v17 }
 0x568   : > { %4164 = vperm.xlu2 %4583, %v4158_v18  }
 0x56b   : > { %v1104_v22 = vpop.trf.xlu1 }
 0x56c   : > { %4421 = vmatmul.msk.bf16.gmra.mxu0 %vm277_vm0, %v1104_v22  ;;  %4437 = vmatmul.msk.bf16.gmra.mxu1 %vm277_vm0, %v1104_v22 }
 0x573   : > { %v1105_v29 = vpop.trf.xlu1 }
 0x574   : > { %4429 = vmatmul.msk.bf16.gmra.mxu2 %vm277_vm0, %v1105_v29  ;;  %4445 = vmatmul.msk.bf16.gmra.mxu3 %vm277_vm0, %v1105_v29 }
 0x579   : > { %v5499_v34 = vpop.f32.mrf.mxu0  ;;  %v5501_v35 = vpop.f32.mrf.mxu1 }
 0x57c   : > { %4422 = vmatmul.msk.bf16.gmra.mxu0 %vm277_vm0, %v5419_v23  ;;  %4438 = vmatmul.msk.bf16.gmra.mxu1 %vm277_vm0, %v5419_v23 }
 0x581   : > { %v5511_v47 = vpop.f32.mrf.mxu0  ;;  %v5513_v53 = vpop.f32.mrf.mxu1 }
 0x582   : > { %8210 = vst [vmem:[#allocation40_spill] sm:$0xff] %v5513_v53 }
 0x589   : > { %v5517_v55 = vpop.f32.mrf.mxu0  ;;  %v5519_v60 = vpop.f32.mrf.mxu1 }
 0x58a   : > { %8212 = vst [vmem:[#allocation42_spill] sm:$0xff] %v5519_v60  ;;  %v1352_v4 = vmax.f32 %v5499_v34, %v5517_v55 }
 0x58c   : > { %4423 = vmatmul.msk.bf16.gmra.mxu0 %vm277_vm0, %v5428_v26  ;;  %4439 = vmatmul.msk.bf16.gmra.mxu1 %vm277_vm0, %v5428_v26 }
 0x591   : > { %v5527_v23 = vpop.f32.mrf.mxu0  ;;  %v5529_v8 = vpop.f32.mrf.mxu1 }
 0x592   : > { %8214 = vst [vmem:[#allocation44_spill] sm:$0xff] %v5529_v8  ;;  %v1353_v52 = vmax.f32 %v5511_v47, %v5527_v23 }
 0x599   : > { %v5531_v10 = vpop.f32.mrf.mxu0  ;;  %v5533_v11 = vpop.f32.mrf.mxu1 }
 0x59a   : > { %v1354_v61 = vmax.f32 %v1352_v4, %v5531_v10 }
 0x59c   : > { %4424 = vmatmul.msk.bf16.gmra.mxu0 %vm277_vm0, %v5444_v43  ;;  %4440 = vmatmul.msk.bf16.gmra.mxu1 %vm277_vm0, %v5444_v43  ;;  %v5559_v43 = vpop.f32.mrf.mxu2 }
 0x59d   : > { %8219 = vst [vmem:[#allocation49_spill] sm:$0xff] %v5559_v43  ;;  %v5578_v43 = vpop.f32.mrf.mxu3 }
 0x59e   : > { %8221 = vst [vmem:[#allocation51_spill] sm:$0xff] %v5578_v43 }
 0x5a1   : > { %v5539_v12 = vpop.f32.mrf.mxu0  ;;  %v5541_v14 = vpop.f32.mrf.mxu1 }
 0x5a2   : > { %8215 = vst [vmem:[#allocation45_spill] sm:$0xff] %v5541_v14  ;;  %v1355_v57 = vmax.f32 %v1353_v52, %v5539_v12 }
 0x5a9   : > { %v5543_v17 = vpop.f32.mrf.mxu0  ;;  %v5545_v26 = vpop.f32.mrf.mxu1 }
 0x5aa   : > { %v1356_v1 = vmax.f32 %v1354_v61, %v5543_v17 }
 0x5b1   : > { %v5547_v18 = vpop.f32.mrf.mxu0  ;;  %v5549_v19 = vpop.f32.mrf.mxu1 }
 0x5b2   : > { %8216 = vst [vmem:[#allocation46_spill] sm:$0xff] %v5549_v19  ;;  %v1357_v61 = vmax.f32 %v1355_v57, %v5547_v18  ;;  %v1389_v57 = vmax.f32 %v5501_v35, %v5519_v60 }
 0x5b7   : > { %v5572_v54 = vpop.f32.mrf.mxu2  ;;  %v5586_v39 = vpop.f32.mrf.mxu3 }
 0x5b9   : > { %v5551_v20 = vpop.f32.mrf.mxu0  ;;  %v5553_v22 = vpop.f32.mrf.mxu1 }
 0x5ba   : > { %8217 = vst [vmem:[#allocation47_spill] sm:$0xff] %v5553_v22  ;;  %v1358_v48 = vmax.f32 %v1356_v1, %v5551_v20 }
 0x5bf   : > { %v5580_v31 = vpop.f32.mrf.mxu2  ;;  %v5594_v24 = vpop.f32.mrf.mxu3 }
 0x5c0   : > { %8222 = vst [vmem:[#allocation52_spill] sm:$0xff] %v5594_v24 }
 0x5c1   : > { %v5555_v29 = vpop.f32.mrf.mxu0  ;;  %v5557_v30 = vpop.f32.mrf.mxu1 }
 0x5c2   : > { %8218 = vst [vmem:[#allocation48_spill] sm:$0xff] %v5557_v30  ;;  %v1359_v1 = vmax.f32 %v1357_v61, %v5555_v29 }
 0x5c7   : > { %v5602_v16 = vpop.f32.mrf.mxu3 }
 0x5c9   : > { %v5561_v42 = vpop.f32.mrf.mxu0  ;;  %v5563_v2 = vpop.f32.mrf.mxu1 }
 0x5ca   : > { %v1360_v51 = vmax.f32 %v1358_v48, %v5561_v42  ;;  %v1390_v48 = vmax.f32 %v5513_v53, %v5529_v8 }
 0x5cd   : > { %4174 = vperm.xlu0 %4584, %v4160_v3   ;;  %v5588_v3 = vpop.f32.mrf.mxu2 }
 0x5cf   : > { %v5614_v27 = vpop.f32.mrf.mxu3 }
 0x5d1   : > { %v5568_v28 = vpop.f32.mrf.mxu0  ;;  %v5570_v45 = vpop.f32.mrf.mxu1 }
 0x5d2   : > { %8220 = vst [vmem:[#allocation50_spill] sm:$0xff] %v5570_v45  ;;  %v1361_v37 = vmax.f32 %v1359_v1, %v5568_v28 }
 0x5d5   : > { %v5596_v25 = vpop.f32.mrf.mxu2 }
 0x5d7   : > { %v5626_v59 = vpop.f32.mrf.mxu3 }
 0x5d9   : > { %v5574_v44 = vpop.f32.mrf.mxu0  ;;  %v5576_v5 = vpop.f32.mrf.mxu1 }
 0x5da   : > { %v1362_v46 = vmax.f32 %v1360_v51, %v5574_v44 }
 0x5dd   : > { %v5608_v40 = vpop.f32.mrf.mxu2 }
 0x5df   : > { %v5643_v50 = vpop.f32.mrf.mxu3 }
 0x5e1   : > { %v5582_v7 = vpop.f32.mrf.mxu0  ;;  %v5584_v6 = vpop.f32.mrf.mxu1 }
 0x5e2   : > { %v1363_v61 = vmax.f32 %v1361_v37, %v5582_v7 }
 0x5e5   : > { %v5616_v41 = vpop.f32.mrf.mxu2 }
 0x5e9   : > { %v5590_v32 = vpop.f32.mrf.mxu0  ;;  %v5592_v21 = vpop.f32.mrf.mxu1 }
 0x5ea   : > { %v1364_v49 = vmax.f32 %v1362_v46, %v5590_v32  ;;  %v1392_v46 = vmax.f32 %v1390_v48, %v5541_v14  ;;  %v5670_v14 = vpop.f32.mrf.mxu3 }
 0x5ec   : > { %v1394_v8 = vmax.f32 %v1392_v46, %v5549_v19 }
 0x5ed   : > { %v5629_v56 = vpop.f32.mrf.mxu2 }
 0x5ee   : > { %v1396_v60 = vmax.f32 %v1394_v8, %v5557_v30 }
 0x5f1   : > { %v5598_v15 = vpop.f32.mrf.mxu0  ;;  %v5600_v43 = vpop.f32.mrf.mxu1 }
 0x5f2   : > { %v1365_v1 = vmax.f32 %v1363_v61, %v5598_v15 }
 0x5f5   : > { %v5650_v51 = vpop.f32.mrf.mxu2 }
 0x5f9   : > { %v5604_v13 = vpop.f32.mrf.mxu0  ;;  %v5606_v62 = vpop.f32.mrf.mxu1 }
 0x5fa   : > { %8223 = vst [vmem:[#allocation53_spill] sm:$0xff] %v5604_v13  ;;  %v1366_v36 = vmax.f32 %v1364_v49, %v5604_v13  ;;  %v1391_v13 = vmax.f32 %v1389_v57, %v5533_v11 }
 0x5fb   : > { %8224 = vst [vmem:[#allocation54_spill] sm:$0xff] %v5606_v62 }
 0x5fd   : > { %v5674_v61 = vpop.f32.mrf.mxu2 }
 0x601   : > { %v5610_v0 = vpop.f32.mrf.mxu0  ;;  %v5612_v63 = vpop.f32.mrf.mxu1 }
 0x602   : > { %8225 = vst [vmem:[#allocation55_spill] sm:$0xff] %v5612_v63  ;;  %v1367_v48 = vmax.f32 %v1365_v1, %v5610_v0 }
 0x609   : > { %v5620_v38 = vpop.f32.mrf.mxu0  ;;  %v5622_v9 = vpop.f32.mrf.mxu1 }
 0x60a   : > { %8226 = vst [vmem:[#allocation56_spill] sm:$0xff] %v5620_v38  ;;  %v1368_v52 = vmax.f32 %v1366_v36, %v5620_v38  ;;  %v1393_v38 = vmax.f32 %v1391_v13, %v5545_v26 }
 0x60b   : > { %8227 = vst [vmem:[#allocation57_spill] sm:$0xff] %v5622_v9 }
 0x60c   : > { %v1395_v37 = vmax.f32 %v1393_v38, %v5553_v22 }
 0x60e   : > { %v1397_v13 = vmax.f32 %v1395_v37, %v5563_v2 }
 0x610   : > { %v1399_v38 = vmax.f32 %v1397_v13, %v5576_v5 }
 0x611   : > { %v5634_v58 = vpop.f32.mrf.mxu0  ;;  %v5638_v4 = vpop.f32.mrf.mxu1 }
 0x612   : > { %8228 = vst [vmem:[#allocation58_spill] sm:$0xff] %v5638_v4  ;;  %v1369_v57 = vmax.f32 %v1367_v48, %v5634_v58 }
 0x619   : > { %v5652_v33 = vpop.f32.mrf.mxu0  ;;  %v5663_v53 = vpop.f32.mrf.mxu1 }
 0x61a   : > { %v1370_v49 = vmax.f32 %v1368_v52, %v5652_v33  ;;  %v1398_v52 = vmax.f32 %v1396_v60, %v5570_v45 }
 0x61c   : > { %v1372_v36 = vmax.f32 %v1370_v49, %v5572_v54  ;;  %v1400_v8 = vmax.f32 %v1398_v52, %v5584_v6 }
 0x61e   : > { %v1374_v46 = vmax.f32 %v1372_v36, %v5588_v3  ;;  %v1402_v60 = vmax.f32 %v1400_v8, %v5600_v43  ;;  %v1401_v36 = vmax.f32 %v1399_v38, %v5592_v21  ;;  %v5697_v38 = vpop.f32.mrf.mxu3 }
 0x620   : > { %v1376_v45 = vmax.f32 %v1374_v46, %v5608_v40  ;;  %v1404_v30 = vmax.f32 %v1402_v60, %v5612_v63  ;;  %v1403_v37 = vmax.f32 %v1401_v36, %v5606_v62  ;;  %v5699_v60 = vpop.f32.mrf.mxu2 }
 0x621   : > { %v5676_v49 = vpop.f32.mrf.mxu0  ;;  %v5688_v19 = vpop.f32.mrf.mxu1 }
 0x622   : > { %v1371_v1 = vmax.f32 %v1369_v57, %v5676_v49  ;;  %8229 = vst [vmem:[#allocation59_spill] sm:$0xff] %v5688_v19  ;;  %v1406_v52 = vmax.f32 %v1404_v30, %v5638_v4  ;;  %v1378_v57 = vmax.f32 %v1376_v45, %v5629_v56  ;;  %v1405_v46 = vmax.f32 %v1403_v37, %v5622_v9 }
 0x624   : > { %v1373_v48 = vmax.f32 %v1371_v1, %v5580_v31  ;;  %v1408_v8 = vmax.f32 %v1406_v52, %v5688_v19  ;;  %v1380_v36 = vmax.f32 %v1378_v57, %v5674_v61 }
 0x626   : > { %v1375_v22 = vmax.f32 %v1373_v48, %v5596_v25  ;;  %v1407_v48 = vmax.f32 %v1405_v46, %v5663_v53  ;;  %v1410_v45 = vmax.f32 %v1408_v8, %v5594_v24 }
 0x628   : > { %v1377_v13 = vmax.f32 %v1375_v22, %v5616_v41  ;;  %v1409_v22 = vmax.f32 %v1407_v48, %v5586_v39  ;;  %v1412_v52 = vmax.f32 %v1410_v45, %v5614_v27 }
 0x62a   : > { %v1379_v1 = vmax.f32 %v1377_v13, %v5650_v51  ;;  %v5707_v13 = vpop.f32.mrf.mxu3  ;;  %v1411_v9 = vmax.f32 %v1409_v22, %v5602_v16  ;;  %v1414_v46 = vmax.f32 %v1412_v52, %v5643_v50 }
 0x62c   : > { %v1381_v30 = vmax.f32 %v1379_v1, %v5699_v60  ;;  %v1413_v57 = vmax.f32 %v1411_v9, %v5626_v59  ;;  %v1416_v8 = vmax.f32 %v1414_v46, %v5697_v38 }
 0x62e   : > { %v1382_v4 = vmax.f32 %v1380_v36, %v1381_v30  ;;  %v1415_v36 = vmax.f32 %v1413_v57, %v5670_v14 }
 0x630   : > { %v1383_v37 = vrot.slane %v1382_v4, 4  ;;  %v1417_v45 = vmax.f32 %v1415_v36, %v5707_v13 }
 0x632   : > { %v1384_v19 = vmax.f32 %v1382_v4, %v1383_v37  ;;  %v5716_v30 = vpop.f32.mrf.mxu3 }
 0x633   : > { %v1418_v4 = vmax.f32 %v1416_v8, %v5716_v30 }
 0x634   : > { %v1385_v63 = vrot.slane %v1384_v19, 2 }
 0x635   : > { %v1419_v22 = vmax.f32 %v1417_v45, %v1418_v4 }
 0x636   : > { %v1386_v62 = vmax.f32 %v1384_v19, %v1385_v63 }
 0x638   : > { %v1387_v1 = vrot.slane %v1386_v62, 1 }
 0x63a   : > { %v5714_v48 = vmax.f32 %v1386_v62, %v1387_v1  ;;  %v1420_v1 = vrot.slane %v1419_v22, 4 }
 0x63c   : > { %v1426_v63 = vsub.f32 %v5499_v34, %v5714_v48  ;;  %v1428_v19 = vsub.f32 %v5511_v47, %v5714_v48  ;;  %v1430_v9 = vsub.f32 %v5517_v55, %v5714_v48  ;;  %v1432_v62 = vsub.f32 %v5527_v23, %v5714_v48 }
 0x63d   : > { %v1434_v46 = vsub.f32 %v5531_v10, %v5714_v48  ;;  %v1436_v34 = vsub.f32 %v5539_v12, %v5714_v48  ;;  %v1438_v55 = vsub.f32 %v5543_v17, %v5714_v48  ;;  %v1421_v36 = vmax.f32 %v1419_v22, %v1420_v1 }
 0x63e   : > { %v1490_v37 = vmul.f32 1.442695, %v1426_v63  ;;  %v1494_v52 = vmul.f32 1.442695, %v1428_v19  ;;  %v1498_v57 = vmul.f32 1.442695, %v1430_v9  ;;  %v1440_v23 = vsub.f32 %v5547_v18, %v5714_v48 }
 0x63f   : > { %v1502_v47 = vmul.f32 1.442695, %v1432_v62  ;;  %v1506_v8 = vmul.f32 1.442695, %v1434_v46  ;;  %v1510_v4 = vmul.f32 1.442695, %v1436_v34  ;;  %v1442_v45 = vsub.f32 %v5551_v20, %v5714_v48 }
 0x640   : > { %4594 = vpow2.f32 %v1490_v37  ;;  %v1444_v12 = vsub.f32 %v5555_v29, %v5714_v48  ;;  %v1514_v17 = vmul.f32 1.442695, %v1438_v55  ;;  %v1446_v19 = vsub.f32 %v5561_v42, %v5714_v48 }
 0x641   : > { %4596 = vpow2.f32 %v1494_v52  ;;  %v1422_v9 = vrot.slane %v1421_v36, 2  ;;  %v1448_v62 = vsub.f32 %v5568_v28, %v5714_v48  ;;  %v1518_v20 = vmul.f32 1.442695, %v1440_v23  ;;  %v8231_v23 = vld [vmem:[#allocation53_spill] sm:$0xff] }
 0x642   : > { %4598 = vpow2.f32 %v1498_v57  ;;  %v1450_v37 = vsub.f32 %v5574_v44, %v5714_v48  ;;  %v1522_v29 = vmul.f32 1.442695, %v1442_v45  ;;  %v1452_v42 = vsub.f32 %v5582_v7, %v5714_v48 }
 0x643   : > { %4600 = vpow2.f32 %v1502_v47  ;;  %v1526_v57 = vmul.f32 1.442695, %v1444_v12  ;;  %v1454_v1 = vsub.f32 %v5590_v32, %v5714_v48  ;;  %v1530_v34 = vmul.f32 1.442695, %v1446_v19 }
 0x644   : > { %4602 = vpow2.f32 %v1506_v8  ;;  %v1423_v47 = vmax.f32 %v1421_v36, %v1422_v9  ;;  %v1456_v44 = vsub.f32 %v5598_v15, %v5714_v48  ;;  %v1534_v8 = vmul.f32 1.442695, %v1448_v62  ;;  %v8232_v36 = vld [vmem:[#allocation56_spill] sm:$0xff] }
 0x645   : > { %4604 = vpow2.f32 %v1510_v4  ;;  %v1458_v4 = vsub.f32 %v8231_v23, %v5714_v48  ;;  %v1538_v7 = vmul.f32 1.442695, %v1450_v37  ;;  %v1460_v32 = vsub.f32 %v5610_v0, %v5714_v48 }
 0x646   : > { %v5736_v10 = vpop.eup %4594  ;;  %4606 = vpow2.f32 %v1514_v17  ;;  %v1462_v17 = vsub.f32 %v8232_v36, %v5714_v48  ;;  %v1542_v19 = vmul.f32 1.442695, %v1452_v42  ;;  %v1546_v15 = vmul.f32 1.442695, %v1454_v1 }
 0x647   : > { %v5740_v63 = vpop.eup %4596  ;;  %4608 = vpow2.f32 %v1518_v20  ;;  %v1424_v9 = vrot.slane %v1423_v47, 1  ;;  %v1464_v20 = vsub.f32 %v5634_v58, %v5714_v48  ;;  %v1550_v37 = vmul.f32 1.442695, %v1456_v44 }
 0x648   : > { %8230 = vst [vmem:[#allocation60_spill] sm:$0xff] %v5740_v63  ;;  %v1618_v18 = vadd.f32 %v5740_v63, %v5736_v10  ;;  %v5748_v22 = vpop.eup %4598  ;;  %4610 = vpow2.f32 %v1522_v29  ;;  %v1466_v0 = vsub.f32 %v5652_v33, %v5714_v48  ;;  %v1554_v29 = vmul.f32 1.442695, %v1458_v4 }
 0x649   : > { %v5755_v46 = vpop.eup %4600  ;;  %4612 = vpow2.f32 %v1526_v57  ;;  %v1468_v57 = vsub.f32 %v5676_v49, %v5714_v48  ;;  %v1470_v1 = vsub.f32 %v5572_v54, %v5714_v48  ;;  %v5792_v44 = vmax.f32 %v1423_v47, %v1424_v9  ;;  %v8233_v9 = vld [vmem:[#allocation40_spill] sm:$0xff] }
 0x64a   : > { %v1619_v52 = vadd.f32 %v5748_v22, %v1618_v18  ;;  %v5762_v55 = vpop.eup %4602  ;;  %4614 = vpow2.f32 %v1530_v34  ;;  %v1558_v34 = vmul.f32 1.442695, %v1460_v32  ;;  %v1482_v23 = vsub.f32 %v5629_v56, %v5714_v48 }
 0x64b   : > { %v5769_v12 = vpop.eup %4604  ;;  %4616 = vpow2.f32 %v1534_v8  ;;  %v1566_v49 = vmul.f32 1.442695, %v1464_v20  ;;  %v1486_v54 = vsub.f32 %v5674_v61, %v5714_v48  ;;  %v1488_v47 = vsub.f32 %v5699_v60, %v5714_v48 }
 0x64c   : > { %v1620_v28 = vadd.f32 %v5755_v46, %v1619_v52  ;;  %v5776_v62 = vpop.eup %4606  ;;  %4618 = vpow2.f32 %v1538_v7  ;;  %v1570_v7 = vmul.f32 1.442695, %v1466_v0  ;;  %v1574_v36 = vmul.f32 1.442695, %v1468_v57  ;;  %v8234_v57 = vld [vmem:[#allocation42_spill] sm:$0xff] }
 0x64d   : > { %v5783_v42 = vpop.eup %4608  ;;  %4620 = vpow2.f32 %v1542_v19  ;;  %v1578_v56 = vmul.f32 1.442695, %v1470_v1  ;;  %v1427_v61 = vsub.f32 %v5501_v35, %v5792_v44  ;;  %v1429_v20 = vsub.f32 %v8233_v9, %v5792_v44 }
 0x64e   : > { %v1621_v45 = vadd.f32 %v5762_v55, %v1620_v28  ;;  %v5789_v58 = vpop.eup %4610  ;;  %4622 = vpow2.f32 %v1546_v15  ;;  %v1562_v28 = vmul.f32 1.442695, %v1462_v17  ;;  %v1484_v60 = vsub.f32 %v5650_v51, %v5714_v48 }
 0x64f   : > { %v5794_v8 = vpop.eup %4612  ;;  %4624 = vpow2.f32 %v1550_v37  ;;  %v1610_v0 = vmul.f32 1.442695, %v1486_v54  ;;  %v1614_v35 = vmul.f32 1.442695, %v1488_v47  ;;  %v1431_v1 = vsub.f32 %v8234_v57, %v5792_v44 }
 0x650   : > { %v1622_v18 = vadd.f32 %v5769_v12, %v1621_v45  ;;  %v5798_v4 = vpop.eup %4614  ;;  %4626 = vpow2.f32 %v1554_v29  ;;  %v1492_v51 = vmul.f32 1.442695, %v1427_v61  ;;  %v1480_v47 = vsub.f32 %v5616_v41, %v5714_v48 }
 0x651   : > { %v5803_v32 = vpop.eup %4616  ;;  %4628 = vpow2.f32 %v1558_v34  ;;  %v1500_v61 = vmul.f32 1.442695, %v1431_v1  ;;  %v1474_v9 = vsub.f32 %v5588_v3, %v5714_v48 }
 0x652   : > { %v1623_v52 = vadd.f32 %v5776_v62, %v1622_v18  ;;  %v5807_v17 = vpop.eup %4618  ;;  %4630 = vpow2.f32 %v1562_v28  ;;  %v1602_v18 = vmul.f32 1.442695, %v1482_v23  ;;  %v1478_v28 = vsub.f32 %v5608_v40, %v5714_v48 }
 0x653   : > { %v5812_v15 = vpop.eup %4620  ;;  %4632 = vpow2.f32 %v1566_v49  ;;  %v8235_v49 = vld [vmem:[#allocation44_spill] sm:$0xff]  ;;  %v1598_v1 = vmul.f32 1.442695, %v1480_v47 }
 0x654   : > { %v1624_v33 = vadd.f32 %v5783_v42, %v1623_v52  ;;  %v5816_v37 = vpop.eup %4622  ;;  %4634 = vpow2.f32 %v1570_v7  ;;  %v1433_v54 = vsub.f32 %v8235_v49, %v5792_v44  ;;  %v1496_v7 = vmul.f32 1.442695, %v1429_v20 }
 0x655   : > { %v5821_v52 = vpop.eup %4624  ;;  %4636 = vpow2.f32 %v1574_v36  ;;  %v1606_v36 = vmul.f32 1.442695, %v1484_v60  ;;  %v1594_v20 = vmul.f32 1.442695, %v1478_v28  ;;  %v8236_v60 = vld [vmem:[#allocation45_spill] sm:$0xff]  ;;  %v1439_v49 = vsub.f32 %v5545_v26, %v5792_v44 }
 0x656   : > { %v1625_v45 = vadd.f32 %v5789_v58, %v1624_v33  ;;  %v5825_v34 = vpop.eup %4626  ;;  %4638 = vpow2.f32 %v1578_v56 }
 0x657   : > { %v5830_v23 = vpop.eup %4628  ;;  %4640 = vpow2.f32 %v1602_v18 }
 0x658   : > { %v1626_v19 = vadd.f32 %v5794_v8, %v1625_v45  ;;  %v5834_v45 = vpop.eup %4630  ;;  %4642 = vpow2.f32 %v1610_v0  ;;  %v1437_v0 = vsub.f32 %v8236_v60, %v5792_v44  ;;  %v1586_v60 = vmul.f32 1.442695, %v1474_v9 }
 0x659   : > { %v5839_v56 = vpop.eup %4632  ;;  %4644 = vpow2.f32 %v1614_v35  ;;  %v1504_v35 = vmul.f32 1.442695, %v1433_v54  ;;  %v1472_v54 = vsub.f32 %v5580_v31, %v5714_v48 }
 0x65a   : > { %v1627_v29 = vadd.f32 %v5798_v4, %v1626_v19  ;;  %v1435_v19 = vsub.f32 %v5533_v11, %v5792_v44  ;;  %v5843_v18 = vpop.eup %4634  ;;  %4646 = vpow2.f32 %v1492_v51  ;;  %v1476_v11 = vsub.f32 %v5596_v25, %v5714_v48  ;;  %v8240_v51 = vld [vmem:[#allocation46_spill] sm:$0xff] }
 0x65b   : > { %v5848_v41 = vpop.eup %4636  ;;  %4648 = vpow2.f32 %v1496_v7  ;;  %v1441_v26 = vsub.f32 %v8240_v51, %v5792_v44  ;;  %v1708_v48 = vpack.c.bf16 %v5821_v52, %v5816_v37  ;;  %v1582_v51 = vmul.f32 1.442695, %v1472_v54 }
 0x65c   : > { %v1628_v33 = vadd.f32 %v5803_v32, %v1627_v29  ;;  %v5852_v57 = vpop.eup %4638  ;;  %4650 = vpow2.f32 %v1606_v36  ;;  %v8238_v36 = vld [vmem:[#allocation22_spill] sm:$0xff]  ;;  %v1590_v63 = vmul.f32 1.442695, %v1476_v11 }
 0x65d   : > { %v5857_v28 = vpop.eup %4640  ;;  %4652 = vpow2.f32 %v1500_v61  ;;  %1746 = vmatpush.bf16.msra.mxu0 %v1708_v48 }
 0x65e   : > { %v1629_v40 = vadd.f32 %v5807_v17, %v1628_v33  ;;  %v8237_v33 = vld [vmem:[#allocation20_spill] sm:$0xff]  ;;  %v5862_v7 = vpop.eup %4642  ;;  %4654 = vpow2.f32 %v1594_v20  ;;  %v8243_v20 = vld [vmem:[#allocation47_spill] sm:$0xff] }
 0x65f   : > { %v5867_v47 = vpop.eup %4644  ;;  %4656 = vpow2.f32 %v1504_v35 }
 0x660   : > { %v1630_v29 = vadd.f32 %v5812_v15, %v1629_v40  ;;  %v1508_v40 = vmul.f32 1.442695, %v1435_v19  ;;  %v1512_v19 = vmul.f32 1.442695, %v1437_v0  ;;  %v5875_v61 = vpop.eup %4646  ;;  %4658 = vpow2.f32 %v1598_v1 }
 0x661   : > { %8241 = vst [vmem:[#allocation53_spill] sm:$0xff] %v5875_v61  ;;  %v5880_v9 = vpop.eup %4648  ;;  %v1724_v35 = vpack.c.bf16 %v5867_v47, %v5862_v7 }
 0x662   : > { %v1631_v3 = vadd.f32 %v5816_v37, %v1630_v29  ;;  %v8239_v29 = vld [vmem:[#allocation21_spill] sm:$0xff]  ;;  %8242 = vst [vmem:[#allocation56_spill] sm:$0xff] %v5880_v9  ;;  %4660 = vpow2.f32 %v1508_v40  ;;  %v5886_v0 = vpop.eup %4650  ;;  %v1655_v1 = vadd.f32 %v5880_v9, %v5875_v61  ;;  %v8245_v40 = vld [vmem:[#allocation48_spill] sm:$0xff] }
 0x663   : > { %v5871_v24 = vpack.c.bf16 %v8239_v29, %v8238_v36  ;;  %v1516_v36 = vmul.f32 1.442695, %v1439_v49  ;;  %4662 = vpow2.f32 %v1586_v60  ;;  %v5891_v37 = vpop.eup %4652  ;;  %v1445_v49 = vsub.f32 %v8245_v40, %v5792_v44  ;;  %1765 = vmatpush.bf16.msra.mxu1 %v1724_v35  ;;  %v8250_v9 = vld [vmem:[#allocation57_spill] sm:$0xff] }
 0x664   : > { %v1632_v25 = vadd.f32 %v5821_v52, %v1631_v3  ;;  %v1443_v3 = vsub.f32 %v8243_v20, %v5792_v44  ;;  %8244 = vst [vmem:[#allocation40_spill] sm:$0xff] %v5891_v37  ;;  %4664 = vpow2.f32 %v1512_v19  ;;  %v5896_v29 = vpop.eup %4654  ;;  %v1656_v60 = vadd.f32 %v5891_v37, %v1655_v1 }
 0x665   : > { %4666 = vpow2.f32 %v1590_v63  ;;  %v5902_v48 = vpop.eup %4656  ;;  %v1447_v20 = vsub.f32 %v5563_v2, %v5792_v44  ;;  %v8247_v2 = vld [vmem:[#allocation50_spill] sm:$0xff]  ;;  %v1487_v37 = vsub.f32 %v5707_v13, %v5792_v44 }
 0x666   : > { %v1633_v31 = vadd.f32 %v5825_v34, %v1632_v25  ;;  %v1520_v25 = vmul.f32 1.442695, %v1441_v26  ;;  %8246 = vst [vmem:[#allocation42_spill] sm:$0xff] %v5902_v48  ;;  %4668 = vpow2.f32 %v1516_v36  ;;  %v1524_v40 = vmul.f32 1.442695, %v1443_v3  ;;  %v5908_v19 = vpop.eup %4658 }
 0x667   : > { %v1722_v26 = vpack.c.bf16 %v5886_v0, %v5857_v28  ;;  %4670 = vpow2.f32 %v1582_v51  ;;  %v1449_v3 = vsub.f32 %v8247_v2, %v5792_v44  ;;  %v1528_v36 = vmul.f32 1.442695, %v1445_v49 }
 0x668   : > { %v1634_v11 = vadd.f32 %v5830_v23, %v1633_v31  ;;  %v1706_v31 = vpack.c.bf16 %v5812_v15, %v5807_v17  ;;  %v5913_v17 = vpop.eup %4660  ;;  %4672 = vpow2.f32 %v1520_v25  ;;  %v1451_v51 = vsub.f32 %v5576_v5, %v5792_v44 }
 0x669   : > { %1766 = vmatpush.bf16.msra.mxu1 %v1722_v26  ;;  %v4663_v1 = vpop.eup %4662  ;;  %v1453_v15 = vsub.f32 %v5584_v6, %v5792_v44  ;;  %4674 = vpow2.f32 %v1524_v40  ;;  %v1532_v25 = vmul.f32 1.442695, %v1447_v20  ;;  %v1720_v49 = vpack.c.bf16 %v5908_v19, %v5896_v29  ;;  %v8248_v6 = vld [vmem:[#allocation54_spill] sm:$0xff]  ;;  %v8249_v40 = vld [vmem:[#allocation55_spill] sm:$0xff] }
 0x66a   : > { %v1635_v54 = vadd.f32 %v5834_v45, %v1634_v11  ;;  %v1657_v11 = vadd.f32 %v5902_v48, %v1656_v60  ;;  %1747 = vmatpush.bf16.msra.mxu0 %v1706_v31  ;;  %v1704_v60 = vpack.c.bf16 %v5803_v32, %v5798_v4  ;;  %v5924_v31 = vpop.eup %4664  ;;  %v1455_v5 = vsub.f32 %v5592_v21, %v5792_v44 }
 0x66b   : > { %v4667_v26 = vpop.eup %4666  ;;  %v1459_v20 = vsub.f32 %v8248_v6, %v5792_v44  ;;  %v1461_v2 = vsub.f32 %v8249_v40, %v5792_v44  ;;  %4676 = vpow2.f32 %v1528_v36  ;;  %v1536_v63 = vmul.f32 1.442695, %v1449_v3  ;;  %v8251_v6 = vld [vmem:[#allocation58_spill] sm:$0xff] }
 0x66c   : > { %v1636_v35 = vadd.f32 %v5839_v56, %v1635_v54  ;;  %v1658_v54 = vadd.f32 %v5913_v17, %v1657_v11  ;;  %v1457_v11 = vsub.f32 %v5600_v43, %v5792_v44  ;;  %v5936_v32 = vpop.eup %4668  ;;  %v1463_v43 = vsub.f32 %v8250_v9, %v5792_v44 }
 0x66d   : > { %1767 = vmatpush.bf16.msra.mxu1 %v1720_v49  ;;  %v1465_v48 = vsub.f32 %v8251_v6, %v5792_v44  ;;  %4678 = vpow2.f32 %v1532_v25  ;;  %v1540_v36 = vmul.f32 1.442695, %v1451_v51  ;;  %v1718_v3 = vpack.c.bf16 %v4667_v26, %v4663_v1 }
 0x66e   : > { %v1637_v52 = vadd.f32 %v5843_v18, %v1636_v35  ;;  %v1659_v4 = vadd.f32 %v5924_v31, %v1658_v54  ;;  %1748 = vmatpush.bf16.msra.mxu0 %v1704_v60  ;;  %v1702_v60 = vpack.c.bf16 %v5794_v8, %v5789_v58  ;;  %v1544_v40 = vmul.f32 1.442695, %v1453_v15  ;;  %v8252_v58 = vld [vmem:[#allocation59_spill] sm:$0xff] }
 0x66f   : > { %4680 = vpow2.f32 %v1536_v63  ;;  %v1548_v25 = vmul.f32 1.442695, %v1455_v5  ;;  %v1700_v15 = vpack.c.bf16 %v5783_v42, %v5776_v62  ;;  %v1489_v8 = vsub.f32 %v5716_v30, %v5792_v44 }
 0x670   : > { %v1638_v35 = vadd.f32 %v5848_v41, %v1637_v52  ;;  %v4671_v52 = vpop.eup %4670  ;;  %v1660_v54 = vadd.f32 %v5936_v32, %v1659_v4  ;;  %4682 = vpow2.f32 %v1540_v36  ;;  %v1485_v62 = vsub.f32 %v5697_v38, %v5792_v44 }
 0x671   : > { %v5948_v61 = vpop.eup %4672  ;;  %1768 = vmatpush.bf16.msra.mxu1 %v1718_v3  ;;  %v1716_v13 = vpack.c.bf16 %v4671_v52, %v5852_v57  ;;  %4684 = vpow2.f32 %v1544_v40  ;;  %v1560_v42 = vmul.f32 1.442695, %v1461_v2  ;;  %v1479_v38 = vsub.f32 %v5626_v59, %v5792_v44 }
 0x672   : > { %v1639_v21 = vadd.f32 %v5852_v57, %v1638_v35  ;;  %v1467_v35 = vsub.f32 %v5663_v53, %v5792_v44  ;;  %v1661_v9 = vadd.f32 %v5948_v61, %v1660_v54  ;;  %1749 = vmatpush.bf16.msra.mxu0 %v1702_v60  ;;  %v5955_v4 = vpop.eup %4674  ;;  %v1483_v60 = vsub.f32 %v5670_v14, %v5792_v44 }
 0x673   : > { %v5964_v54 = vpop.eup %4676  ;;  %4686 = vpow2.f32 %v1548_v25  ;;  %v1612_v14 = vmul.f32 1.442695, %v1487_v37  ;;  %v1616_v36 = vmul.f32 1.442695, %v1489_v8  ;;  %v1714_v37 = vpack.c.bf16 %v5848_v41, %v5843_v18 }
 0x674   : > { %v1640_v49 = vadd.f32 %v4671_v52, %v1639_v21  ;;  %v1552_v21 = vmul.f32 1.442695, %v1457_v11  ;;  %v1662_v6 = vadd.f32 %v5955_v4, %v1661_v9  ;;  %v5972_v11 = vpop.eup %4678  ;;  %v1471_v52 = vsub.f32 %v5586_v39, %v5792_v44 }
 0x675   : > { %1769 = vmatpush.bf16.msra.mxu1 %v1716_v13  ;;  %v1604_v2 = vmul.f32 1.442695, %v1483_v60  ;;  %v1608_v40 = vmul.f32 1.442695, %v1485_v62  ;;  %v1696_v41 = vpack.c.bf16 %v5755_v46, %v5748_v22  ;;  %v1475_v8 = vsub.f32 %v5602_v16, %v5792_v44 }
 0x676   : > { %v1641_v51 = vadd.f32 %v4663_v1, %v1640_v49  ;;  %v1556_v1 = vmul.f32 1.442695, %v1459_v20  ;;  %v1663_v5 = vadd.f32 %v5964_v54, %v1662_v6  ;;  %1750 = vmatpush.bf16.msra.mxu0 %v1700_v15  ;;  %4688 = vpow2.f32 %v1552_v21  ;;  %v5980_v20 = vpop.eup %4680 }
 0x677   : > { %v1564_v49 = vmul.f32 1.442695, %v1463_v43  ;;  %v1568_v25 = vmul.f32 1.442695, %v1465_v48  ;;  %v1596_v21 = vmul.f32 1.442695, %v1479_v38  ;;  %v1477_v6 = vsub.f32 %v5614_v27, %v5792_v44 }
 0x678   : > { %v1642_v63 = vadd.f32 %v4667_v26, %v1641_v51  ;;  %v1664_v57 = vadd.f32 %v5972_v11, %v1663_v5  ;;  %v1698_v26 = vpack.c.bf16 %v5769_v12, %v5762_v55  ;;  %4690 = vpow2.f32 %v1556_v1  ;;  %v5990_v55 = vpop.eup %4682 }
 0x679   : > { %v1481_v12 = vsub.f32 %v5643_v50, %v5792_v44  ;;  %4692 = vpow2.f32 %v1560_v42  ;;  %1770 = vmatpush.bf16.msra.mxu1 %v1714_v37  ;;  %v4685_v59 = vpop.eup %4684  ;;  %v1712_v50 = vpack.c.bf16 %v5839_v56, %v5834_v45  ;;  %v1572_v22 = vmul.f32 1.442695, %v1467_v35 }
 0x67a   : > { %v1643_v30 = vadd.f32 %v5896_v29, %v1642_v63  ;;  %v1665_v3 = vadd.f32 %v5980_v20, %v1664_v57  ;;  %1751 = vmatpush.bf16.msra.mxu0 %v1698_v26  ;;  %4694 = vpow2.f32 %v1612_v14  ;;  %v8254_v27 = vsub.f32 %v8252_v58, %v5792_v44 }
 0x67b   : > { %4696 = vpow2.f32 %v1616_v36  ;;  %v1600_v16 = vmul.f32 1.442695, %v1481_v12  ;;  %v1710_v35 = vpack.c.bf16 %v5830_v23, %v5825_v34  ;;  %v1588_v63 = vmul.f32 1.442695, %v1475_v8  ;;  %v8257_v34 = vld [vmem:[#allocation52_spill] sm:$0xff] }
 0x67c   : > { %v1644_v29 = vadd.f32 %v5908_v19, %v1643_v30  ;;  %v1666_v18 = vadd.f32 %v5990_v55, %v1665_v3  ;;  %v4687_v19 = vpop.eup %4686  ;;  %4698 = vpow2.f32 %v1604_v2  ;;  %v1576_v53 = vmul.f32 1.442695, %v8254_v27 }
 0x67d   : > { %v4689_v43 = vpop.eup %4688  ;;  %4700 = vpow2.f32 %v1608_v40  ;;  %1771 = vmatpush.bf16.msra.mxu1 %v1712_v50  ;;  %v8255_v5 = vunpack.c.l.b16 %v8237_v33  ;;  %v8256_v58 = vunpack.c.l.b16 %v5871_v24  ;;  %v1473_v23 = vsub.f32 %v8257_v34, %v5792_v44  ;;  %v8266_v34 = vld [vmem:[#allocation42_spill] sm:$0xff] }
 0x67e   : > { %v1645_v9 = vadd.f32 %v5857_v28, %v1644_v29  ;;  %v1667_v28 = vadd.f32 %v4685_v59, %v1666_v18  ;;  %1752 = vmatpush.bf16.msra.mxu0 %v1696_v41  ;;  %v6008_v46 = vpop.eup %4690  ;;  %4702 = vpow2.f32 %v1564_v49  ;;  %v1709_v60 = vpack.c.bf16 %v4689_v43, %v4687_v19  ;;  %v8261_v18 = vld [vmem:[#allocation24_spill] sm:$0xff] }
 0x67f   : > { %v6013_v15 = vpop.eup %4692  ;;  %4704 = vpow2.f32 %v1568_v25  ;;  %v6031_v62 = vpack.c.b16 %v8256_v58, %v8255_v5  ;;  %v1592_v42 = vmul.f32 1.442695, %v1477_v6  ;;  %v8258_v26 = vunpack.c.h.b16 %v8237_v33 }
 0x680   : > { %v1646_v51 = vadd.f32 %v5886_v0, %v1645_v9  ;;  %v1668_v56 = vadd.f32 %v4687_v19, %v1667_v28  ;;  %v8253_v0 = vld [vmem:[#allocation60_spill] sm:$0xff]  ;;  %v6020_v13 = vpop.eup %4694  ;;  %4706 = vpow2.f32 %v1596_v21  ;;  %v8259_v38 = vunpack.c.h.b16 %v5871_v24  ;;  %v8260_v9 = vld [vmem:[#allocation25_spill] sm:$0xff] }
 0x681   : > { %v1694_v48 = vpack.c.bf16 %v8253_v0, %v5736_v10  ;;  %v6025_v10 = vpop.eup %4696  ;;  %4708 = vpow2.f32 %v1600_v16  ;;  %1772 = vmatpush.bf16.msra.mxu1 %v1710_v35  ;;  %v1580_v37 = vmul.f32 1.442695, %v1471_v52  ;;  %v1707_v29 = vpack.c.bf16 %v4685_v59, %v5990_v55 }
 0x682   : > { %v1647_v45 = vadd.f32 %v5862_v7, %v1646_v51  ;;  %v1669_v1 = vadd.f32 %v4689_v43, %v1668_v56  ;;  %4710 = vpow2.f32 %v1572_v22  ;;  %v1725_v30 = vpack.c.bf16 %v6025_v10, %v6020_v13 }
 0x683   : > { %1753 = vmatpush.bf16.msra.mxu0 %v1694_v48  ;;  %v6046_v36 = vpack.c.b16 %v8259_v38, %v8258_v26  ;;  %4712 = vpow2.f32 %v1576_v53  ;;  %v1584_v24 = vmul.f32 1.442695, %v1473_v23  ;;  %v1705_v55 = vpack.c.bf16 %v5980_v20, %v5972_v11  ;;  %v8262_v20 = vld [vmem:[#allocation23_spill] sm:$0xff] }
 0x684   : > { %v6023_v7 = vadd.f32 %v5867_v47, %v1647_v45  ;;  %v6035_v47 = vpop.eup %4698  ;;  %v1670_v14 = vadd.f32 %v6008_v46, %v1669_v1  ;;  %4714 = vpow2.f32 %v1588_v63  ;;  %v1049_v41 = vpack.c.bf16 %v8261_v18, %v8260_v9  ;;  %v8264_v63 = vld [vmem:[#allocation7_spill] sm:$0xff] }
 0x685   : > { %v6040_v57 = vpop.eup %4700  ;;  %1803 = vmatpush.bf16.msrb.mxu1 %v1725_v30  ;;  %4716 = vpow2.f32 %v1592_v42  ;;  %v1703_v43 = vpack.c.bf16 %v5964_v54, %v5955_v4  ;;  %v1734_v21 = vunpack.c.l.b16 %v8262_v20  ;;  %v1735_v45 = vunpack.c.h.b16 %v8262_v20  ;;  %v8267_v42 = vld [vmem:[#allocation3_spill] sm:$0xff] }
 0x686   : > { %1754 = vmatmul.bf16.vlgmr.msra.gmra.mxu0 %v6031_v62  ;;  %v6053_v2 = vpop.eup %4702  ;;  %v1671_v3 = vadd.f32 %v6013_v15, %v1670_v14  ;;  %1773 = vmatmul.bf16.vlgmr.msra.gmra.mxu1 %v6046_v36  ;;  %v1723_v44 = vpack.c.bf16 %v6040_v57, %v6035_v47  ;;  %4718 = vpow2.f32 %v1580_v37  ;;  %v1736_v28 = vunpack.c.l.b16 %v1049_v41  ;;  %v8268_v14 = vld [vmem:[#allocation4_spill] sm:$0xff] }
 0x687   : > { %1784 = vmatpush.bf16.msrb.mxu0 %v1709_v60  ;;  %v6056_v33 = vpop.eup %4704  ;;  %4720 = vpow2.f32 %v1584_v24  ;;  %v1737_v56 = vunpack.c.h.b16 %v1049_v41  ;;  %v1701_v0 = vpack.c.bf16 %v5948_v61, %v5936_v32  ;;  %v1699_v35 = vpack.c.bf16 %v5924_v31, %v5913_v17  ;;  %v8263_v60 = vld [vmem:[#allocation6_spill] sm:$0xff]  ;;  %v8265_v32 = vld [vmem:[#allocation40_spill] sm:$0xff]  ;;  %v8269_v17 = vld [vmem:[#allocation5_spill] sm:$0xff] }
 0x688   : > { %v4707_v12 = vpop.eup %4706  ;;  %v1672_v39 = vadd.f32 %v6053_v2, %v1671_v3  ;;  %v1740_v4 = vpack.c.b16 %v1736_v28, %v1734_v21  ;;  %v1021_v1 = vpack.c.bf16 %v8264_v63, %v8263_v60  ;;  %v1697_v23 = vpack.c.bf16 %v8266_v34, %v8265_v32  ;;  %v8270_v24 = vld [vmem:[#allocation53_spill] sm:$0xff] }
 0x689   : > { %v4709_v52 = vpop.eup %4708  ;;  %1804 = vmatpush.bf16.msrb.mxu1 %v1723_v44  ;;  %v1741_v53 = vpack.c.b16 %v1737_v56, %v1735_v45  ;;  %v1019_v30 = vpack.c.bf16 %v8268_v14, %v8267_v42  ;;  %v1882_v31 = vunpack.c.l.b16 %v8269_v17 }
 0x68a   : > { %v4711_v49 = vpop.eup %4710  ;;  %v1673_v40 = vadd.f32 %v6056_v33, %v1672_v39  ;;  %v1721_v25 = vpack.c.bf16 %v4709_v52, %v4707_v12  ;;  %v1884_v26 = vunpack.c.l.b16 %v1021_v1  ;;  %v1885_v3 = vunpack.c.h.b16 %v1021_v1 }
 0x68b   : > { %1785 = vmatpush.bf16.msrb.mxu0 %v1707_v29  ;;  %v4713_v59 = vpop.eup %4712  ;;  %v1713_v29 = vpack.c.bf16 %v6056_v33, %v6053_v2  ;;  %v1880_v44 = vunpack.c.l.b16 %v1019_v30  ;;  %v1881_v2 = vunpack.c.h.b16 %v1019_v30 }
 0x68c   : > { %v4715_v19 = vpop.eup %4714  ;;  %v1674_v8 = vadd.f32 %v4711_v49, %v1673_v40  ;;  %v1715_v61 = vpack.c.bf16 %v4713_v59, %v4711_v49  ;;  %v8272_v40 = vld [vmem:[#allocation2_spill] sm:$0xff] }
 0x68d   : > { %v4717_v50 = vpop.eup %4716  ;;  %1805 = vmatpush.bf16.msrb.mxu1 %v1721_v25 }
 0x68e   : > { %v1675_v51 = vadd.f32 %v4713_v59, %v1674_v8  ;;  %v4719_v11 = vpop.eup %4718  ;;  %v1719_v22 = vpack.c.bf16 %v4717_v50, %v4715_v19  ;;  %v1878_v59 = vunpack.c.l.b16 %v8272_v40  ;;  %v1858_v8 = vpop.trf.xlu0 }
 0x68f   : > { %1786 = vmatpush.bf16.msrb.mxu0 %v1705_v55  ;;  %v4721_v16 = vpop.eup %4720  ;;  %v1888_v55 = vpack.c.b16 %v1884_v26, %v1882_v31 }
 0x690   : > { %v1676_v6 = vadd.f32 %v4719_v11, %v1675_v51  ;;  %v1717_v27 = vpack.c.bf16 %v4721_v16, %v4719_v11  ;;  %v1886_v41 = vpack.c.b16 %v1880_v44, %v1878_v59 }
 0x691   : > { %1806 = vmatpush.bf16.msrb.mxu1 %v1719_v22 }
 0x692   : > { %v1677_v48 = vadd.f32 %v4721_v16, %v1676_v6 }
 0x693   : > { %1787 = vmatpush.bf16.msrb.mxu0 %v1703_v43 }
 0x694   : > { %v1678_v54 = vadd.f32 %v4715_v19, %v1677_v48 }
 0x695   : > { %1807 = vmatpush.bf16.msrb.mxu1 %v1717_v27 }
 0x696   : > { %1759 = vmatmul.bf16.gmra.mxu0 %v1740_v4  ;;  %v1679_v5 = vadd.f32 %v4717_v50, %v1678_v54  ;;  %1778 = vmatmul.bf16.gmra.mxu1 %v1741_v53 }
 0x697   : > { %1788 = vmatpush.bf16.msrb.mxu0 %v1701_v0 }
 0x698   : > { %v1680_v58 = vadd.f32 %v4707_v12, %v1679_v5  ;;  %v8271_v12 = vld [vmem:[#allocation56_spill] sm:$0xff] }
 0x699   : > { %1808 = vmatpush.bf16.msrb.mxu1 %v1715_v61  ;;  %v1695_v39 = vpack.c.bf16 %v8271_v12, %v8270_v24 }
 0x69a   : > { %v1681_v38 = vadd.f32 %v4709_v52, %v1680_v58  ;;  %v1883_v52 = vunpack.c.h.b16 %v8269_v17 }
 0x69b   : > { %1789 = vmatpush.bf16.msrb.mxu0 %v1699_v35 }
 0x69c   : > { %v1682_v37 = vadd.f32 %v6035_v47, %v1681_v38  ;;  %v1711_v47 = vpack.c.bf16 %v6013_v15, %v6008_v46  ;;  %v1889_v33 = vpack.c.b16 %v1885_v3, %v1883_v52 }
 0x69d   : > { %1809 = vmatpush.bf16.msrb.mxu1 %v1713_v29 }
 0x69e   : > { %v1683_v49 = vadd.f32 %v6040_v57, %v1682_v37  ;;  %v1879_v57 = vunpack.c.h.b16 %v8272_v40 }
 0x69f   : > { %1790 = vmatpush.bf16.msrb.mxu0 %v1697_v23 }
 0x6a0   : > { %v1684_v9 = vadd.f32 %v6020_v13, %v1683_v49  ;;  %v1887_v19 = vpack.c.b16 %v1881_v2, %v1879_v57  ;;  %v6097_v13 = vpop.trf.xlu0 }
 0x6a1   : > { %1810 = vmatpush.bf16.msrb.mxu1 %v1711_v47 }
 0x6a2   : > { %v1685_v18 = vadd.f32 %v6025_v10, %v1684_v9 }
 0x6a3   : > { %1791 = vmatpush.bf16.msrb.mxu0 %v1695_v39 }
 0x6a4   : > { %v1686_v0 = vrot.slane %v1685_v18, 4 }
 0x6a5   : > { %2037 = vmatpush.bf16.msra.mxu1 %v1889_v33 }
 0x6a6   : > { %1792 = vmatmul.bf16.vlgmr.msrb.gmra.mxu0 %v6031_v62  ;;  %1811 = vmatmul.bf16.vlgmr.msrb.gmra.mxu1 %v6046_v36  ;;  %v1649_v36 = vrot.slane %v6023_v7, 4  ;;  %v1687_v27 = vadd.f32 %v1686_v0, %v1685_v18 }
 0x6a7   : > { %1948 = vmatpush.bf16.msra.mxu0 %v1888_v55 }
 0x6a8   : > { %v1860_v46 = vpop.trf.xlu0  ;;  %v1650_v50 = vadd.f32 %v1649_v36, %v6023_v7  ;;  %v1688_v60 = vrot.slane %v1687_v27, 2 }
 0x6a9   : > { %2038 = vmatpush.bf16.msra.mxu1 %v1887_v19 }
 0x6aa   : > { %v1651_v51 = vrot.slane %v1650_v50, 2  ;;  %v1689_v5 = vadd.f32 %v1688_v60, %v1687_v27 }
 0x6ab   : > { %1949 = vmatpush.bf16.msra.mxu0 %v1886_v41 }
 0x6ac   : > { %v1652_v11 = vadd.f32 %v1651_v51, %v1650_v50  ;;  %v1690_v34 = vrot.slane %v1689_v5, 1 }
 0x6ae   : > { %v1653_v21 = vrot.slane %v1652_v11, 1  ;;  %v1691_v14 = vadd.f32 %v1690_v34, %v1689_v5 }
 0x6b0   : > { %v6100_v15 = vpop.trf.xlu0  ;;  %v1654_v28 = vadd.f32 %v1653_v21, %v1652_v11 }
 0x6b2   : > { %4722 = vrcp.f32 %v1654_v28 }
 0x6b3   : > { %4724 = vrcp.f32 %v1691_v14 }
 0x6b6   : > { %1797 = vmatmul.bf16.gmra.mxu0 %v1740_v4  ;;  %1816 = vmatmul.bf16.gmra.mxu1 %v1741_v53 }
 0x6b8   : > { %v1862_v10 = vpop.trf.xlu0  ;;  %v4723_v7 = vpop.eup %4722 }
 0x6b9   : > { %v4725_v29 = vpop.eup %4724 }
 0x6c0   : > { %v6105_v62 = vpop.trf.xlu0 }
 0x6c6   : > { %4446 = vmatmul.msk.bf16.vlgmr.msra.gmra.mxu0 %vm277_vm0, %v1858_v8  ;;  %4462 = vmatmul.msk.bf16.vlgmr.msra.gmra.mxu1 %vm277_vm0, %v1858_v8 }
 0x6c8   : > { %v1864_v25 = vpop.trf.xlu0 }
 0x6d0   : > { %v6111_v43 = vpop.trf.xlu0 }
 0x6d6   : > { %4447 = vmatmul.msk.bf16.gmra.mxu0 %vm277_vm0, %v1860_v46  ;;  %4463 = vmatmul.msk.bf16.gmra.mxu1 %vm277_vm0, %v1860_v46 }
 0x6d8   : > { %v1866_v20 = vpop.trf.xlu0 }
 0x6e0   : > { %v6115_v6 = vpop.trf.xlu0 }
 0x6e6   : > { %4448 = vmatmul.msk.bf16.gmra.mxu0 %vm277_vm0, %v1862_v10  ;;  %4464 = vmatmul.msk.bf16.gmra.mxu1 %vm277_vm0, %v1862_v10 }
 0x6e8   : > { %v1868_v4 = vpop.trf.xlu0 }
 0x6f0   : > { %v6124_v61 = vpop.trf.xlu0 }
 0x6f6   : > { %4449 = vmatmul.msk.bf16.gmra.mxu0 %vm277_vm0, %v1864_v25  ;;  %4465 = vmatmul.msk.bf16.gmra.mxu1 %vm277_vm0, %v1864_v25 }
 0x6f8   : > { %v1870_v38 = vpop.trf.xlu0 }
 0x700   : > { %v1871_v24 = vpop.trf.xlu0 }
 0x703   : > { %v1755_v22 = vpop.f32.mrf.mxu0  ;;  %v1774_v16 = vpop.f32.mrf.mxu1 }
 0x704   : > { %v1775_v45 = vadd.f32 %v1774_v16, %v1755_v22 }
 0x706   : > { %4450 = vmatmul.msk.bf16.gmra.mxu0 %vm277_vm0, %v1866_v20  ;;  %v6118_v56 = vmul.f32 %v4723_v7, %v1775_v45  ;;  %4466 = vmatmul.msk.bf16.gmra.mxu1 %vm277_vm0, %v1866_v20 }
 0x708   : > { %8273 = vst [vmem:[#allocation44_spill] sm:$0xff] %v6118_v56  ;;  %v1872_v52 = vpop.trf.xlu0 }
 0x70b   : > { %v1757_v48 = vpop.f32.mrf.mxu0  ;;  %v1776_v54 = vpop.f32.mrf.mxu1 }
 0x70c   : > { %v1777_v53 = vadd.f32 %v1776_v54, %v1757_v48 }
 0x70e   : > { %v6121_v35 = vmul.f32 %v4723_v7, %v1777_v53 }
 0x710   : > { %8274 = vst [vmem:[#allocation45_spill] sm:$0xff] %v6121_v35  ;;  %v1873_v60 = vpop.trf.xlu0 }
 0x713   : > { %v1760_v63 = vpop.f32.mrf.mxu0  ;;  %v1779_v1 = vpop.f32.mrf.mxu1 }
 0x714   : > { %v1780_v58 = vadd.f32 %v1779_v1, %v1760_v63 }
 0x716   : > { %4451 = vmatmul.msk.bf16.gmra.mxu0 %vm277_vm0, %v1868_v4  ;;  %v6126_v32 = vmul.f32 %v4723_v7, %v1780_v58  ;;  %4467 = vmatmul.msk.bf16.gmra.mxu1 %vm277_vm0, %v1868_v4 }
 0x718   : > { %8275 = vst [vmem:[#allocation20_spill] sm:$0xff] %v6126_v32 }
 0x71b   : > { %v1762_v23 = vpop.f32.mrf.mxu0  ;;  %v1781_v42 = vpop.f32.mrf.mxu1 }
 0x71c   : > { %v1782_v30 = vadd.f32 %v1781_v42, %v1762_v23 }
 0x71e   : > { %v6129_v26 = vmul.f32 %v4723_v7, %v1782_v30 }
 0x720   : > { %8276 = vst [vmem:[#allocation22_spill] sm:$0xff] %v6129_v26 }
 0x723   : > { %v1793_v17 = vpop.f32.mrf.mxu0  ;;  %v1812_v31 = vpop.f32.mrf.mxu1 }
 0x724   : > { %v1813_v37 = vadd.f32 %v1812_v31, %v1793_v17 }
 0x726   : > { %4452 = vmatmul.msk.bf16.gmra.mxu0 %vm277_vm0, %v1870_v38  ;;  %v6132_v3 = vmul.f32 %v4725_v29, %v1813_v37  ;;  %4468 = vmatmul.msk.bf16.gmra.mxu1 %vm277_vm0, %v1870_v38 }
 0x728   : > { %8277 = vst [vmem:[#allocation21_spill] sm:$0xff] %v6132_v3 }
 0x72b   : > { %v1795_v12 = vpop.f32.mrf.mxu0  ;;  %v1814_v39 = vpop.f32.mrf.mxu1 }
 0x72c   : > { %v1815_v44 = vadd.f32 %v1814_v39, %v1795_v12 }
 0x72e   : > { %v6135_v55 = vmul.f32 %v4725_v29, %v1815_v44 }
 0x730   : > { %8278 = vst [vmem:[#allocation46_spill] sm:$0xff] %v6135_v55 }
 0x733   : > { %v1798_v49 = vpop.f32.mrf.mxu0  ;;  %v1817_v40 = vpop.f32.mrf.mxu1 }
 0x734   : > { %v1818_v59 = vadd.f32 %v1817_v40, %v1798_v49 }
 0x736   : > { %4453 = vmatmul.msk.bf16.gmra.mxu0 %vm277_vm0, %v1872_v52  ;;  %v6138_v9 = vmul.f32 %v4725_v29, %v1818_v59  ;;  %4469 = vmatmul.msk.bf16.gmra.mxu1 %vm277_vm0, %v1872_v52 }
 0x738   : > { %8279 = vst [vmem:[#allocation47_spill] sm:$0xff] %v6138_v9 }
 0x73b   : > { %v1800_v47 = vpop.f32.mrf.mxu0  ;;  %v1819_v2 = vpop.f32.mrf.mxu1 }
 0x73c   : > { %v1820_v33 = vadd.f32 %v1819_v2, %v1800_v47 }
 0x73e   : > { %v6141_v18 = vmul.f32 %v4725_v29, %v1820_v33 }
 0x740   : > { %8280 = vst [vmem:[#allocation48_spill] sm:$0xff] %v6141_v18 }
 0x743   : > { %v6143_v41 = vpop.f32.mrf.mxu0  ;;  %v6145_v57 = vpop.f32.mrf.mxu1 }
 0x746   : > { %4454 = vmatmul.msk.bf16.gmra.mxu0 %vm277_vm0, %v6097_v13  ;;  %4470 = vmatmul.msk.bf16.gmra.mxu1 %vm277_vm0, %v6097_v13 }
 0x74b   : > { %v6151_v19 = vpop.f32.mrf.mxu0  ;;  %v6153_v8 = vpop.f32.mrf.mxu1 }
 0x74c   : > { %8281 = vst [vmem:[#allocation50_spill] sm:$0xff] %v6153_v8 }
 0x753   : > { %v6155_v46 = vpop.f32.mrf.mxu0  ;;  %v6157_v10 = vpop.f32.mrf.mxu1 }
 0x754   : > { %8282 = vst [vmem:[#allocation54_spill] sm:$0xff] %v6155_v46 }
 0x755   : > { %8283 = vst [vmem:[#allocation55_spill] sm:$0xff] %v6157_v10 }
 0x756   : > { %4455 = vmatmul.msk.bf16.gmra.mxu0 %vm277_vm0, %v6100_v15  ;;  %4471 = vmatmul.msk.bf16.gmra.mxu1 %vm277_vm0, %v6100_v15 }
 0x75b   : > { %v6163_v25 = vpop.f32.mrf.mxu0  ;;  %v6165_v36 = vpop.f32.mrf.mxu1 }
 0x75c   : > { %8284 = vst [vmem:[#allocation57_spill] sm:$0xff] %v6163_v25  ;;  %v2121_v18 = vmax.f32 %v6151_v19, %v6163_v25 }
 0x75d   : > { %8285 = vst [vmem:[#allocation58_spill] sm:$0xff] %v6165_v36 }
 0x763   : > { %v6167_v50 = vpop.f32.mrf.mxu0  ;;  %v6169_v13 = vpop.f32.mrf.mxu1 }
 0x764   : > { %8286 = vst [vmem:[#allocation59_spill] sm:$0xff] %v6167_v50 }
 0x766   : > { %4456 = vmatmul.msk.bf16.gmra.mxu0 %vm277_vm0, %v6105_v62  ;;  %4472 = vmatmul.msk.bf16.gmra.mxu1 %vm277_vm0, %v6105_v62 }
 0x76b   : > { %v6175_v51 = vpop.f32.mrf.mxu0  ;;  %v6177_v11 = vpop.f32.mrf.mxu1 }
 0x76c   : > { %8287 = vst [vmem:[#allocation60_spill] sm:$0xff] %v6175_v51  ;;  %v2123_v55 = vmax.f32 %v2121_v18, %v6175_v51 }
 0x773   : > { %v6179_v20 = vpop.f32.mrf.mxu0  ;;  %v6181_v15 = vpop.f32.mrf.mxu1 }
 0x774   : > { %8288 = vst [vmem:[#allocation52_spill] sm:$0xff] %v6179_v20 }
 0x776   : > { %4457 = vmatmul.msk.bf16.gmra.mxu0 %vm277_vm0, %v6111_v43  ;;  %4473 = vmatmul.msk.bf16.gmra.mxu1 %vm277_vm0, %v6111_v43 }
 0x77b   : > { %v6187_v21 = vpop.f32.mrf.mxu0  ;;  %v6189_v28 = vpop.f32.mrf.mxu1 }
 0x77c   : > { %8289 = vst [vmem:[#allocation25_spill] sm:$0xff] %v6189_v28  ;;  %v2125_v35 = vmax.f32 %v2123_v55, %v6187_v21 }
 0x783   : > { %v6191_v22 = vpop.f32.mrf.mxu0  ;;  %v6193_v62 = vpop.f32.mrf.mxu1 }
 0x786   : > { %4458 = vmatmul.msk.bf16.gmra.mxu0 %vm277_vm0, %v6115_v6  ;;  %4474 = vmatmul.msk.bf16.gmra.mxu1 %vm277_vm0, %v6115_v6 }
 0x78b   : > { %v6199_v16 = vpop.f32.mrf.mxu0  ;;  %v6201_v45 = vpop.f32.mrf.mxu1 }
 0x78c   : > { %8290 = vst [vmem:[#allocation24_spill] sm:$0xff] %v6201_v45 }
 0x793   : > { %v6203_v7 = vpop.f32.mrf.mxu0  ;;  %v6205_v43 = vpop.f32.mrf.mxu1 }
 0x796   : > { %4459 = vmatmul.msk.bf16.gmra.mxu0 %vm277_vm0, %v6124_v61  ;;  %4475 = vmatmul.msk.bf16.gmra.mxu1 %vm277_vm0, %v6124_v61 }
 0x79b   : > { %v6211_v0 = vpop.f32.mrf.mxu0  ;;  %v6213_v48 = vpop.f32.mrf.mxu1 }
 0x79c   : > { %8291 = vst [vmem:[#allocation23_spill] sm:$0xff] %v6213_v48 }
 0x7a3   : > { %v6215_v4 = vpop.f32.mrf.mxu0  ;;  %v6217_v6 = vpop.f32.mrf.mxu1 }
 0x7a6   : > { %4460 = vmatmul.msk.bf16.gmra.mxu0 %vm277_vm0, %v1871_v24  ;;  %4476 = vmatmul.msk.bf16.gmra.mxu1 %vm277_vm0, %v1871_v24 }
 0x7ab   : > { %v6221_v54 = vpop.f32.mrf.mxu0  ;;  %v6223_v27 = vpop.f32.mrf.mxu1 }
 0x7ac   : > { %8292 = vst [vmem:[#allocation6_spill] sm:$0xff] %v6223_v27 }
 0x7b3   : > { %v6225_v53 = vpop.f32.mrf.mxu0  ;;  %v6227_v63 = vpop.f32.mrf.mxu1 }
 0x7b6   : > { %4461 = vmatmul.msk.bf16.gmra.mxu0 %vm277_vm0, %v1873_v60  ;;  %4477 = vmatmul.msk.bf16.gmra.mxu1 %vm277_vm0, %v1873_v60  ;;  %v2120_v60 = vmax.f32 %v6143_v41, %v6155_v46 }
 0x7b8   : > { %v2122_v9 = vmax.f32 %v2120_v60, %v6167_v50 }
 0x7ba   : > { %v2124_v32 = vmax.f32 %v2122_v9, %v6179_v20 }
 0x7bb   : > { %v6231_v1 = vpop.f32.mrf.mxu0  ;;  %v6233_v5 = vpop.f32.mrf.mxu1 }
 0x7bc   : > { %v2126_v56 = vmax.f32 %v2124_v32, %v6191_v22 }
 0x7be   : > { %v2128_v46 = vmax.f32 %v2126_v56, %v6203_v7 }
 0x7c0   : > { %v2130_v60 = vmax.f32 %v2128_v46, %v6215_v4  ;;  %v2158_v46 = vmax.f32 %v6153_v8, %v6165_v36 }
 0x7c2   : > { %v2132_v50 = vmax.f32 %v2130_v60, %v6225_v53 }
 0x7c3   : > { %v6235_v58 = vpop.f32.mrf.mxu0  ;;  %v6237_v61 = vpop.f32.mrf.mxu1 }
 0x7c4   : > { %v2134_v32 = vmax.f32 %v2132_v50, %v6235_v58  ;;  %v2160_v50 = vmax.f32 %v2158_v46, %v6177_v11 }
 0x7cb   : > { %v6239_v34 = vpop.f32.mrf.mxu0  ;;  %v6241_v23 = vpop.f32.mrf.mxu1 }
 0x7cc   : > { %8293 = vst [vmem:[#allocation7_spill] sm:$0xff] %v6241_v23 }
 0x7d3   : > { %v6243_v42 = vpop.f32.mrf.mxu0  ;;  %v6245_v14 = vpop.f32.mrf.mxu1 }
 0x7d4   : > { %v2136_v56 = vmax.f32 %v2134_v32, %v6243_v42 }
 0x7db   : > { %v6247_v30 = vpop.f32.mrf.mxu0  ;;  %v6249_v38 = vpop.f32.mrf.mxu1 }
 0x7dc   : > { %8294 = vst [vmem:[#allocation40_spill] sm:$0xff] %v6247_v30 }
 0x7e3   : > { %v6251_v17 = vpop.f32.mrf.mxu0  ;;  %v6253_v31 = vpop.f32.mrf.mxu1 }
 0x7eb   : > { %v6255_v37 = vpop.f32.mrf.mxu0  ;;  %v6257_v29 = vpop.f32.mrf.mxu1 }
 0x7ec   : > { %8295 = vst [vmem:[#allocation42_spill] sm:$0xff] %v6257_v29 }
 0x7f3   : > { %v6259_v24 = vpop.f32.mrf.mxu0  ;;  %v6261_v12 = vpop.f32.mrf.mxu1 }
 0x7fb   : > { %v6263_v39 = vpop.f32.mrf.mxu0  ;;  %v6265_v44 = vpop.f32.mrf.mxu1 }
 0x7fc   : > { %8296 = vst [vmem:[#allocation3_spill] sm:$0xff] %v6265_v44 }
 0x803   : > { %v6267_v49 = vpop.f32.mrf.mxu0  ;;  %v6269_v52 = vpop.f32.mrf.mxu1 }
 0x804   : > { %8297 = vst [vmem:[#allocation4_spill] sm:$0xff] %v6269_v52 }
 0x80b   : > { %v6271_v40 = vpop.f32.mrf.mxu0  ;;  %v6273_v59 = vpop.f32.mrf.mxu1 }
 0x80c   : > { %8298 = vst [vmem:[#allocation5_spill] sm:$0xff] %v6273_v59 }
 0x813   : > { %v6275_v47 = vpop.f32.mrf.mxu0  ;;  %v6277_v2 = vpop.f32.mrf.mxu1 }
 0x814   : > { %8299 = vst [vmem:[#allocation53_spill] sm:$0xff] %v6277_v2  ;;  %v2127_v2 = vmax.f32 %v2125_v35, %v6199_v16 }
 0x816   : > { %v2129_v25 = vmax.f32 %v2127_v2, %v6211_v0 }
 0x818   : > { %v2131_v18 = vmax.f32 %v2129_v25, %v6221_v54  ;;  %v2138_v25 = vmax.f32 %v2136_v56, %v6251_v17 }
 0x81a   : > { %v2133_v9 = vmax.f32 %v2131_v18, %v6231_v1  ;;  %v2157_v18 = vmax.f32 %v6145_v57, %v6157_v10 }
 0x81b   : > { %v6279_v33 = vpop.f32.mrf.mxu0  ;;  %v6287_v3 = vpop.f32.mrf.mxu1 }
 0x81c   : > { %v2135_v35 = vmax.f32 %v2133_v9, %v6239_v34  ;;  %v2140_v9 = vmax.f32 %v2138_v25, %v6259_v24 }
 0x81e   : > { %v2137_v55 = vmax.f32 %v2135_v35, %v6247_v30  ;;  %v2159_v35 = vmax.f32 %v2157_v18, %v6169_v13  ;;  %v2162_v30 = vmax.f32 %v2160_v50, %v6189_v28  ;;  %v2142_v36 = vmax.f32 %v2140_v9, %v6267_v49 }
 0x820   : > { %v2139_v2 = vmax.f32 %v2137_v55, %v6255_v37  ;;  %v2161_v8 = vmax.f32 %v2159_v35, %v6181_v15  ;;  %v2164_v10 = vmax.f32 %v2162_v30, %v6201_v45  ;;  %v2144_v46 = vmax.f32 %v2142_v36, %v6275_v47 }
 0x822   : > { %v2141_v32 = vmax.f32 %v2139_v2, %v6263_v39  ;;  %v2163_v2 = vmax.f32 %v2161_v8, %v6193_v62  ;;  %v2166_v18 = vmax.f32 %v2164_v10, %v6213_v48 }
 0x823   : > { %v6289_v26 = vpop.f32.mrf.mxu0  ;;  %v6303_v20 = vpop.f32.mrf.mxu1 }
 0x824   : > { %v2143_v56 = vmax.f32 %v2141_v32, %v6271_v40  ;;  %v2146_v50 = vmax.f32 %v2144_v46, %v6289_v26  ;;  %v2165_v32 = vmax.f32 %v2163_v2, %v6205_v43  ;;  %v2168_v35 = vmax.f32 %v2166_v18, %v6223_v27 }
 0x826   : > { %v2145_v25 = vmax.f32 %v2143_v56, %v6279_v33  ;;  %v2167_v56 = vmax.f32 %v2165_v32, %v6217_v6  ;;  %v2170_v8 = vmax.f32 %v2168_v35, %v6233_v5 }
 0x828   : > { %v2169_v10 = vmax.f32 %v2167_v56, %v6227_v63  ;;  %v2172_v46 = vmax.f32 %v2170_v8, %v6241_v23 }
 0x82a   : > { %v2171_v2 = vmax.f32 %v2169_v10, %v6237_v61  ;;  %v2174_v18 = vmax.f32 %v2172_v46, %v6249_v38 }
 0x82b   : > { %v6299_v51 = vpop.f32.mrf.mxu0  ;;  %v6324_v55 = vpop.f32.mrf.mxu1 }
 0x82c   : > { %v2147_v9 = vmax.f32 %v2145_v25, %v6299_v51 }
 0x833   : > { %v6313_v60 = vpop.f32.mrf.mxu0  ;;  %v6344_v48 = vpop.f32.mrf.mxu1 }
 0x834   : > { %v2148_v30 = vmax.f32 %v2146_v50, %v6313_v60  ;;  %v2173_v50 = vmax.f32 %v2171_v2, %v6245_v14 }
 0x836   : > { %v2175_v35 = vmax.f32 %v2173_v50, %v6253_v31 }
 0x838   : > { %v2177_v56 = vmax.f32 %v2175_v35, %v6261_v12 }
 0x83a   : > { %v2179_v10 = vmax.f32 %v2177_v56, %v6269_v52  ;;  %v8305_v52 = vld [vmem:[#allocation52_spill] sm:$0xff] }
 0x83b   : > { %v6334_v28 = vpop.f32.mrf.mxu0 }
 0x83c   : > { %v2149_v36 = vmax.f32 %v2147_v9, %v6334_v28  ;;  %v2176_v9 = vmax.f32 %v2174_v18, %v6257_v29 }
 0x83e   : > { %v2150_v45 = vmax.f32 %v2148_v30, %v2149_v36  ;;  %v2178_v30 = vmax.f32 %v2176_v9, %v6265_v44 }
 0x840   : > { %v2151_v25 = vrot.slane %v2150_v45, 4  ;;  %v2180_v8 = vmax.f32 %v2178_v30, %v6273_v59  ;;  %v8301_v30 = vld [vmem:[#allocation54_spill] sm:$0xff] }
 0x842   : > { %v2152_v27 = vmax.f32 %v2150_v45, %v2151_v25  ;;  %v2182_v46 = vmax.f32 %v2180_v8, %v6287_v3  ;;  %v6356_v45 = vpop.f32.mrf.mxu1  ;;  %v8300_v25 = vld [vmem:[#allocation53_spill] sm:$0xff] }
 0x843   : > { %v2181_v2 = vmax.f32 %v2179_v10, %v8300_v25  ;;  %v8302_v10 = vld [vmem:[#allocation57_spill] sm:$0xff] }
 0x844   : > { %v2153_v32 = vrot.slane %v2152_v27, 2  ;;  %v2184_v18 = vmax.f32 %v2182_v46, %v6324_v55 }
 0x845   : > { %v2183_v50 = vmax.f32 %v2181_v2, %v6303_v20  ;;  %v8303_v2 = vld [vmem:[#allocation59_spill] sm:$0xff] }
 0x846   : > { %v2154_v36 = vmax.f32 %v2152_v27, %v2153_v32  ;;  %v2186_v27 = vmax.f32 %v2184_v18, %v6356_v45 }
 0x847   : > { %v2185_v9 = vmax.f32 %v2183_v50, %v6344_v48 }
 0x848   : > { %v2155_v23 = vrot.slane %v2154_v36, 1 }
 0x849   : > { %v2187_v8 = vmax.f32 %v2185_v9, %v2186_v27 }
 0x84a   : > { %v6360_v29 = vmax.f32 %v2154_v36, %v2155_v23 }
 0x84b   : > { %v2188_v50 = vrot.slane %v2187_v8, 4 }
 0x84c   : > { %v2194_v32 = vsub.f32 %v6143_v41, %v6360_v29  ;;  %v2196_v35 = vsub.f32 %v6151_v19, %v6360_v29  ;;  %v2198_v56 = vsub.f32 %v8301_v30, %v6360_v29  ;;  %v2200_v23 = vsub.f32 %v8302_v10, %v6360_v29  ;;  %v8304_v41 = vld [vmem:[#allocation60_spill] sm:$0xff] }
 0x84d   : > { %v2202_v18 = vsub.f32 %v8303_v2, %v6360_v29  ;;  %v2204_v59 = vsub.f32 %v8304_v41, %v6360_v29  ;;  %v2206_v30 = vsub.f32 %v8305_v52, %v6360_v29  ;;  %v2189_v9 = vmax.f32 %v2187_v8, %v2188_v50 }
 0x84e   : > { %v2258_v36 = vmul.f32 1.442695, %v2194_v32  ;;  %v2262_v46 = vmul.f32 1.442695, %v2196_v35  ;;  %v2266_v44 = vmul.f32 1.442695, %v2198_v56  ;;  %v2208_v32 = vsub.f32 %v6187_v21, %v6360_v29 }
 0x84f   : > { %v2270_v19 = vmul.f32 1.442695, %v2200_v23  ;;  %v2274_v27 = vmul.f32 1.442695, %v2202_v18  ;;  %v2278_v35 = vmul.f32 1.442695, %v2204_v59  ;;  %v2210_v56 = vsub.f32 %v6191_v22, %v6360_v29 }
 0x850   : > { %4726 = vpow2.f32 %v2258_v36  ;;  %v2212_v23 = vsub.f32 %v6199_v16, %v6360_v29  ;;  %v2282_v52 = vmul.f32 1.442695, %v2206_v30  ;;  %v2190_v8 = vrot.slane %v2189_v9, 2 }
 0x851   : > { %4728 = vpow2.f32 %v2262_v46  ;;  %v2216_v46 = vsub.f32 %v6211_v0, %v6360_v29  ;;  %v2286_v22 = vmul.f32 1.442695, %v2208_v32  ;;  %v2218_v2 = vsub.f32 %v6215_v4, %v6360_v29 }
 0x852   : > { %4730 = vpow2.f32 %v2266_v44  ;;  %v2214_v44 = vsub.f32 %v6203_v7, %v6360_v29  ;;  %v2290_v16 = vmul.f32 1.442695, %v2210_v56  ;;  %v2220_v7 = vsub.f32 %v6221_v54, %v6360_v29 }
 0x853   : > { %4732 = vpow2.f32 %v2270_v19  ;;  %v2294_v41 = vmul.f32 1.442695, %v2212_v23  ;;  %v2222_v19 = vsub.f32 %v6225_v53, %v6360_v29  ;;  %v2224_v4 = vsub.f32 %v6231_v1, %v6360_v29 }
 0x854   : > { %4734 = vpow2.f32 %v2274_v27  ;;  %v2298_v30 = vmul.f32 1.442695, %v2214_v44  ;;  %v2191_v27 = vmax.f32 %v2189_v9, %v2190_v8  ;;  %v2226_v56 = vsub.f32 %v6235_v58, %v6360_v29 }
 0x855   : > { %4736 = vpow2.f32 %v2278_v35  ;;  %v2302_v35 = vmul.f32 1.442695, %v2216_v46  ;;  %v2306_v54 = vmul.f32 1.442695, %v2218_v2  ;;  %v2228_v53 = vsub.f32 %v6239_v34, %v6360_v29  ;;  %v8308_v46 = vld [vmem:[#allocation40_spill] sm:$0xff] }
 0x856   : > { %v6381_v10 = vpop.eup %4726  ;;  %4738 = vpow2.f32 %v2282_v52  ;;  %v2230_v9 = vsub.f32 %v6243_v42, %v6360_v29  ;;  %v2310_v44 = vmul.f32 1.442695, %v2220_v7  ;;  %v2314_v1 = vmul.f32 1.442695, %v2222_v19 }
 0x857   : > { %8306 = vst [vmem:[#allocation56_spill] sm:$0xff] %v6381_v10  ;;  %v6385_v36 = vpop.eup %4728  ;;  %4740 = vpow2.f32 %v2286_v22  ;;  %v2192_v8 = vrot.slane %v2191_v27, 1  ;;  %v2232_v22 = vsub.f32 %v8308_v46, %v6360_v29  ;;  %v2318_v2 = vmul.f32 1.442695, %v2224_v4 }
 0x858   : > { %8307 = vst [vmem:[#allocation2_spill] sm:$0xff] %v6385_v36  ;;  %v2386_v21 = vadd.f32 %v6385_v36, %v6381_v10  ;;  %v6393_v59 = vpop.eup %4730  ;;  %4742 = vpow2.f32 %v2290_v16  ;;  %v2234_v34 = vsub.f32 %v6251_v17, %v6360_v29  ;;  %v2322_v16 = vmul.f32 1.442695, %v2226_v56 }
 0x859   : > { %v6400_v50 = vpop.eup %4732  ;;  %4744 = vpow2.f32 %v2294_v41  ;;  %v2236_v7 = vsub.f32 %v6255_v37, %v6360_v29  ;;  %v2238_v41 = vsub.f32 %v6259_v24, %v6360_v29  ;;  %v2326_v19 = vmul.f32 1.442695, %v2228_v53 }
 0x85a   : > { %v2387_v18 = vadd.f32 %v6393_v59, %v2386_v21  ;;  %v6407_v32 = vpop.eup %4734  ;;  %4746 = vpow2.f32 %v2298_v30  ;;  %v6437_v4 = vmax.f32 %v2191_v27, %v2192_v8  ;;  %v2250_v56 = vsub.f32 %v6289_v26, %v6360_v29 }
 0x85b   : > { %v6414_v52 = vpop.eup %4736  ;;  %4748 = vpow2.f32 %v2302_v35  ;;  %v2334_v37 = vmul.f32 1.442695, %v2232_v22  ;;  %v2254_v24 = vsub.f32 %v6313_v60, %v6360_v29  ;;  %v2256_v27 = vsub.f32 %v6334_v28, %v6360_v29  ;;  %v8309_v22 = vld [vmem:[#allocation50_spill] sm:$0xff] }
 0x85c   : > { %v2388_v0 = vadd.f32 %v6400_v50, %v2387_v18  ;;  %v6421_v58 = vpop.eup %4738  ;;  %4750 = vpow2.f32 %v2306_v54  ;;  %v2346_v26 = vmul.f32 1.442695, %v2238_v41  ;;  %v2195_v60 = vsub.f32 %v6145_v57, %v6437_v4  ;;  %v8310_v41 = vld [vmem:[#allocation55_spill] sm:$0xff] }
 0x85d   : > { %v6428_v18 = vpop.eup %4740  ;;  %4752 = vpow2.f32 %v2310_v44  ;;  %v2342_v44 = vmul.f32 1.442695, %v2236_v7  ;;  %v2370_v46 = vmul.f32 1.442695, %v2250_v56  ;;  %v2252_v28 = vsub.f32 %v6299_v51, %v6360_v29 }
 0x85e   : > { %v2389_v23 = vadd.f32 %v6407_v32, %v2388_v0  ;;  %v6434_v30 = vpop.eup %4742  ;;  %4754 = vpow2.f32 %v2314_v1  ;;  %v2330_v0 = vmul.f32 1.442695, %v2230_v9  ;;  %v2382_v57 = vmul.f32 1.442695, %v2256_v27 }
 0x85f   : > { %v6439_v35 = vpop.eup %4744  ;;  %4756 = vpow2.f32 %v2318_v2  ;;  %v2197_v2 = vsub.f32 %v8309_v22, %v6437_v4  ;;  %v2260_v51 = vmul.f32 1.442695, %v2195_v60  ;;  %v2203_v60 = vsub.f32 %v6169_v13, %v6437_v4 }
 0x860   : > { %v2390_v21 = vadd.f32 %v6414_v52, %v2389_v23  ;;  %v6443_v54 = vpop.eup %4746  ;;  %4758 = vpow2.f32 %v2322_v16  ;;  %v2338_v23 = vmul.f32 1.442695, %v2234_v34  ;;  %v2378_v16 = vmul.f32 1.442695, %v2254_v24  ;;  %v8311_v24 = vld [vmem:[#allocation58_spill] sm:$0xff] }
 0x861   : > { %v6448_v9 = vpop.eup %4748  ;;  %4760 = vpow2.f32 %v2326_v19  ;;  %v2199_v19 = vsub.f32 %v8310_v41, %v6437_v4  ;;  %v2244_v13 = vsub.f32 %v6271_v40, %v6360_v29 }
 0x862   : > { %v2391_v42 = vadd.f32 %v6421_v58, %v2390_v21  ;;  %v6452_v1 = vpop.eup %4750  ;;  %4762 = vpow2.f32 %v2330_v0 }
 0x863   : > { %v6457_v8 = vpop.eup %4752  ;;  %4764 = vpow2.f32 %v2334_v37  ;;  %v2358_v10 = vmul.f32 1.442695, %v2244_v13 }
 0x864   : > { %v2392_v17 = vadd.f32 %v6428_v18, %v2391_v42  ;;  %v6461_v34 = vpop.eup %4754  ;;  %4766 = vpow2.f32 %v2338_v23  ;;  %v2201_v23 = vsub.f32 %v8311_v24, %v6437_v4  ;;  %v2207_v24 = vsub.f32 %v6181_v15, %v6437_v4 }
 0x865   : > { %v6466_v7 = vpop.eup %4756  ;;  %4768 = vpow2.f32 %v2342_v44  ;;  %v2248_v44 = vsub.f32 %v6279_v33, %v6360_v29 }
 0x866   : > { %v2393_v53 = vadd.f32 %v6434_v30, %v2392_v17  ;;  %v6470_v0 = vpop.eup %4758  ;;  %v2246_v17 = vsub.f32 %v6275_v47, %v6360_v29  ;;  %4770 = vpow2.f32 %v2346_v26 }
 0x867   : > { %v6475_v37 = vpop.eup %4760  ;;  %4772 = vpow2.f32 %v2370_v46  ;;  %v2268_v46 = vmul.f32 1.442695, %v2199_v19  ;;  %v2366_v19 = vmul.f32 1.442695, %v2248_v44 }
 0x868   : > { %v2394_v21 = vadd.f32 %v6439_v35, %v2393_v53  ;;  %v2264_v53 = vmul.f32 1.442695, %v2197_v2  ;;  %v6479_v27 = vpop.eup %4762  ;;  %4774 = vpow2.f32 %v2378_v16  ;;  %v2242_v2 = vsub.f32 %v6267_v49, %v6360_v29 }
 0x869   : > { %v6484_v26 = vpop.eup %4764  ;;  %4776 = vpow2.f32 %v2382_v57  ;;  %v2272_v16 = vmul.f32 1.442695, %v2201_v23  ;;  %v2240_v23 = vsub.f32 %v6263_v39, %v6360_v29  ;;  %v2476_v39 = vpack.c.bf16 %v6466_v7, %v6461_v34 }
 0x86a   : > { %v2395_v42 = vadd.f32 %v6443_v54, %v2394_v21  ;;  %v2374_v21 = vmul.f32 1.442695, %v2252_v28  ;;  %v6488_v22 = vpop.eup %4766  ;;  %4778 = vpow2.f32 %v2260_v51  ;;  %v2205_v28 = vsub.f32 %v6177_v11, %v6437_v4  ;;  %v8315_v51 = vld [vmem:[#allocation25_spill] sm:$0xff] }
 0x86b   : > { %v6493_v33 = vpop.eup %4768  ;;  %4780 = vpow2.f32 %v2264_v53  ;;  %v2276_v11 = vmul.f32 1.442695, %v2203_v60  ;;  %v2209_v15 = vsub.f32 %v8315_v51, %v6437_v4  ;;  %v2350_v51 = vmul.f32 1.442695, %v2240_v23  ;;  %2514 = vmatpush.bf16.msra.mxu2 %v2476_v39 }
 0x86c   : > { %v2396_v56 = vadd.f32 %v6448_v9, %v2395_v42  ;;  %v2362_v42 = vmul.f32 1.442695, %v2246_v17  ;;  %v6497_v57 = vpop.eup %4770  ;;  %4782 = vpow2.f32 %v2374_v21  ;;  %v8313_v21 = vld [vmem:[#allocation28_spill] sm:$0xff]  ;;  %v2280_v60 = vmul.f32 1.442695, %v2205_v28 }
 0x86d   : > { %v6502_v17 = vpop.eup %4772  ;;  %4784 = vpow2.f32 %v2268_v46 }
 0x86e   : > { %v2397_v47 = vadd.f32 %v6452_v1, %v2396_v56  ;;  %v8312_v56 = vld [vmem:[#allocation26_spill] sm:$0xff]  ;;  %v6507_v53 = vpop.eup %4774  ;;  %4786 = vpow2.f32 %v2362_v42  ;;  %v2211_v42 = vsub.f32 %v6193_v62, %v6437_v4  ;;  %v8317_v62 = vld [vmem:[#allocation24_spill] sm:$0xff] }
 0x86f   : > { %v6512_v44 = vpop.eup %4776  ;;  %4788 = vpow2.f32 %v2272_v16 }
 0x870   : > { %v2398_v41 = vadd.f32 %v6457_v8, %v2397_v47  ;;  %v2354_v47 = vmul.f32 1.442695, %v2242_v2  ;;  %v6520_v46 = vpop.eup %4778  ;;  %4790 = vpow2.f32 %v2366_v19  ;;  %v2492_v16 = vpack.c.bf16 %v6512_v44, %v6507_v53 }
 0x871   : > { %v6525_v2 = vpop.eup %4780  ;;  %4792 = vpow2.f32 %v2276_v11  ;;  %v2288_v11 = vmul.f32 1.442695, %v2209_v15  ;;  %v2292_v39 = vmul.f32 1.442695, %v2211_v42 }
 0x872   : > { %v2399_v49 = vadd.f32 %v6461_v34, %v2398_v41  ;;  %v8314_v41 = vld [vmem:[#allocation27_spill] sm:$0xff]  ;;  %8316 = vst [vmem:[#allocation53_spill] sm:$0xff] %v6525_v2  ;;  %v6531_v28 = vpop.eup %4782  ;;  %4794 = vpow2.f32 %v2354_v47  ;;  %v2423_v19 = vadd.f32 %v6525_v2, %v6520_v46  ;;  %2533 = vmatpush.bf16.msra.mxu3 %v2492_v16  ;;  %v2255_v2 = vsub.f32 %v6344_v48, %v6437_v4 }
 0x873   : > { %v6516_v36 = vpack.c.bf16 %v8314_v41, %v8313_v21  ;;  %v6536_v34 = vpop.eup %4784  ;;  %4796 = vpow2.f32 %v2280_v60  ;;  %v2474_v21 = vpack.c.bf16 %v6457_v8, %v6452_v1  ;;  %v2490_v15 = vpack.c.bf16 %v6531_v28, %v6502_v17  ;;  %v8319_v8 = vld [vmem:[#allocation6_spill] sm:$0xff] }
 0x874   : > { %v2400_v40 = vadd.f32 %v6466_v7, %v2399_v49  ;;  %v2284_v49 = vmul.f32 1.442695, %v2207_v24  ;;  %v2213_v24 = vsub.f32 %v8317_v62, %v6437_v4  ;;  %4798 = vpow2.f32 %v2358_v10 }
 0x875   : > { %v2424_v47 = vadd.f32 %v6536_v34, %v2423_v19  ;;  %2515 = vmatpush.bf16.msra.mxu2 %v2474_v21  ;;  %v2221_v7 = vsub.f32 %v8319_v8, %v6437_v4 }
 0x876   : > { %v2401_v29 = vadd.f32 %v6470_v0, %v2400_v40  ;;  %v6541_v40 = vpop.eup %4786  ;;  %4800 = vpow2.f32 %v2284_v49  ;;  %v2296_v49 = vmul.f32 1.442695, %v2213_v24  ;;  %2534 = vmatpush.bf16.msra.mxu3 %v2490_v15 }
 0x877   : > { %v6547_v41 = vpop.eup %4788  ;;  %4802 = vpow2.f32 %v2350_v51  ;;  %v2219_v51 = vsub.f32 %v6217_v6, %v6437_v4  ;;  %v2223_v6 = vsub.f32 %v6227_v63, %v6437_v4 }
 0x878   : > { %v2402_v13 = vadd.f32 %v6475_v37, %v2401_v29  ;;  %v2215_v29 = vsub.f32 %v6205_v43, %v6437_v4  ;;  %v6553_v60 = vpop.eup %4790  ;;  %v8318_v43 = vld [vmem:[#allocation23_spill] sm:$0xff]  ;;  %4804 = vpow2.f32 %v2288_v11 }
 0x879   : > { %v6558_v1 = vpop.eup %4792  ;;  %v2217_v42 = vsub.f32 %v8318_v43, %v6437_v4  ;;  %4806 = vpow2.f32 %v2292_v39  ;;  %v2488_v24 = vpack.c.bf16 %v6553_v60, %v6541_v40  ;;  %v8320_v39 = vld [vmem:[#allocation7_spill] sm:$0xff] }
 0x87a   : > { %v2403_v23 = vadd.f32 %v6479_v27, %v2402_v13  ;;  %v2425_v13 = vadd.f32 %v6547_v41, %v2424_v47  ;;  %v4795_v19 = vpop.eup %4794  ;;  %v2472_v47 = vpack.c.bf16 %v6448_v9, %v6443_v54  ;;  %v2300_v11 = vmul.f32 1.442695, %v2215_v29 }
 0x87b   : > { %v6569_v21 = vpop.eup %4796  ;;  %v2227_v29 = vsub.f32 %v6237_v61, %v6437_v4  ;;  %v2229_v8 = vsub.f32 %v8320_v39, %v6437_v4  ;;  %4808 = vpow2.f32 %v2296_v49  ;;  %v2304_v43 = vmul.f32 1.442695, %v2217_v42  ;;  %2535 = vmatpush.bf16.msra.mxu3 %v2488_v24 }
 0x87c   : > { %v2404_v16 = vadd.f32 %v6484_v26, %v2403_v23  ;;  %v2426_v23 = vadd.f32 %v6558_v1, %v2425_v13  ;;  %v4799_v15 = vpop.eup %4798  ;;  %v2225_v13 = vsub.f32 %v6233_v5, %v6437_v4  ;;  %2516 = vmatpush.bf16.msra.mxu2 %v2472_v47  ;;  %v2231_v5 = vsub.f32 %v6245_v14, %v6437_v4 }
 0x87d   : > { %v6581_v9 = vpop.eup %4800  ;;  %v2470_v47 = vpack.c.bf16 %v6439_v35, %v6434_v30  ;;  %v2233_v61 = vsub.f32 %v6249_v38, %v6437_v4  ;;  %4810 = vpow2.f32 %v2300_v11  ;;  %v2308_v49 = vmul.f32 1.442695, %v2219_v51  ;;  %v8321_v30 = vld [vmem:[#allocation42_spill] sm:$0xff] }
 0x87e   : > { %v2405_v62 = vadd.f32 %v6488_v22, %v2404_v16  ;;  %v2427_v54 = vadd.f32 %v6569_v21, %v2426_v23  ;;  %v2486_v42 = vpack.c.bf16 %v4799_v15, %v4795_v19  ;;  %v2312_v39 = vmul.f32 1.442695, %v2221_v7 }
 0x87f   : > { %4812 = vpow2.f32 %v2304_v43  ;;  %v2316_v38 = vmul.f32 1.442695, %v2223_v6  ;;  %v2320_v11 = vmul.f32 1.442695, %v2225_v13  ;;  %v2468_v7 = vpack.c.bf16 %v6428_v18, %v6421_v58 }
 0x880   : > { %v2406_v16 = vadd.f32 %v6493_v33, %v2405_v62  ;;  %v4803_v62 = vpop.eup %4802  ;;  %v2428_v23 = vadd.f32 %v6581_v9, %v2427_v54  ;;  %2517 = vmatpush.bf16.msra.mxu2 %v2470_v47  ;;  %2536 = vmatpush.bf16.msra.mxu3 %v2486_v42  ;;  %v2251_v47 = vsub.f32 %v6303_v20, %v6437_v4  ;;  %4814 = vpow2.f32 %v2308_v49 }
 0x881   : > { %v6593_v10 = vpop.eup %4804  ;;  %v2257_v35 = vsub.f32 %v6356_v45, %v6437_v4  ;;  %v2484_v48 = vpack.c.bf16 %v4803_v62, %v6497_v57  ;;  %4816 = vpow2.f32 %v2312_v39  ;;  %v2253_v58 = vsub.f32 %v6324_v55, %v6437_v4 }
 0x882   : > { %v2407_v63 = vadd.f32 %v6497_v57, %v2406_v16  ;;  %v2235_v16 = vsub.f32 %v6253_v31, %v6437_v4  ;;  %v2429_v14 = vadd.f32 %v6593_v10, %v2428_v23  ;;  %v6600_v54 = vpop.eup %4806  ;;  %4818 = vpow2.f32 %v2316_v38 }
 0x883   : > { %v6609_v23 = vpop.eup %4808  ;;  %v2328_v18 = vmul.f32 1.442695, %v2229_v8  ;;  %v2380_v20 = vmul.f32 1.442695, %v2255_v2  ;;  %4820 = vpow2.f32 %v2320_v11  ;;  %v2247_v55 = vsub.f32 %v8300_v25, %v6437_v4 }
 0x884   : > { %v2408_v24 = vadd.f32 %v4803_v62, %v2407_v63  ;;  %v2430_v63 = vadd.f32 %v6600_v54, %v2429_v14  ;;  %2518 = vmatpush.bf16.msra.mxu2 %v2468_v7  ;;  %v6617_v43 = vpop.eup %4810  ;;  %2537 = vmatpush.bf16.msra.mxu3 %v2484_v48  ;;  %v2239_v62 = vsub.f32 %v6261_v12, %v6437_v4  ;;  %v2384_v49 = vmul.f32 1.442695, %v2257_v35  ;;  %v8322_v35 = vld [vmem:[#allocation4_spill] sm:$0xff]  ;;  %v8323_v7 = vld [vmem:[#allocation5_spill] sm:$0xff]  ;;  %v8325_v48 = vld [vmem:[#allocation2_spill] sm:$0xff] }
 0x885   : > { %v2482_v2 = vpack.c.bf16 %v6493_v33, %v6488_v22  ;;  %v2372_v8 = vmul.f32 1.442695, %v2251_v47  ;;  %v2376_v39 = vmul.f32 1.442695, %v2253_v58  ;;  %v2464_v33 = vpack.c.bf16 %v6400_v50, %v6393_v59 }
 0x886   : > { %v2409_v51 = vadd.f32 %v4795_v19, %v2408_v24  ;;  %v2324_v19 = vmul.f32 1.442695, %v2227_v29  ;;  %v2431_v13 = vadd.f32 %v6609_v23, %v2430_v63  ;;  %v6625_v29 = vpop.eup %4812  ;;  %v2332_v24 = vmul.f32 1.442695, %v2231_v5 }
 0x887   : > { %v2243_v38 = vsub.f32 %v8322_v35, %v6437_v4  ;;  %v2364_v63 = vmul.f32 1.442695, %v2247_v55  ;;  %v2245_v47 = vsub.f32 %v8323_v7, %v6437_v4  ;;  %v2340_v59 = vmul.f32 1.442695, %v2235_v16 }
 0x888   : > { %v2410_v6 = vadd.f32 %v4799_v15, %v2409_v51  ;;  %v2432_v57 = vadd.f32 %v6617_v43, %v2431_v13  ;;  %v2466_v15 = vpack.c.bf16 %v6414_v52, %v6407_v32  ;;  %4822 = vpow2.f32 %v2324_v19  ;;  %v6635_v32 = vpop.eup %4814  ;;  %2538 = vmatpush.bf16.msra.mxu3 %v2482_v2 }
 0x889   : > { %v2249_v52 = vsub.f32 %v6287_v3, %v6437_v4  ;;  %4824 = vpow2.f32 %v2328_v18  ;;  %v4817_v25 = vpop.eup %4816  ;;  %v2336_v51 = vmul.f32 1.442695, %v2233_v61  ;;  %v2480_v3 = vpack.c.bf16 %v6484_v26, %v6479_v27 }
 0x88a   : > { %v2411_v45 = vadd.f32 %v6541_v40, %v2410_v6  ;;  %v2433_v42 = vadd.f32 %v6625_v29, %v2432_v57  ;;  %2519 = vmatpush.bf16.msra.mxu2 %v2466_v15  ;;  %4826 = vpow2.f32 %v2380_v20  ;;  %v8326_v13 = vsub.f32 %v8321_v30, %v6437_v4 }
 0x88b   : > { %4828 = vpow2.f32 %v2384_v49  ;;  %v2368_v50 = vmul.f32 1.442695, %v2249_v52  ;;  %v2478_v16 = vpack.c.bf16 %v6475_v37, %v6470_v0  ;;  %v2356_v20 = vmul.f32 1.442695, %v2243_v38  ;;  %v8329_v0 = vld [vmem:[#allocation3_spill] sm:$0xff] }
 0x88c   : > { %v2412_v40 = vadd.f32 %v6553_v60, %v2411_v45  ;;  %v2434_v22 = vadd.f32 %v6635_v32, %v2433_v42  ;;  %v4819_v60 = vpop.eup %4818  ;;  %4830 = vpow2.f32 %v2372_v8  ;;  %2539 = vmatpush.bf16.msra.mxu3 %v2480_v3  ;;  %v2344_v31 = vmul.f32 1.442695, %v8326_v13  ;;  %v8333_v3 = vld [vmem:[#allocation30_spill] sm:$0xff] }
 0x88d   : > { %v4821_v5 = vpop.eup %4820  ;;  %4832 = vpow2.f32 %v2376_v39  ;;  %v8327_v15 = vunpack.c.l.b16 %v8312_v56  ;;  %v8328_v30 = vunpack.c.l.b16 %v6516_v36  ;;  %v2241_v37 = vsub.f32 %v8329_v0, %v6437_v4 }
 0x88e   : > { %v2413_v14 = vadd.f32 %v6502_v17, %v2412_v40  ;;  %v2435_v17 = vadd.f32 %v4817_v25, %v2434_v22  ;;  %2520 = vmatpush.bf16.msra.mxu2 %v2464_v33  ;;  %v6653_v61 = vpop.eup %4822  ;;  %4834 = vpow2.f32 %v2332_v24  ;;  %v2477_v58 = vpack.c.bf16 %v4821_v5, %v4819_v60 }
 0x88f   : > { %v6658_v19 = vpop.eup %4824  ;;  %4836 = vpow2.f32 %v2336_v51  ;;  %v6676_v55 = vpack.c.b16 %v8328_v30, %v8327_v15  ;;  %v2360_v49 = vmul.f32 1.442695, %v2245_v47  ;;  %v8330_v42 = vunpack.c.h.b16 %v8312_v56  ;;  %v8332_v51 = vld [vmem:[#allocation31_spill] sm:$0xff]  ;;  %v8335_v15 = vld [vmem:[#allocation12_spill] sm:$0xff]  ;;  %v8336_v30 = vld [vmem:[#allocation13_spill] sm:$0xff] }
 0x890   : > { %v2414_v11 = vadd.f32 %v6531_v28, %v2413_v14  ;;  %v2436_v26 = vadd.f32 %v4819_v60, %v2435_v17  ;;  %v8324_v28 = vld [vmem:[#allocation56_spill] sm:$0xff]  ;;  %v6665_v18 = vpop.eup %4826  ;;  %4838 = vpow2.f32 %v2364_v63  ;;  %2540 = vmatpush.bf16.msra.mxu3 %v2478_v16  ;;  %v8331_v52 = vunpack.c.h.b16 %v6516_v36 }
 0x891   : > { %v2462_v6 = vpack.c.bf16 %v8325_v48, %v8324_v28  ;;  %v6670_v57 = vpop.eup %4828  ;;  %4840 = vpow2.f32 %v2368_v50  ;;  %v2348_v39 = vmul.f32 1.442695, %v2239_v62  ;;  %v2475_v14 = vpack.c.bf16 %v4817_v25, %v6635_v32 }
 0x892   : > { %v2415_v27 = vadd.f32 %v6507_v53, %v2414_v11  ;;  %v2437_v45 = vadd.f32 %v4821_v5, %v2436_v26  ;;  %4842 = vpow2.f32 %v2340_v59  ;;  %v2493_v40 = vpack.c.bf16 %v6670_v57, %v6665_v18 }
 0x893   : > { %2521 = vmatpush.bf16.msra.mxu2 %v2462_v6  ;;  %v6691_v24 = vpack.c.b16 %v8331_v52, %v8330_v42  ;;  %4844 = vpow2.f32 %v2344_v31  ;;  %v2352_v36 = vmul.f32 1.442695, %v2241_v37  ;;  %v2473_v32 = vpack.c.bf16 %v6625_v29, %v6617_v43  ;;  %v8334_v29 = vld [vmem:[#allocation29_spill] sm:$0xff] }
 0x894   : > { %v6668_v53 = vadd.f32 %v6512_v44, %v2415_v27  ;;  %v6680_v44 = vpop.eup %4830  ;;  %v2438_v2 = vadd.f32 %v6653_v61, %v2437_v45  ;;  %4846 = vpow2.f32 %v2356_v20  ;;  %2571 = vmatpush.bf16.msrb.mxu3 %v2493_v40  ;;  %v1053_v5 = vpack.c.bf16 %v8333_v3, %v8332_v51  ;;  %v8338_v40 = vld [vmem:[#allocation10_spill] sm:$0xff]  ;;  %v2634_v3 = vpop.trf.xlu2 }
 0x895   : > { %v6685_v8 = vpop.eup %4832  ;;  %4848 = vpow2.f32 %v2360_v49  ;;  %2541 = vmatmul.bf16.vlgmr.msra.gmra.mxu3 %v6691_v24  ;;  %v2471_v47 = vpack.c.bf16 %v6609_v23, %v6600_v54  ;;  %v2502_v50 = vunpack.c.l.b16 %v8334_v29  ;;  %v2503_v6 = vunpack.c.h.b16 %v8334_v29 }
 0x896   : > { %2522 = vmatmul.bf16.vlgmr.msra.gmra.mxu2 %v6676_v55  ;;  %v6698_v22 = vpop.eup %4834  ;;  %v2439_v33 = vadd.f32 %v6658_v19, %v2438_v2  ;;  %v2491_v4 = vpack.c.bf16 %v6685_v8, %v6680_v44  ;;  %4850 = vpow2.f32 %v2348_v39  ;;  %v2504_v27 = vunpack.c.l.b16 %v1053_v5  ;;  %v8337_v2 = vld [vmem:[#allocation9_spill] sm:$0xff] }
 0x897   : > { %2552 = vmatpush.bf16.msrb.mxu2 %v2477_v58  ;;  %v6701_v56 = vpop.eup %4836  ;;  %4852 = vpow2.f32 %v2352_v36  ;;  %v2505_v13 = vunpack.c.h.b16 %v1053_v5  ;;  %v2469_v31 = vpack.c.bf16 %v6593_v10, %v6581_v9  ;;  %v2467_v45 = vpack.c.bf16 %v6569_v21, %v6558_v1  ;;  %v8339_v1 = vld [vmem:[#allocation11_spill] sm:$0xff] }
 0x898   : > { %v4839_v60 = vpop.eup %4838  ;;  %v2440_v12 = vadd.f32 %v6698_v22, %v2439_v33  ;;  %2572 = vmatpush.bf16.msrb.mxu3 %v2491_v4  ;;  %v2508_v54 = vpack.c.b16 %v2504_v27, %v2502_v50  ;;  %v1025_v0 = vpack.c.bf16 %v8336_v30, %v8335_v15  ;;  %v2465_v9 = vpack.c.bf16 %v6547_v41, %v6536_v34  ;;  %v8344_v30 = vld [vmem:[#allocation45_spill] sm:$0xff] }
 0x899   : > { %v4841_v62 = vpop.eup %4840  ;;  %v2509_v20 = vpack.c.b16 %v2505_v13, %v2503_v6  ;;  %v1023_v42 = vpack.c.bf16 %v8338_v40, %v8337_v2  ;;  %v2658_v21 = vunpack.c.l.b16 %v8339_v1  ;;  %v2481_v33 = vpack.c.bf16 %v6701_v56, %v6698_v22  ;;  %v8342_v13 = vld [vmem:[#allocation44_spill] sm:$0xff] }
 0x89a   : > { %v4843_v25 = vpop.eup %4842  ;;  %v2441_v35 = vadd.f32 %v6701_v56, %v2440_v12  ;;  %v2489_v17 = vpack.c.bf16 %v4841_v62, %v4839_v60  ;;  %v2660_v52 = vunpack.c.l.b16 %v1025_v0  ;;  %v2661_v36 = vunpack.c.h.b16 %v1025_v0 }
 0x89b   : > { %2553 = vmatpush.bf16.msrb.mxu2 %v2475_v14  ;;  %v4845_v38 = vpop.eup %4844  ;;  %v2656_v4 = vunpack.c.l.b16 %v1023_v42  ;;  %v2657_v22 = vunpack.c.h.b16 %v1023_v42  ;;  %v8346_v42 = vld [vmem:[#allocation20_spill] sm:$0xff] }
 0x89c   : > { %v4847_v11 = vpop.eup %4846  ;;  %v2442_v63 = vadd.f32 %v4843_v25, %v2441_v35  ;;  %2573 = vmatpush.bf16.msrb.mxu3 %v2489_v17  ;;  %v2483_v10 = vpack.c.bf16 %v4845_v38, %v4843_v25  ;;  %v2664_v34 = vpack.c.b16 %v2660_v52, %v2658_v21 }
 0x89d   : > { %v4849_v7 = vpop.eup %4848 }
 0x89e   : > { %v2443_v59 = vadd.f32 %v4845_v38, %v2442_v63  ;;  %v4851_v43 = vpop.eup %4850  ;;  %v2487_v28 = vpack.c.bf16 %v4849_v7, %v4847_v11 }
 0x89f   : > { %2554 = vmatpush.bf16.msrb.mxu2 %v2473_v32  ;;  %v4853_v48 = vpop.eup %4852  ;;  %v8341_v32 = vld [vmem:[#allocation8_spill] sm:$0xff] }
 0x8a0   : > { %v2444_v26 = vadd.f32 %v4851_v43, %v2443_v59  ;;  %2574 = vmatpush.bf16.msrb.mxu3 %v2487_v28  ;;  %v2485_v58 = vpack.c.bf16 %v4853_v48, %v4851_v43  ;;  %v2654_v25 = vunpack.c.l.b16 %v8341_v32 }
 0x8a2   : > { %v2445_v16 = vadd.f32 %v4853_v48, %v2444_v26  ;;  %v2662_v38 = vpack.c.b16 %v2656_v4, %v2654_v25 }
 0x8a3   : > { %2555 = vmatpush.bf16.msrb.mxu2 %v2471_v47 }
 0x8a4   : > { %v2446_v23 = vadd.f32 %v4847_v11, %v2445_v16  ;;  %2575 = vmatpush.bf16.msrb.mxu3 %v2485_v58  ;;  %v2417_v11 = vrot.slane %v6668_v53, 4 }
 0x8a5   : > { %2546 = vmatmul.bf16.gmra.mxu3 %v2509_v20 }
 0x8a6   : > { %2527 = vmatmul.bf16.gmra.mxu2 %v2508_v54  ;;  %v2447_v37 = vadd.f32 %v4849_v7, %v2446_v23  ;;  %v2418_v63 = vadd.f32 %v2417_v11, %v6668_v53 }
 0x8a7   : > { %2556 = vmatpush.bf16.msrb.mxu2 %v2469_v31 }
 0x8a8   : > { %v2448_v49 = vadd.f32 %v4839_v60, %v2447_v37  ;;  %2576 = vmatpush.bf16.msrb.mxu3 %v2483_v10  ;;  %v8340_v60 = vld [vmem:[#allocation53_spill] sm:$0xff]  ;;  %v2419_v17 = vrot.slane %v2418_v63, 2 }
 0x8a9   : > { %v2463_v12 = vpack.c.bf16 %v8340_v60, %v6520_v46  ;;  %v8348_v60 = vld [vmem:[#allocation22_spill] sm:$0xff] }
 0x8aa   : > { %v2449_v39 = vadd.f32 %v4841_v62, %v2448_v49  ;;  %v2659_v62 = vunpack.c.h.b16 %v8339_v1  ;;  %v2420_v47 = vadd.f32 %v2419_v17, %v2418_v63  ;;  %v8354_v63 = vld [vmem:[#allocation47_spill] sm:$0xff] }
 0x8ab   : > { %2557 = vmatpush.bf16.msrb.mxu2 %v2467_v45 }
 0x8ac   : > { %v2450_v14 = vadd.f32 %v6680_v44, %v2449_v39  ;;  %2577 = vmatpush.bf16.msrb.mxu3 %v2481_v33  ;;  %v2479_v44 = vpack.c.bf16 %v6658_v19, %v6653_v61  ;;  %v2665_v56 = vpack.c.b16 %v2661_v36, %v2659_v62  ;;  %v2421_v59 = vrot.slane %v2420_v47, 1 }
 0x8ae   : > { %v2451_v41 = vadd.f32 %v6685_v8, %v2450_v14  ;;  %v2655_v8 = vunpack.c.h.b16 %v8341_v32  ;;  %v2422_v29 = vadd.f32 %v2421_v59, %v2420_v47 }
 0x8af   : > { %2558 = vmatpush.bf16.msrb.mxu2 %v2465_v9 }
 0x8b0   : > { %v2452_v35 = vadd.f32 %v6665_v18, %v2451_v41  ;;  %2578 = vmatpush.bf16.msrb.mxu3 %v2479_v44  ;;  %v2663_v51 = vpack.c.b16 %v2657_v22, %v2655_v8  ;;  %v6742_v18 = vpop.trf.xlu2  ;;  %4854 = vrcp.f32 %v2422_v29 }
 0x8b2   : > { %v2453_v46 = vadd.f32 %v6670_v57, %v2452_v35  ;;  %v8350_v35 = vld [vmem:[#allocation21_spill] sm:$0xff] }
 0x8b3   : > { %2559 = vmatpush.bf16.msrb.mxu2 %v2463_v12 }
 0x8b4   : > { %2813 = vmatpush.bf16.msra.mxu3 %v2665_v56  ;;  %v2454_v6 = vrot.slane %v2453_v46, 4 }
 0x8b5   : > { %2579 = vmatmul.bf16.vlgmr.msrb.gmra.mxu3 %v6691_v24 }
 0x8b6   : > { %2560 = vmatmul.bf16.vlgmr.msrb.gmra.mxu2 %v6676_v55  ;;  %v4855_v53 = vpop.eup %4854  ;;  %v2455_v23 = vadd.f32 %v2454_v6, %v2453_v46 }
 0x8b7   : > { %2724 = vmatpush.bf16.msra.mxu2 %v2664_v34 }
 0x8b8   : > { %2814 = vmatpush.bf16.msra.mxu3 %v2663_v51  ;;  %v2636_v61 = vpop.trf.xlu2  ;;  %v2456_v15 = vrot.slane %v2455_v23, 2  ;;  %v8352_v51 = vld [vmem:[#allocation46_spill] sm:$0xff] }
 0x8ba   : > { %v2457_v10 = vadd.f32 %v2456_v15, %v2455_v23 }
 0x8bb   : > { %2725 = vmatpush.bf16.msra.mxu2 %v2662_v38 }
 0x8bc   : > { %v2458_v40 = vrot.slane %v2457_v10, 1 }
 0x8be   : > { %v2459_v14 = vadd.f32 %v2458_v40, %v2457_v10 }
 0x8c0   : > { %v6745_v19 = vpop.trf.xlu2  ;;  %4856 = vrcp.f32 %v2459_v14 }
 0x8c5   : > { %2584 = vmatmul.bf16.gmra.mxu3 %v2509_v20 }
 0x8c6   : > { %2565 = vmatmul.bf16.gmra.mxu2 %v2508_v54  ;;  %v4857_v32 = vpop.eup %4856 }
 0x8c8   : > { %v2638_v57 = vpop.trf.xlu2 }
 0x8d0   : > { %v6750_v55 = vpop.trf.xlu2 }
 0x8d5   : > { %4494 = vmatmul.msk.bf16.vlgmr.msra.gmra.mxu3 %vm277_vm0, %v2634_v3 }
 0x8d6   : > { %4478 = vmatmul.msk.bf16.vlgmr.msra.gmra.mxu2 %vm277_vm0, %v2634_v3 }
 0x8d8   : > { %v2640_v5 = vpop.trf.xlu2 }
 0x8e0   : > { %v6754_v24 = vpop.trf.xlu2 }
 0x8e5   : > { %4495 = vmatmul.msk.bf16.gmra.mxu3 %vm277_vm0, %v2636_v61 }
 0x8e6   : > { %4479 = vmatmul.msk.bf16.gmra.mxu2 %vm277_vm0, %v2636_v61 }
 0x8e8   : > { %v2642_v7 = vpop.trf.xlu2 }
 0x8f0   : > { %v6760_v43 = vpop.trf.xlu2 }
 0x8f5   : > { %4496 = vmatmul.msk.bf16.gmra.mxu3 %vm277_vm0, %v2638_v57 }
 0x8f6   : > { %4480 = vmatmul.msk.bf16.gmra.mxu2 %vm277_vm0, %v2638_v57 }
 0x8f8   : > { %v2644_v28 = vpop.trf.xlu2 }
 0x900   : > { %v6768_v45 = vpop.trf.xlu2 }
 0x905   : > { %4497 = vmatmul.msk.bf16.gmra.mxu3 %vm277_vm0, %v2640_v5 }
 0x906   : > { %4481 = vmatmul.msk.bf16.gmra.mxu2 %vm277_vm0, %v2640_v5 }
 0x908   : > { %v2646_v39 = vpop.trf.xlu2 }
 0x910   : > { %v2647_v34 = vpop.trf.xlu2 }
 0x915   : > { %4498 = vmatmul.msk.bf16.gmra.mxu3 %vm277_vm0, %v2642_v7 }
 0x916   : > { %4482 = vmatmul.msk.bf16.gmra.mxu2 %vm277_vm0, %v2642_v7 }
 0x918   : > { %v2542_v27 = vpop.f32.mrf.mxu3  ;;  %v2648_v46 = vpop.trf.xlu2 }
 0x919   : > { %v2523_v50 = vpop.f32.mrf.mxu2 }
 0x91a   : > { %v2543_v26 = vadd.f32 %v2542_v27, %v2523_v50  ;;  %v8356_v50 = vld [vmem:[#allocation48_spill] sm:$0xff] }
 0x91c   : > { %v2590_v48 = vmul.f32 %v4855_v53, %v2543_v26 }
 0x91e   : > { %v6765_v31 = vadd.f32 %v2590_v48, %v8342_v13 }
 0x920   : > { %8343 = vst [vmem:[#allocation54_spill] sm:$0xff] %v6765_v31  ;;  %v2544_v54 = vpop.f32.mrf.mxu3 }
 0x921   : > { %v2525_v16 = vpop.f32.mrf.mxu2 }
 0x922   : > { %v2545_v58 = vadd.f32 %v2544_v54, %v2525_v16 }
 0x924   : > { %v2592_v20 = vmul.f32 %v4855_v53, %v2545_v58 }
 0x925   : > { %4499 = vmatmul.msk.bf16.gmra.mxu3 %vm277_vm0, %v2644_v28 }
 0x926   : > { %4483 = vmatmul.msk.bf16.gmra.mxu2 %vm277_vm0, %v2644_v28  ;;  %v6771_v0 = vadd.f32 %v2592_v20, %v8344_v30 }
 0x928   : > { %8345 = vst [vmem:[#allocation57_spill] sm:$0xff] %v6771_v0  ;;  %v2547_v49 = vpop.f32.mrf.mxu3 }
 0x929   : > { %v2528_v37 = vpop.f32.mrf.mxu2 }
 0x92a   : > { %v2548_v9 = vadd.f32 %v2547_v49, %v2528_v37 }
 0x92c   : > { %v2594_v2 = vmul.f32 %v4855_v53, %v2548_v9 }
 0x92e   : > { %v6775_v52 = vadd.f32 %v2594_v2, %v8346_v42 }
 0x930   : > { %8347 = vst [vmem:[#allocation59_spill] sm:$0xff] %v6775_v52  ;;  %v2549_v21 = vpop.f32.mrf.mxu3 }
 0x931   : > { %v2530_v1 = vpop.f32.mrf.mxu2 }
 0x932   : > { %v2550_v33 = vadd.f32 %v2549_v21, %v2530_v1 }
 0x934   : > { %v2596_v36 = vmul.f32 %v4855_v53, %v2550_v33 }
 0x935   : > { %4500 = vmatmul.msk.bf16.gmra.mxu3 %vm277_vm0, %v2646_v39 }
 0x936   : > { %4484 = vmatmul.msk.bf16.gmra.mxu2 %vm277_vm0, %v2646_v39  ;;  %v6779_v12 = vadd.f32 %v2596_v36, %v8348_v60 }
 0x938   : > { %8349 = vst [vmem:[#allocation60_spill] sm:$0xff] %v6779_v12  ;;  %v2580_v41 = vpop.f32.mrf.mxu3 }
 0x939   : > { %v2561_v4 = vpop.f32.mrf.mxu2 }
 0x93a   : > { %v2581_v62 = vadd.f32 %v2580_v41, %v2561_v4 }
 0x93c   : > { %v2591_v25 = vmul.f32 %v4857_v32, %v2581_v62 }
 0x93e   : > { %v6783_v44 = vadd.f32 %v2591_v25, %v8350_v35 }
 0x940   : > { %8351 = vst [vmem:[#allocation52_spill] sm:$0xff] %v6783_v44  ;;  %v2582_v56 = vpop.f32.mrf.mxu3 }
 0x941   : > { %v2563_v22 = vpop.f32.mrf.mxu2 }
 0x942   : > { %v2583_v38 = vadd.f32 %v2582_v56, %v2563_v22 }
 0x944   : > { %v2593_v8 = vmul.f32 %v4857_v32, %v2583_v38 }
 0x945   : > { %4501 = vmatmul.msk.bf16.gmra.mxu3 %vm277_vm0, %v2648_v46 }
 0x946   : > { %4485 = vmatmul.msk.bf16.gmra.mxu2 %vm277_vm0, %v2648_v46  ;;  %v6787_v3 = vadd.f32 %v2593_v8, %v8352_v51 }
 0x948   : > { %8353 = vst [vmem:[#allocation40_spill] sm:$0xff] %v6787_v3  ;;  %v2585_v57 = vpop.f32.mrf.mxu3 }
 0x949   : > { %v2566_v61 = vpop.f32.mrf.mxu2 }
 0x94a   : > { %v2586_v5 = vadd.f32 %v2585_v57, %v2566_v61 }
 0x94c   : > { %v2595_v11 = vmul.f32 %v4857_v32, %v2586_v5 }
 0x94e   : > { %v6791_v17 = vadd.f32 %v2595_v11, %v8354_v63 }
 0x950   : > { %8355 = vst [vmem:[#allocation50_spill] sm:$0xff] %v6791_v17  ;;  %v2587_v47 = vpop.f32.mrf.mxu3 }
 0x951   : > { %v2568_v7 = vpop.f32.mrf.mxu2 }
 0x952   : > { %v2588_v59 = vadd.f32 %v2587_v47, %v2568_v7 }
 0x954   : > { %v2597_v29 = vmul.f32 %v4857_v32, %v2588_v59 }
 0x955   : > { %4502 = vmatmul.msk.bf16.gmra.mxu3 %vm277_vm0, %v6742_v18 }
 0x956   : > { %4486 = vmatmul.msk.bf16.gmra.mxu2 %vm277_vm0, %v6742_v18  ;;  %v6796_v27 = vadd.f32 %v2597_v29, %v8356_v50 }
 0x958   : > { %8357 = vst [vmem:[#allocation55_spill] sm:$0xff] %v6796_v27  ;;  %v6802_v53 = vpop.f32.mrf.mxu3 }
 0x959   : > { %v6800_v26 = vpop.f32.mrf.mxu2 }
 0x960   : > { %v6806_v48 = vpop.f32.mrf.mxu3 }
 0x961   : > { %v6804_v28 = vpop.f32.mrf.mxu2  ;;  %8358 = vst [vmem:[#allocation58_spill] sm:$0xff] %v6806_v48 }
 0x965   : > { %4503 = vmatmul.msk.bf16.gmra.mxu3 %vm277_vm0, %v6745_v19 }
 0x966   : > { %4487 = vmatmul.msk.bf16.gmra.mxu2 %vm277_vm0, %v6745_v19 }
 0x968   : > { %v6814_v13 = vpop.f32.mrf.mxu3 }
 0x969   : > { %v6812_v6 = vpop.f32.mrf.mxu2  ;;  %8360 = vst [vmem:[#allocation28_spill] sm:$0xff] %v6814_v13 }
 0x96a   : > { %8359 = vst [vmem:[#allocation26_spill] sm:$0xff] %v6812_v6 }
 0x970   : > { %v6818_v18 = vpop.f32.mrf.mxu3 }
 0x971   : > { %v6816_v16 = vpop.f32.mrf.mxu2  ;;  %8362 = vst [vmem:[#allocation25_spill] sm:$0xff] %v6818_v18 }
 0x972   : > { %8361 = vst [vmem:[#allocation27_spill] sm:$0xff] %v6816_v16  ;;  %v2897_v27 = vmax.f32 %v6804_v28, %v6816_v16 }
 0x975   : > { %4504 = vmatmul.msk.bf16.gmra.mxu3 %vm277_vm0, %v6750_v55 }
 0x976   : > { %4488 = vmatmul.msk.bf16.gmra.mxu2 %vm277_vm0, %v6750_v55 }
 0x978   : > { %v6826_v23 = vpop.f32.mrf.mxu3 }
 0x979   : > { %v6824_v54 = vpop.f32.mrf.mxu2 }
 0x97a   : > { %8363 = vst [vmem:[#allocation24_spill] sm:$0xff] %v6824_v54 }
 0x980   : > { %v6830_v19 = vpop.f32.mrf.mxu3 }
 0x981   : > { %v6828_v58 = vpop.f32.mrf.mxu2 }
 0x982   : > { %8364 = vst [vmem:[#allocation23_spill] sm:$0xff] %v6828_v58  ;;  %v2899_v3 = vmax.f32 %v2897_v27, %v6828_v58 }
 0x985   : > { %4505 = vmatmul.msk.bf16.gmra.mxu3 %vm277_vm0, %v6754_v24 }
 0x986   : > { %4489 = vmatmul.msk.bf16.gmra.mxu2 %vm277_vm0, %v6754_v24 }
 0x988   : > { %v6838_v15 = vpop.f32.mrf.mxu3 }
 0x989   : > { %v6836_v20 = vpop.f32.mrf.mxu2 }
 0x98a   : > { %8365 = vst [vmem:[#allocation6_spill] sm:$0xff] %v6836_v20 }
 0x990   : > { %v6842_v55 = vpop.f32.mrf.mxu3 }
 0x991   : > { %v6840_v30 = vpop.f32.mrf.mxu2  ;;  %8366 = vst [vmem:[#allocation7_spill] sm:$0xff] %v6842_v55 }
 0x992   : > { %v2901_v0 = vmax.f32 %v2899_v3, %v6840_v30 }
 0x995   : > { %4506 = vmatmul.msk.bf16.gmra.mxu3 %vm277_vm0, %v6760_v43 }
 0x996   : > { %4490 = vmatmul.msk.bf16.gmra.mxu2 %vm277_vm0, %v6760_v43 }
 0x998   : > { %v6850_v49 = vpop.f32.mrf.mxu3 }
 0x999   : > { %v6848_v37 = vpop.f32.mrf.mxu2 }
 0x9a0   : > { %v6854_v24 = vpop.f32.mrf.mxu3 }
 0x9a1   : > { %v6852_v10 = vpop.f32.mrf.mxu2  ;;  %8367 = vst [vmem:[#allocation42_spill] sm:$0xff] %v6854_v24 }
 0x9a5   : > { %4507 = vmatmul.msk.bf16.gmra.mxu3 %vm277_vm0, %v6768_v45 }
 0x9a6   : > { %4491 = vmatmul.msk.bf16.gmra.mxu2 %vm277_vm0, %v6768_v45  ;;  %v2649_v45 = vpop.trf.xlu2 }
 0x9a8   : > { %v6862_v2 = vpop.f32.mrf.mxu3 }
 0x9a9   : > { %v6860_v9 = vpop.f32.mrf.mxu2 }
 0x9b0   : > { %v6866_v43 = vpop.f32.mrf.mxu3 }
 0x9b1   : > { %v6864_v40 = vpop.f32.mrf.mxu2  ;;  %8368 = vst [vmem:[#allocation4_spill] sm:$0xff] %v6866_v43 }
 0x9b5   : > { %4508 = vmatmul.msk.bf16.gmra.mxu3 %vm277_vm0, %v2647_v34 }
 0x9b6   : > { %4492 = vmatmul.msk.bf16.gmra.mxu2 %vm277_vm0, %v2647_v34 }
 0x9b8   : > { %v6872_v39 = vpop.f32.mrf.mxu3 }
 0x9b9   : > { %v6870_v42 = vpop.f32.mrf.mxu2 }
 0x9c0   : > { %v6876_v21 = vpop.f32.mrf.mxu3 }
 0x9c1   : > { %v6874_v1 = vpop.f32.mrf.mxu2  ;;  %8369 = vst [vmem:[#allocation5_spill] sm:$0xff] %v6876_v21 }
 0x9c5   : > { %4509 = vmatmul.msk.bf16.gmra.mxu3 %vm277_vm0, %v2649_v45 }
 0x9c6   : > { %4493 = vmatmul.msk.bf16.gmra.mxu2 %vm277_vm0, %v2649_v45  ;;  %v2896_v45 = vmax.f32 %v6800_v26, %v6812_v6 }
 0x9c8   : > { %v6882_v33 = vpop.f32.mrf.mxu3  ;;  %v2898_v17 = vmax.f32 %v2896_v45, %v6824_v54 }
 0x9c9   : > { %v6880_v14 = vpop.f32.mrf.mxu2 }
 0x9ca   : > { %v2900_v52 = vmax.f32 %v2898_v17, %v6836_v20 }
 0x9cc   : > { %v2902_v31 = vmax.f32 %v2900_v52, %v6848_v37 }
 0x9ce   : > { %v2904_v6 = vmax.f32 %v2902_v31, %v6860_v9 }
 0x9d0   : > { %v6886_v60 = vpop.f32.mrf.mxu3  ;;  %v2906_v45 = vmax.f32 %v2904_v6, %v6870_v42  ;;  %v2934_v6 = vmax.f32 %v6806_v48, %v6818_v18 }
 0x9d1   : > { %v6884_v36 = vpop.f32.mrf.mxu2 }
 0x9d2   : > { %v2908_v54 = vmax.f32 %v2906_v45, %v6880_v14 }
 0x9d8   : > { %v6890_v34 = vpop.f32.mrf.mxu3 }
 0x9d9   : > { %v6888_v4 = vpop.f32.mrf.mxu2 }
 0x9da   : > { %v2910_v52 = vmax.f32 %v2908_v54, %v6888_v4  ;;  %v2936_v54 = vmax.f32 %v2934_v6, %v6830_v19 }
 0x9e0   : > { %v6894_v62 = vpop.f32.mrf.mxu3 }
 0x9e1   : > { %v6892_v41 = vpop.f32.mrf.mxu2  ;;  %8370 = vst [vmem:[#allocation56_spill] sm:$0xff] %v6894_v62 }
 0x9e8   : > { %v6898_v25 = vpop.f32.mrf.mxu3 }
 0x9e9   : > { %v6896_v32 = vpop.f32.mrf.mxu2 }
 0x9ea   : > { %v2912_v31 = vmax.f32 %v2910_v52, %v6896_v32 }
 0x9f0   : > { %v6902_v22 = vpop.f32.mrf.mxu3 }
 0x9f1   : > { %v6900_v35 = vpop.f32.mrf.mxu2 }
 0x9f2   : > { %8371 = vst [vmem:[#allocation2_spill] sm:$0xff] %v6900_v35 }
 0x9f8   : > { %v6906_v46 = vpop.f32.mrf.mxu3 }
 0x9f9   : > { %v6904_v56 = vpop.f32.mrf.mxu2 }
 0xa00   : > { %v6910_v8 = vpop.f32.mrf.mxu3 }
 0xa01   : > { %v6908_v38 = vpop.f32.mrf.mxu2  ;;  %8372 = vst [vmem:[#allocation3_spill] sm:$0xff] %v6910_v8 }
 0xa08   : > { %v6914_v61 = vpop.f32.mrf.mxu3 }
 0xa09   : > { %v6912_v51 = vpop.f32.mrf.mxu2 }
 0xa10   : > { %v6918_v5 = vpop.f32.mrf.mxu3 }
 0xa11   : > { %v6916_v57 = vpop.f32.mrf.mxu2  ;;  %8373 = vst [vmem:[#allocation31_spill] sm:$0xff] %v6918_v5 }
 0xa18   : > { %v6922_v63 = vpop.f32.mrf.mxu3 }
 0xa19   : > { %v6920_v11 = vpop.f32.mrf.mxu2  ;;  %8374 = vst [vmem:[#allocation30_spill] sm:$0xff] %v6922_v63 }
 0xa20   : > { %v6926_v47 = vpop.f32.mrf.mxu3 }
 0xa21   : > { %v6924_v7 = vpop.f32.mrf.mxu2  ;;  %8375 = vst [vmem:[#allocation29_spill] sm:$0xff] %v6926_v47 }
 0xa28   : > { %v6930_v29 = vpop.f32.mrf.mxu3 }
 0xa29   : > { %v6928_v59 = vpop.f32.mrf.mxu2  ;;  %8376 = vst [vmem:[#allocation12_spill] sm:$0xff] %v6930_v29  ;;  %v2903_v29 = vmax.f32 %v2901_v0, %v6852_v10 }
 0xa2b   : > { %v2905_v16 = vmax.f32 %v2903_v29, %v6864_v40 }
 0xa2d   : > { %v2907_v27 = vmax.f32 %v2905_v16, %v6874_v1  ;;  %v2914_v16 = vmax.f32 %v2912_v31, %v6904_v56 }
 0xa2f   : > { %v2909_v17 = vmax.f32 %v2907_v27, %v6884_v36  ;;  %v2933_v27 = vmax.f32 %v6802_v53, %v6814_v13 }
 0xa30   : > { %v6940_v44 = vpop.f32.mrf.mxu3 }
 0xa31   : > { %v6932_v50 = vpop.f32.mrf.mxu2  ;;  %v2911_v0 = vmax.f32 %v2909_v17, %v6892_v41  ;;  %v2916_v17 = vmax.f32 %v2914_v16, %v6912_v51 }
 0xa33   : > { %v2913_v3 = vmax.f32 %v2911_v0, %v6900_v35  ;;  %v2935_v0 = vmax.f32 %v2933_v27, %v6826_v23  ;;  %v2938_v35 = vmax.f32 %v2936_v54, %v6842_v55  ;;  %v2918_v18 = vmax.f32 %v2916_v17, %v6920_v11 }
 0xa35   : > { %v2915_v29 = vmax.f32 %v2913_v3, %v6908_v38  ;;  %v2937_v48 = vmax.f32 %v2935_v0, %v6838_v15  ;;  %v2940_v13 = vmax.f32 %v2938_v35, %v6854_v24  ;;  %v2920_v6 = vmax.f32 %v2918_v18, %v6928_v59 }
 0xa37   : > { %v2917_v52 = vmax.f32 %v2915_v29, %v6916_v57  ;;  %v2939_v29 = vmax.f32 %v2937_v48, %v6850_v49  ;;  %v2942_v27 = vmax.f32 %v2940_v13, %v6866_v43 }
 0xa38   : > { %v6956_v20 = vpop.f32.mrf.mxu3 }
 0xa39   : > { %v6942_v12 = vpop.f32.mrf.mxu2  ;;  %v2919_v31 = vmax.f32 %v2917_v52, %v6924_v7  ;;  %v2941_v52 = vmax.f32 %v2939_v29, %v6862_v2  ;;  %v2944_v0 = vmax.f32 %v2942_v27, %v6876_v21 }
 0xa3a   : > { %v2922_v54 = vmax.f32 %v2920_v6, %v6942_v12 }
 0xa3b   : > { %v2921_v16 = vmax.f32 %v2919_v31, %v6932_v50  ;;  %v2943_v31 = vmax.f32 %v2941_v52, %v6872_v39  ;;  %v2946_v48 = vmax.f32 %v2944_v0, %v6886_v60 }
 0xa3d   : > { %v2945_v13 = vmax.f32 %v2943_v31, %v6882_v33  ;;  %v2948_v6 = vmax.f32 %v2946_v48, %v6894_v62 }
 0xa3f   : > { %v2947_v29 = vmax.f32 %v2945_v13, %v6890_v34  ;;  %v2950_v27 = vmax.f32 %v2948_v6, %v6902_v22 }
 0xa40   : > { %v6977_v3 = vpop.f32.mrf.mxu3 }
 0xa41   : > { %v6952_v58 = vpop.f32.mrf.mxu2 }
 0xa42   : > { %v2923_v17 = vmax.f32 %v2921_v16, %v6952_v58 }
 0xa48   : > { %v6997_v43 = vpop.f32.mrf.mxu3 }
 0xa49   : > { %v6966_v45 = vpop.f32.mrf.mxu2 }
 0xa4a   : > { %v2924_v35 = vmax.f32 %v2922_v54, %v6966_v45  ;;  %v2949_v54 = vmax.f32 %v2947_v29, %v6898_v25 }
 0xa4c   : > { %v2951_v0 = vmax.f32 %v2949_v54, %v6906_v46 }
 0xa4e   : > { %v2953_v31 = vmax.f32 %v2951_v0, %v6914_v61 }
 0xa50   : > { %v2955_v13 = vmax.f32 %v2953_v31, %v6922_v63  ;;  %v8382_v63 = vld [vmem:[#allocation6_spill] sm:$0xff] }
 0xa51   : > { %v6987_v55 = vpop.f32.mrf.mxu2 }
 0xa52   : > { %v2925_v18 = vmax.f32 %v2923_v17, %v6987_v55  ;;  %v2952_v17 = vmax.f32 %v2950_v27, %v6910_v8 }
 0xa54   : > { %v2926_v24 = vmax.f32 %v2924_v35, %v2925_v18  ;;  %v2954_v35 = vmax.f32 %v2952_v17, %v6918_v5 }
 0xa56   : > { %v2927_v16 = vrot.slane %v2926_v24, 4  ;;  %v2956_v48 = vmax.f32 %v2954_v35, %v6926_v47  ;;  %v8378_v35 = vld [vmem:[#allocation26_spill] sm:$0xff] }
 0xa58   : > { %v2928_v21 = vmax.f32 %v2926_v24, %v2927_v16  ;;  %v2958_v6 = vmax.f32 %v2956_v48, %v6940_v44  ;;  %v7009_v24 = vpop.f32.mrf.mxu3  ;;  %v8377_v16 = vld [vmem:[#allocation12_spill] sm:$0xff] }
 0xa59   : > { %v2957_v29 = vmax.f32 %v2955_v13, %v8377_v16  ;;  %v8379_v13 = vld [vmem:[#allocation27_spill] sm:$0xff] }
 0xa5a   : > { %v2929_v52 = vrot.slane %v2928_v21, 2  ;;  %v2960_v27 = vmax.f32 %v2958_v6, %v6977_v3 }
 0xa5b   : > { %v2959_v54 = vmax.f32 %v2957_v29, %v6956_v20  ;;  %v8380_v29 = vld [vmem:[#allocation24_spill] sm:$0xff] }
 0xa5c   : > { %v2930_v18 = vmax.f32 %v2928_v21, %v2929_v52  ;;  %v2962_v21 = vmax.f32 %v2960_v27, %v7009_v24 }
 0xa5d   : > { %v2961_v17 = vmax.f32 %v2959_v54, %v6997_v43 }
 0xa5e   : > { %v2931_v62 = vrot.slane %v2930_v18, 1 }
 0xa5f   : > { %v2963_v48 = vmax.f32 %v2961_v17, %v2962_v21 }
 0xa60   : > { %v7013_v8 = vmax.f32 %v2930_v18, %v2931_v62 }
 0xa61   : > { %v2964_v54 = vrot.slane %v2963_v48, 4 }
 0xa62   : > { %v2970_v52 = vsub.f32 %v6800_v26, %v7013_v8  ;;  %v2972_v0 = vsub.f32 %v6804_v28, %v7013_v8  ;;  %v2974_v31 = vsub.f32 %v8378_v35, %v7013_v8  ;;  %v2976_v62 = vsub.f32 %v8379_v13, %v7013_v8  ;;  %v8381_v26 = vld [vmem:[#allocation23_spill] sm:$0xff] }
 0xa63   : > { %v2978_v27 = vsub.f32 %v8380_v29, %v7013_v8  ;;  %v2980_v47 = vsub.f32 %v8381_v26, %v7013_v8  ;;  %v2982_v35 = vsub.f32 %v8382_v63, %v7013_v8  ;;  %v2965_v17 = vmax.f32 %v2963_v48, %v2964_v54 }
 0xa64   : > { %v3034_v18 = vmul.f32 1.442695, %v2970_v52  ;;  %v3038_v6 = vmul.f32 1.442695, %v2972_v0  ;;  %v3042_v5 = vmul.f32 1.442695, %v2974_v31  ;;  %v2984_v52 = vsub.f32 %v6840_v30, %v7013_v8 }
 0xa65   : > { %v3046_v28 = vmul.f32 1.442695, %v2976_v62  ;;  %v3050_v21 = vmul.f32 1.442695, %v2978_v27  ;;  %v3054_v0 = vmul.f32 1.442695, %v2980_v47  ;;  %v2986_v31 = vsub.f32 %v6848_v37, %v7013_v8 }
 0xa66   : > { %4858 = vpow2.f32 %v3034_v18  ;;  %v2988_v62 = vsub.f32 %v6852_v10, %v7013_v8  ;;  %v3058_v63 = vmul.f32 1.442695, %v2982_v35  ;;  %v2966_v48 = vrot.slane %v2965_v17, 2 }
 0xa67   : > { %4860 = vpow2.f32 %v3038_v6  ;;  %v2992_v6 = vsub.f32 %v6864_v40, %v7013_v8  ;;  %v3062_v37 = vmul.f32 1.442695, %v2984_v52  ;;  %v2994_v29 = vsub.f32 %v6870_v42, %v7013_v8 }
 0xa68   : > { %4862 = vpow2.f32 %v3042_v5  ;;  %v2990_v5 = vsub.f32 %v6860_v9, %v7013_v8  ;;  %v3066_v10 = vmul.f32 1.442695, %v2986_v31  ;;  %v2996_v9 = vsub.f32 %v6874_v1, %v7013_v8 }
 0xa69   : > { %4864 = vpow2.f32 %v3046_v28  ;;  %v3070_v26 = vmul.f32 1.442695, %v2988_v62  ;;  %v2998_v28 = vsub.f32 %v6880_v14, %v7013_v8  ;;  %v3000_v42 = vsub.f32 %v6884_v36, %v7013_v8 }
 0xa6a   : > { %4866 = vpow2.f32 %v3050_v21  ;;  %v3074_v35 = vmul.f32 1.442695, %v2990_v5  ;;  %v2967_v21 = vmax.f32 %v2965_v17, %v2966_v48  ;;  %v3002_v31 = vsub.f32 %v6888_v4, %v7013_v8 }
 0xa6b   : > { %4868 = vpow2.f32 %v3054_v0  ;;  %v3078_v0 = vmul.f32 1.442695, %v2992_v6  ;;  %v3082_v1 = vmul.f32 1.442695, %v2994_v29  ;;  %v3004_v14 = vsub.f32 %v6892_v41, %v7013_v8  ;;  %v8385_v6 = vld [vmem:[#allocation2_spill] sm:$0xff] }
 0xa6c   : > { %v7034_v13 = vpop.eup %4858  ;;  %4870 = vpow2.f32 %v3058_v63  ;;  %v3006_v17 = vsub.f32 %v6896_v32, %v7013_v8  ;;  %v3086_v5 = vmul.f32 1.442695, %v2996_v9  ;;  %v3090_v36 = vmul.f32 1.442695, %v2998_v28 }
 0xa6d   : > { %8383 = vst [vmem:[#allocation13_spill] sm:$0xff] %v7034_v13  ;;  %v7038_v18 = vpop.eup %4860  ;;  %4872 = vpow2.f32 %v3062_v37  ;;  %v2968_v48 = vrot.slane %v2967_v21, 1  ;;  %v3008_v37 = vsub.f32 %v8385_v6, %v7013_v8  ;;  %v3094_v29 = vmul.f32 1.442695, %v3000_v42 }
 0xa6e   : > { %8384 = vst [vmem:[#allocation9_spill] sm:$0xff] %v7038_v18  ;;  %v3162_v30 = vadd.f32 %v7038_v18, %v7034_v13  ;;  %v7046_v47 = vpop.eup %4862  ;;  %4874 = vpow2.f32 %v3066_v10  ;;  %v3010_v41 = vsub.f32 %v6904_v56, %v7013_v8  ;;  %v3098_v10 = vmul.f32 1.442695, %v3002_v31 }
 0xa6f   : > { %v7053_v54 = vpop.eup %4864  ;;  %4876 = vpow2.f32 %v3070_v26  ;;  %v3012_v9 = vsub.f32 %v6908_v38, %v7013_v8  ;;  %v3014_v26 = vsub.f32 %v6912_v51, %v7013_v8  ;;  %v3102_v28 = vmul.f32 1.442695, %v3004_v14 }
 0xa70   : > { %v3163_v27 = vadd.f32 %v7046_v47, %v3162_v30  ;;  %v7060_v52 = vpop.eup %4866  ;;  %4878 = vpow2.f32 %v3074_v35  ;;  %v7090_v42 = vmax.f32 %v2967_v21, %v2968_v48  ;;  %v3026_v31 = vsub.f32 %v6942_v12, %v7013_v8 }
 0xa71   : > { %v7067_v63 = vpop.eup %4868  ;;  %4880 = vpow2.f32 %v3078_v0  ;;  %v3110_v38 = vmul.f32 1.442695, %v3008_v37  ;;  %v3030_v51 = vsub.f32 %v6966_v45, %v7013_v8  ;;  %v3032_v21 = vsub.f32 %v6987_v55, %v7013_v8  ;;  %v8386_v37 = vld [vmem:[#allocation58_spill] sm:$0xff] }
 0xa72   : > { %v3164_v40 = vadd.f32 %v7053_v54, %v3163_v27  ;;  %v7074_v4 = vpop.eup %4870  ;;  %4882 = vpow2.f32 %v3082_v1  ;;  %v3122_v12 = vmul.f32 1.442695, %v3014_v26  ;;  %v2971_v45 = vsub.f32 %v6802_v53, %v7090_v42  ;;  %v8387_v26 = vld [vmem:[#allocation28_spill] sm:$0xff] }
 0xa73   : > { %v7081_v27 = vpop.eup %4872  ;;  %4884 = vpow2.f32 %v3086_v5  ;;  %v3118_v5 = vmul.f32 1.442695, %v3012_v9  ;;  %v3146_v6 = vmul.f32 1.442695, %v3026_v31  ;;  %v3028_v55 = vsub.f32 %v6952_v58, %v7013_v8 }
 0xa74   : > { %v3165_v62 = vadd.f32 %v7060_v52, %v3164_v40  ;;  %v7087_v35 = vpop.eup %4874  ;;  %4886 = vpow2.f32 %v3090_v36  ;;  %v3106_v40 = vmul.f32 1.442695, %v3006_v17  ;;  %v3158_v53 = vmul.f32 1.442695, %v3032_v21 }
 0xa75   : > { %v7092_v0 = vpop.eup %4876  ;;  %4888 = vpow2.f32 %v3094_v29  ;;  %v2973_v29 = vsub.f32 %v8386_v37, %v7090_v42  ;;  %v3036_v58 = vmul.f32 1.442695, %v2971_v45  ;;  %v2979_v45 = vsub.f32 %v6826_v23, %v7090_v42 }
 0xa76   : > { %v3166_v30 = vadd.f32 %v7067_v63, %v3165_v62  ;;  %v7096_v1 = vpop.eup %4878  ;;  %4890 = vpow2.f32 %v3098_v10  ;;  %v3114_v62 = vmul.f32 1.442695, %v3010_v41  ;;  %v3154_v10 = vmul.f32 1.442695, %v3030_v51  ;;  %v8388_v51 = vld [vmem:[#allocation25_spill] sm:$0xff] }
 0xa77   : > { %v7101_v17 = vpop.eup %4880  ;;  %4892 = vpow2.f32 %v3102_v28  ;;  %v2975_v28 = vsub.f32 %v8387_v26, %v7090_v42  ;;  %v3020_v23 = vsub.f32 %v6924_v7, %v7013_v8 }
 0xa78   : > { %v3167_v32 = vadd.f32 %v7074_v4, %v3166_v30  ;;  %v7105_v36 = vpop.eup %4882  ;;  %4894 = vpow2.f32 %v3106_v40 }
 0xa79   : > { %v7110_v48 = vpop.eup %4884  ;;  %4896 = vpow2.f32 %v3110_v38  ;;  %v3134_v13 = vmul.f32 1.442695, %v3020_v23 }
 0xa7a   : > { %v3168_v56 = vadd.f32 %v7081_v27, %v3167_v32  ;;  %v7114_v41 = vpop.eup %4886  ;;  %4898 = vpow2.f32 %v3114_v62  ;;  %v2977_v62 = vsub.f32 %v8388_v51, %v7090_v42  ;;  %v2983_v51 = vsub.f32 %v6838_v15, %v7090_v42 }
 0xa7b   : > { %v7119_v9 = vpop.eup %4888  ;;  %4900 = vpow2.f32 %v3118_v5  ;;  %v3024_v5 = vsub.f32 %v6932_v50, %v7013_v8 }
 0xa7c   : > { %v3169_v14 = vadd.f32 %v7087_v35, %v3168_v56  ;;  %v7123_v40 = vpop.eup %4890  ;;  %v3022_v56 = vsub.f32 %v6928_v59, %v7013_v8  ;;  %4902 = vpow2.f32 %v3122_v12 }
 0xa7d   : > { %v7128_v38 = vpop.eup %4892  ;;  %4904 = vpow2.f32 %v3146_v6  ;;  %v3044_v6 = vmul.f32 1.442695, %v2975_v28  ;;  %v3142_v28 = vmul.f32 1.442695, %v3024_v5 }
 0xa7e   : > { %v3170_v30 = vadd.f32 %v7092_v0, %v3169_v14  ;;  %v3040_v14 = vmul.f32 1.442695, %v2973_v29  ;;  %v7132_v21 = vpop.eup %4894  ;;  %4906 = vpow2.f32 %v3154_v10  ;;  %v3018_v29 = vsub.f32 %v6920_v11, %v7013_v8 }
 0xa7f   : > { %v7137_v12 = vpop.eup %4896  ;;  %4908 = vpow2.f32 %v3158_v53  ;;  %v3048_v10 = vmul.f32 1.442695, %v2977_v62  ;;  %v3016_v62 = vsub.f32 %v6916_v57, %v7013_v8  ;;  %v3252_v57 = vpack.c.bf16 %v7119_v9, %v7114_v41 }
 0xa80   : > { %v3171_v32 = vadd.f32 %v7096_v1, %v3170_v30  ;;  %v3150_v30 = vmul.f32 1.442695, %v3028_v55  ;;  %v7141_v37 = vpop.eup %4898  ;;  %4910 = vpow2.f32 %v3036_v58  ;;  %v2981_v55 = vsub.f32 %v6830_v19, %v7090_v42  ;;  %v8392_v58 = vld [vmem:[#allocation7_spill] sm:$0xff] }
 0xa81   : > { %v7146_v50 = vpop.eup %4900  ;;  %4912 = vpow2.f32 %v3040_v14  ;;  %v3052_v19 = vmul.f32 1.442695, %v2979_v45  ;;  %v2985_v15 = vsub.f32 %v8392_v58, %v7090_v42  ;;  %v3126_v58 = vmul.f32 1.442695, %v3016_v62  ;;  %3290 = vmatpush.bf16.msrb.mxu0 %v3252_v57 }
 0xa82   : > { %v3172_v31 = vadd.f32 %v7101_v17, %v3171_v32  ;;  %v3138_v32 = vmul.f32 1.442695, %v3022_v56  ;;  %v7150_v53 = vpop.eup %4902  ;;  %4914 = vpow2.f32 %v3150_v30  ;;  %v8390_v30 = vld [vmem:[#allocation34_spill] sm:$0xff]  ;;  %v3056_v45 = vmul.f32 1.442695, %v2981_v55 }
 0xa83   : > { %v7155_v56 = vpop.eup %4904  ;;  %4916 = vpow2.f32 %v3044_v6 }
 0xa84   : > { %v3173_v59 = vadd.f32 %v7105_v36, %v3172_v31  ;;  %v8389_v31 = vld [vmem:[#allocation32_spill] sm:$0xff]  ;;  %v7160_v14 = vpop.eup %4906  ;;  %4918 = vpow2.f32 %v3138_v32  ;;  %v2987_v32 = vsub.f32 %v6850_v49, %v7090_v42  ;;  %v8394_v49 = vld [vmem:[#allocation42_spill] sm:$0xff] }
 0xa85   : > { %v7165_v5 = vpop.eup %4908  ;;  %4920 = vpow2.f32 %v3048_v10 }
 0xa86   : > { %v3174_v26 = vadd.f32 %v7110_v48, %v3173_v59  ;;  %v3130_v59 = vmul.f32 1.442695, %v3018_v29  ;;  %v7173_v6 = vpop.eup %4910  ;;  %4922 = vpow2.f32 %v3142_v28  ;;  %v3268_v10 = vpack.c.bf16 %v7165_v5, %v7160_v14 }
 0xa87   : > { %v7178_v29 = vpop.eup %4912  ;;  %4924 = vpow2.f32 %v3052_v19  ;;  %v3064_v19 = vmul.f32 1.442695, %v2985_v15  ;;  %v3068_v57 = vmul.f32 1.442695, %v2987_v32 }
 0xa88   : > { %v3175_v11 = vadd.f32 %v7114_v41, %v3174_v26  ;;  %v8391_v26 = vld [vmem:[#allocation33_spill] sm:$0xff]  ;;  %8393 = vst [vmem:[#allocation10_spill] sm:$0xff] %v7178_v29  ;;  %v7184_v55 = vpop.eup %4914  ;;  %4926 = vpow2.f32 %v3130_v59  ;;  %v3199_v28 = vadd.f32 %v7178_v29, %v7173_v6  ;;  %3309 = vmatpush.bf16.msrb.mxu1 %v3268_v10  ;;  %v3031_v29 = vsub.f32 %v6997_v43, %v7090_v42 }
 0xa89   : > { %v7169_v18 = vpack.c.bf16 %v8391_v26, %v8390_v30  ;;  %v7189_v41 = vpop.eup %4916  ;;  %4928 = vpow2.f32 %v3056_v45  ;;  %v3250_v30 = vpack.c.bf16 %v7110_v48, %v7105_v36  ;;  %v3266_v15 = vpack.c.bf16 %v7184_v55, %v7155_v56  ;;  %v8396_v48 = vld [vmem:[#allocation5_spill] sm:$0xff] }
 0xa8a   : > { %v3176_v7 = vadd.f32 %v7119_v9, %v3175_v11  ;;  %v3060_v11 = vmul.f32 1.442695, %v2983_v51  ;;  %v2989_v51 = vsub.f32 %v8394_v49, %v7090_v42  ;;  %4930 = vpow2.f32 %v3134_v13 }
 0xa8b   : > { %v3200_v59 = vadd.f32 %v7189_v41, %v3199_v28  ;;  %3291 = vmatpush.bf16.msrb.mxu0 %v3250_v30  ;;  %v2997_v9 = vsub.f32 %v8396_v48, %v7090_v42 }
 0xa8c   : > { %v3177_v8 = vadd.f32 %v7123_v40, %v3176_v7  ;;  %v7194_v7 = vpop.eup %4918  ;;  %4932 = vpow2.f32 %v3060_v11  ;;  %v3072_v11 = vmul.f32 1.442695, %v2989_v51  ;;  %3310 = vmatpush.bf16.msrb.mxu1 %v3266_v15 }
 0xa8d   : > { %v7200_v26 = vpop.eup %4920  ;;  %4934 = vpow2.f32 %v3126_v58  ;;  %v2995_v58 = vsub.f32 %v6872_v39, %v7090_v42  ;;  %v2999_v39 = vsub.f32 %v6882_v33, %v7090_v42 }
 0xa8e   : > { %v3178_v23 = vadd.f32 %v7128_v38, %v3177_v8  ;;  %v2991_v8 = vsub.f32 %v6862_v2, %v7090_v42  ;;  %v7206_v45 = vpop.eup %4922  ;;  %v8395_v2 = vld [vmem:[#allocation4_spill] sm:$0xff]  ;;  %4936 = vpow2.f32 %v3064_v19 }
 0xa8f   : > { %v7211_v36 = vpop.eup %4924  ;;  %v2993_v32 = vsub.f32 %v8395_v2, %v7090_v42  ;;  %4938 = vpow2.f32 %v3068_v57  ;;  %v3264_v51 = vpack.c.bf16 %v7206_v45, %v7194_v7  ;;  %v8397_v57 = vld [vmem:[#allocation56_spill] sm:$0xff] }
 0xa90   : > { %v3179_v62 = vadd.f32 %v7132_v21, %v3178_v23  ;;  %v3201_v23 = vadd.f32 %v7200_v26, %v3200_v59  ;;  %v4927_v28 = vpop.eup %4926  ;;  %v3248_v59 = vpack.c.bf16 %v7101_v17, %v7096_v1  ;;  %v3076_v19 = vmul.f32 1.442695, %v2991_v8 }
 0xa91   : > { %v7222_v30 = vpop.eup %4928  ;;  %v3003_v8 = vsub.f32 %v6890_v34, %v7090_v42  ;;  %v3005_v48 = vsub.f32 %v8397_v57, %v7090_v42  ;;  %4940 = vpow2.f32 %v3072_v11  ;;  %v3080_v2 = vmul.f32 1.442695, %v2993_v32  ;;  %3311 = vmatpush.bf16.msrb.mxu1 %v3264_v51 }
 0xa92   : > { %v3180_v10 = vadd.f32 %v7137_v12, %v3179_v62  ;;  %v3202_v62 = vadd.f32 %v7211_v36, %v3201_v23  ;;  %v4931_v15 = vpop.eup %4930  ;;  %v3001_v23 = vsub.f32 %v6886_v60, %v7090_v42  ;;  %3292 = vmatpush.bf16.msrb.mxu0 %v3248_v59  ;;  %v3007_v60 = vsub.f32 %v6898_v25, %v7090_v42 }
 0xa93   : > { %v7234_v17 = vpop.eup %4932  ;;  %v3246_v59 = vpack.c.bf16 %v7092_v0, %v7087_v35  ;;  %v3009_v34 = vsub.f32 %v6902_v22, %v7090_v42  ;;  %4942 = vpow2.f32 %v3076_v19  ;;  %v3084_v11 = vmul.f32 1.442695, %v2995_v58  ;;  %v8398_v35 = vld [vmem:[#allocation3_spill] sm:$0xff] }
 0xa94   : > { %v3181_v49 = vadd.f32 %v7141_v37, %v3180_v10  ;;  %v3203_v1 = vadd.f32 %v7222_v30, %v3202_v62  ;;  %v3262_v32 = vpack.c.bf16 %v4931_v15, %v4927_v28  ;;  %v3088_v57 = vmul.f32 1.442695, %v2997_v9 }
 0xa95   : > { %4944 = vpow2.f32 %v3080_v2  ;;  %v3092_v22 = vmul.f32 1.442695, %v2999_v39  ;;  %v3096_v19 = vmul.f32 1.442695, %v3001_v23  ;;  %v3244_v9 = vpack.c.bf16 %v7081_v27, %v7074_v4 }
 0xa96   : > { %v3182_v10 = vadd.f32 %v7146_v50, %v3181_v49  ;;  %v4935_v49 = vpop.eup %4934  ;;  %v3204_v62 = vadd.f32 %v7234_v17, %v3203_v1  ;;  %3293 = vmatpush.bf16.msrb.mxu0 %v3246_v59  ;;  %3312 = vmatpush.bf16.msrb.mxu1 %v3262_v32  ;;  %v3027_v59 = vsub.f32 %v6956_v20, %v7090_v42  ;;  %4946 = vpow2.f32 %v3084_v11 }
 0xa97   : > { %v7246_v13 = vpop.eup %4936  ;;  %v3033_v0 = vsub.f32 %v7009_v24, %v7090_v42  ;;  %v3260_v43 = vpack.c.bf16 %v4935_v49, %v7150_v53  ;;  %4948 = vpow2.f32 %v3088_v57  ;;  %v3029_v4 = vsub.f32 %v6977_v3, %v7090_v42 }
 0xa98   : > { %v3183_v33 = vadd.f32 %v7150_v53, %v3182_v10  ;;  %v3011_v10 = vsub.f32 %v6906_v46, %v7090_v42  ;;  %v3205_v25 = vadd.f32 %v7246_v13, %v3204_v62  ;;  %v7253_v1 = vpop.eup %4938  ;;  %4950 = vpow2.f32 %v3092_v22 }
 0xa99   : > { %v7262_v62 = vpop.eup %4940  ;;  %v3104_v27 = vmul.f32 1.442695, %v3005_v48  ;;  %v3156_v20 = vmul.f32 1.442695, %v3031_v29  ;;  %4952 = vpow2.f32 %v3096_v19  ;;  %v3023_v3 = vsub.f32 %v8377_v16, %v7090_v42 }
 0xa9a   : > { %v3184_v51 = vadd.f32 %v4935_v49, %v3183_v33  ;;  %v3206_v33 = vadd.f32 %v7253_v1, %v3205_v25  ;;  %3294 = vmatpush.bf16.msrb.mxu0 %v3244_v9  ;;  %v7270_v2 = vpop.eup %4942  ;;  %3313 = vmatpush.bf16.msrb.mxu1 %v3260_v43  ;;  %v3015_v49 = vsub.f32 %v6914_v61, %v7090_v42  ;;  %v3160_v11 = vmul.f32 1.442695, %v3033_v0  ;;  %v8399_v0 = vld [vmem:[#allocation30_spill] sm:$0xff]  ;;  %v8400_v9 = vld [vmem:[#allocation29_spill] sm:$0xff] }
 0xa9b   : > { %v3258_v29 = vpack.c.bf16 %v7146_v50, %v7141_v37  ;;  %v3148_v48 = vmul.f32 1.442695, %v3027_v59  ;;  %v3152_v57 = vmul.f32 1.442695, %v3029_v4  ;;  %v3240_v50 = vpack.c.bf16 %v7053_v54, %v7046_v47  ;;  %v8402_v43 = vld [vmem:[#allocation9_spill] sm:$0xff] }
 0xa9c   : > { %v3185_v58 = vadd.f32 %v4927_v28, %v3184_v51  ;;  %v3100_v28 = vmul.f32 1.442695, %v3003_v8  ;;  %v3207_v23 = vadd.f32 %v7262_v62, %v3206_v33  ;;  %v7278_v8 = vpop.eup %4944  ;;  %v3108_v51 = vmul.f32 1.442695, %v3007_v60 }
 0xa9d   : > { %v3019_v22 = vsub.f32 %v8399_v0, %v7090_v42  ;;  %v3140_v33 = vmul.f32 1.442695, %v3023_v3  ;;  %v3021_v59 = vsub.f32 %v8400_v9, %v7090_v42  ;;  %v3116_v47 = vmul.f32 1.442695, %v3011_v10 }
 0xa9e   : > { %v3186_v39 = vadd.f32 %v4931_v15, %v3185_v58  ;;  %v3208_v53 = vadd.f32 %v7270_v2, %v3207_v23  ;;  %v3242_v15 = vpack.c.bf16 %v7067_v63, %v7060_v52  ;;  %4954 = vpow2.f32 %v3100_v28  ;;  %v7288_v52 = vpop.eup %4946  ;;  %3314 = vmatpush.bf16.msrb.mxu1 %v3258_v29 }
 0xa9f   : > { %v3025_v63 = vsub.f32 %v6940_v44, %v7090_v42  ;;  %4956 = vpow2.f32 %v3104_v27  ;;  %v4949_v16 = vpop.eup %4948  ;;  %v3112_v58 = vmul.f32 1.442695, %v3009_v34  ;;  %v3256_v44 = vpack.c.bf16 %v7137_v12, %v7132_v21 }
 0xaa0   : > { %v3187_v24 = vadd.f32 %v7194_v7, %v3186_v39  ;;  %v3209_v32 = vadd.f32 %v7278_v8, %v3208_v53  ;;  %3295 = vmatpush.bf16.msrb.mxu0 %v3242_v15  ;;  %4958 = vpow2.f32 %v3156_v20  ;;  %v8403_v23 = vsub.f32 %v8398_v35, %v7090_v42 }
 0xaa1   : > { %4960 = vpow2.f32 %v3160_v11  ;;  %v3144_v54 = vmul.f32 1.442695, %v3025_v63  ;;  %v3254_v10 = vpack.c.bf16 %v7128_v38, %v7123_v40  ;;  %v3132_v20 = vmul.f32 1.442695, %v3019_v22  ;;  %v8406_v40 = vld [vmem:[#allocation31_spill] sm:$0xff] }
 0xaa2   : > { %v3188_v7 = vadd.f32 %v7206_v45, %v3187_v24  ;;  %v3210_v37 = vadd.f32 %v7288_v52, %v3209_v32  ;;  %v4951_v45 = vpop.eup %4950  ;;  %4962 = vpow2.f32 %v3148_v48  ;;  %3315 = vmatpush.bf16.msrb.mxu1 %v3256_v44  ;;  %v3120_v46 = vmul.f32 1.442695, %v8403_v23  ;;  %v8410_v44 = vld [vmem:[#allocation36_spill] sm:$0xff] }
 0xaa3   : > { %v4953_v60 = vpop.eup %4952  ;;  %4964 = vpow2.f32 %v3152_v57  ;;  %v8404_v15 = vunpack.c.l.b16 %v8389_v31  ;;  %v8405_v35 = vunpack.c.l.b16 %v7169_v18  ;;  %v3017_v38 = vsub.f32 %v8406_v40, %v7090_v42 }
 0xaa4   : > { %v3189_v25 = vadd.f32 %v7155_v56, %v3188_v7  ;;  %v3211_v56 = vadd.f32 %v4949_v16, %v3210_v37  ;;  %3296 = vmatpush.bf16.msrb.mxu0 %v3240_v50  ;;  %v7306_v34 = vpop.eup %4954  ;;  %4966 = vpow2.f32 %v3108_v51  ;;  %v3253_v4 = vpack.c.bf16 %v4953_v60, %v4951_v45 }
 0xaa5   : > { %v7311_v28 = vpop.eup %4956  ;;  %4968 = vpow2.f32 %v3112_v58  ;;  %v7329_v3 = vpack.c.b16 %v8405_v35, %v8404_v15  ;;  %v3136_v11 = vmul.f32 1.442695, %v3021_v59  ;;  %v8407_v32 = vunpack.c.h.b16 %v8389_v31  ;;  %v8409_v58 = vld [vmem:[#allocation37_spill] sm:$0xff]  ;;  %v8412_v15 = vld [vmem:[#allocation18_spill] sm:$0xff]  ;;  %v8413_v35 = vld [vmem:[#allocation19_spill] sm:$0xff] }
 0xaa6   : > { %v3190_v19 = vadd.f32 %v7184_v55, %v3189_v25  ;;  %v3212_v12 = vadd.f32 %v4951_v45, %v3211_v56  ;;  %v8401_v55 = vld [vmem:[#allocation13_spill] sm:$0xff]  ;;  %v7318_v27 = vpop.eup %4958  ;;  %4970 = vpow2.f32 %v3140_v33  ;;  %3316 = vmatpush.bf16.msrb.mxu1 %v3254_v10  ;;  %v8408_v63 = vunpack.c.h.b16 %v7169_v18 }
 0xaa7   : > { %v3238_v39 = vpack.c.bf16 %v8402_v43, %v8401_v55  ;;  %v7323_v53 = vpop.eup %4960  ;;  %4972 = vpow2.f32 %v3144_v54  ;;  %v3124_v57 = vmul.f32 1.442695, %v3015_v49  ;;  %v3251_v25 = vpack.c.bf16 %v4949_v16, %v7288_v52 }
 0xaa8   : > { %v3191_v21 = vadd.f32 %v7160_v14, %v3190_v19  ;;  %v3213_v24 = vadd.f32 %v4953_v60, %v3212_v12  ;;  %4974 = vpow2.f32 %v3116_v47  ;;  %v3269_v7 = vpack.c.bf16 %v7323_v53, %v7318_v27 }
 0xaa9   : > { %3297 = vmatpush.bf16.msrb.mxu0 %v3238_v39  ;;  %v7344_v51 = vpack.c.b16 %v8408_v63, %v8407_v32  ;;  %4976 = vpow2.f32 %v3120_v46  ;;  %v3128_v18 = vmul.f32 1.442695, %v3017_v38  ;;  %v3249_v52 = vpack.c.bf16 %v7278_v8, %v7270_v2  ;;  %v8411_v8 = vld [vmem:[#allocation35_spill] sm:$0xff] }
 0xaaa   : > { %v7321_v14 = vadd.f32 %v7165_v5, %v3191_v21  ;;  %v7333_v5 = vpop.eup %4962  ;;  %v3214_v29 = vadd.f32 %v7306_v34, %v3213_v24  ;;  %4978 = vpow2.f32 %v3132_v20  ;;  %3347 = vmatpush.bf16.msra.mxu1 %v3269_v7  ;;  %v1057_v60 = vpack.c.bf16 %v8410_v44, %v8409_v58  ;;  %v8415_v7 = vld [vmem:[#allocation16_spill] sm:$0xff]  ;;  %v3410_v44 = vpop.trf.xlu0 }
 0xaab   : > { %v7338_v48 = vpop.eup %4964  ;;  %4980 = vpow2.f32 %v3136_v11  ;;  %3317 = vmatmul.bf16.vlgmr.msrb.gmra.mxu1 %v7344_v51  ;;  %v3247_v59 = vpack.c.bf16 %v7262_v62, %v7253_v1  ;;  %v3278_v54 = vunpack.c.l.b16 %v8411_v8  ;;  %v3279_v39 = vunpack.c.h.b16 %v8411_v8 }
 0xaac   : > { %3298 = vmatmul.bf16.vlgmr.msrb.gmra.mxu0 %v7329_v3  ;;  %v7351_v37 = vpop.eup %4966  ;;  %v3215_v50 = vadd.f32 %v7311_v28, %v3214_v29  ;;  %v3267_v42 = vpack.c.bf16 %v7338_v48, %v7333_v5  ;;  %4982 = vpow2.f32 %v3124_v57  ;;  %v3280_v21 = vunpack.c.l.b16 %v1057_v60  ;;  %v8414_v29 = vld [vmem:[#allocation15_spill] sm:$0xff] }
 0xaad   : > { %3328 = vmatpush.bf16.msra.mxu0 %v3253_v4  ;;  %v7354_v31 = vpop.eup %4968  ;;  %4984 = vpow2.f32 %v3128_v18  ;;  %v3281_v23 = vunpack.c.h.b16 %v1057_v60  ;;  %v3245_v46 = vpack.c.bf16 %v7246_v13, %v7234_v17  ;;  %v3243_v24 = vpack.c.bf16 %v7222_v30, %v7211_v36  ;;  %v8416_v36 = vld [vmem:[#allocation17_spill] sm:$0xff] }
 0xaae   : > { %v4971_v45 = vpop.eup %4970  ;;  %v3216_v61 = vadd.f32 %v7351_v37, %v3215_v50  ;;  %3348 = vmatpush.bf16.msra.mxu1 %v3267_v42  ;;  %v3284_v1 = vpack.c.b16 %v3280_v21, %v3278_v54  ;;  %v1029_v40 = vpack.c.bf16 %v8413_v35, %v8412_v15  ;;  %v3241_v17 = vpack.c.bf16 %v7200_v26, %v7189_v41  ;;  %v8421_v15 = vld [vmem:[#allocation57_spill] sm:$0xff] }
 0xaaf   : > { %v4973_v49 = vpop.eup %4972  ;;  %v3285_v20 = vpack.c.b16 %v3281_v23, %v3279_v39  ;;  %v1027_v32 = vpack.c.bf16 %v8415_v7, %v8414_v29  ;;  %v3434_v30 = vunpack.c.l.b16 %v8416_v36  ;;  %v3257_v50 = vpack.c.bf16 %v7354_v31, %v7351_v37  ;;  %v8419_v39 = vld [vmem:[#allocation54_spill] sm:$0xff] }
 0xab0   : > { %v4975_v16 = vpop.eup %4974  ;;  %v3217_v0 = vadd.f32 %v7354_v31, %v3216_v61  ;;  %v3265_v56 = vpack.c.bf16 %v4973_v49, %v4971_v45  ;;  %v3436_v63 = vunpack.c.l.b16 %v1029_v40  ;;  %v3437_v18 = vunpack.c.h.b16 %v1029_v40 }
 0xab1   : > { %3329 = vmatpush.bf16.msra.mxu0 %v3251_v25  ;;  %v4977_v22 = vpop.eup %4976  ;;  %v3432_v42 = vunpack.c.l.b16 %v1027_v32  ;;  %v3433_v37 = vunpack.c.h.b16 %v1027_v32  ;;  %v8423_v32 = vld [vmem:[#allocation59_spill] sm:$0xff] }
 0xab2   : > { %v4979_v19 = vpop.eup %4978  ;;  %v3218_v33 = vadd.f32 %v4975_v16, %v3217_v0  ;;  %3349 = vmatpush.bf16.msra.mxu1 %v3265_v56  ;;  %v3259_v13 = vpack.c.bf16 %v4977_v22, %v4975_v16  ;;  %v3440_v41 = vpack.c.b16 %v3436_v63, %v3434_v30 }
 0xab3   : > { %v4981_v9 = vpop.eup %4980 }
 0xab4   : > { %v3219_v47 = vadd.f32 %v4977_v22, %v3218_v33  ;;  %v4983_v2 = vpop.eup %4982  ;;  %v3263_v55 = vpack.c.bf16 %v4981_v9, %v4979_v19 }
 0xab5   : > { %3330 = vmatpush.bf16.msra.mxu0 %v3249_v52  ;;  %v4985_v43 = vpop.eup %4984  ;;  %v8418_v52 = vld [vmem:[#allocation14_spill] sm:$0xff] }
 0xab6   : > { %v3220_v12 = vadd.f32 %v4983_v2, %v3219_v47  ;;  %3350 = vmatpush.bf16.msra.mxu1 %v3263_v55  ;;  %v3261_v4 = vpack.c.bf16 %v4985_v43, %v4983_v2  ;;  %v3430_v16 = vunpack.c.l.b16 %v8418_v52 }
 0xab8   : > { %v3221_v10 = vadd.f32 %v4985_v43, %v3220_v12  ;;  %v3438_v22 = vpack.c.b16 %v3432_v42, %v3430_v16 }
 0xab9   : > { %3331 = vmatpush.bf16.msra.mxu0 %v3247_v59 }
 0xaba   : > { %v3222_v62 = vadd.f32 %v4979_v19, %v3221_v10  ;;  %3351 = vmatpush.bf16.msra.mxu1 %v3261_v4 }
 0xabb   : > { %3322 = vmatmul.bf16.gmra.mxu1 %v3285_v20 }
 0xabc   : > { %3303 = vmatmul.bf16.gmra.mxu0 %v3284_v1  ;;  %v3223_v38 = vadd.f32 %v4981_v9, %v3222_v62 }
 0xabd   : > { %3332 = vmatpush.bf16.msra.mxu0 %v3245_v46 }
 0xabe   : > { %v3224_v11 = vadd.f32 %v4971_v45, %v3223_v38  ;;  %3352 = vmatpush.bf16.msra.mxu1 %v3259_v13  ;;  %v8417_v45 = vld [vmem:[#allocation10_spill] sm:$0xff] }
 0xabf   : > { %v3239_v61 = vpack.c.bf16 %v8417_v45, %v7173_v6  ;;  %v8425_v45 = vld [vmem:[#allocation60_spill] sm:$0xff] }
 0xac0   : > { %v3225_v57 = vadd.f32 %v4973_v49, %v3224_v11  ;;  %v3435_v49 = vunpack.c.h.b16 %v8416_v36 }
 0xac1   : > { %3333 = vmatpush.bf16.msra.mxu0 %v3243_v24 }
 0xac2   : > { %v3226_v25 = vadd.f32 %v7333_v5, %v3225_v57  ;;  %3353 = vmatpush.bf16.msra.mxu1 %v3257_v50  ;;  %v3255_v5 = vpack.c.bf16 %v7311_v28, %v7306_v34  ;;  %v3441_v31 = vpack.c.b16 %v3437_v18, %v3435_v49 }
 0xac4   : > { %v3227_v26 = vadd.f32 %v7338_v48, %v3226_v25  ;;  %v3431_v48 = vunpack.c.h.b16 %v8418_v52 }
 0xac5   : > { %3334 = vmatpush.bf16.msra.mxu0 %v3241_v17 }
 0xac6   : > { %v3228_v0 = vadd.f32 %v7318_v27, %v3227_v26  ;;  %3354 = vmatpush.bf16.msra.mxu1 %v3255_v5  ;;  %v3439_v58 = vpack.c.b16 %v3433_v37, %v3431_v48  ;;  %v7395_v27 = vpop.trf.xlu0  ;;  %v8429_v48 = vld [vmem:[#allocation40_spill] sm:$0xff] }
 0xac8   : > { %v3229_v6 = vadd.f32 %v7323_v53, %v3228_v0  ;;  %v8427_v0 = vld [vmem:[#allocation52_spill] sm:$0xff] }
 0xac9   : > { %3335 = vmatpush.bf16.msra.mxu0 %v3239_v61 }
 0xaca   : > { %3589 = vmatpush.bf16.msrb.mxu1 %v3441_v31  ;;  %v3230_v43 = vrot.slane %v3229_v6, 4 }
 0xacb   : > { %3355 = vmatmul.bf16.vlgmr.msra.gmra.mxu1 %v7344_v51  ;;  %v3193_v51 = vrot.slane %v7321_v14, 4 }
 0xacc   : > { %3336 = vmatmul.bf16.vlgmr.msra.gmra.mxu0 %v7329_v3  ;;  %v3231_v62 = vadd.f32 %v3230_v43, %v3229_v6 }
 0xacd   : > { %3500 = vmatpush.bf16.msrb.mxu0 %v3440_v41  ;;  %v3194_v19 = vadd.f32 %v3193_v51, %v7321_v14 }
 0xace   : > { %3590 = vmatpush.bf16.msrb.mxu1 %v3439_v58  ;;  %v3412_v34 = vpop.trf.xlu0  ;;  %v3232_v24 = vrot.slane %v3231_v62, 2 }
 0xacf   : > { %v3195_v56 = vrot.slane %v3194_v19, 2 }
 0xad0   : > { %v3233_v11 = vadd.f32 %v3232_v24, %v3231_v62 }
 0xad1   : > { %3501 = vmatpush.bf16.msrb.mxu0 %v3438_v22  ;;  %v3196_v9 = vadd.f32 %v3195_v56, %v3194_v19  ;;  %v8431_v19 = vld [vmem:[#allocation50_spill] sm:$0xff] }
 0xad2   : > { %v3234_v7 = vrot.slane %v3233_v11, 1 }
 0xad3   : > { %v3197_v47 = vrot.slane %v3196_v9, 1 }
 0xad4   : > { %v3235_v30 = vadd.f32 %v3234_v7, %v3233_v11 }
 0xad5   : > { %v3198_v2 = vadd.f32 %v3197_v47, %v3196_v9 }
 0xad6   : > { %v7398_v28 = vpop.trf.xlu0 }
 0xad7   : > { %4986 = vrcp.f32 %v3198_v2 }
 0xad8   : > { %4988 = vrcp.f32 %v3235_v30 }
 0xadb   : > { %3360 = vmatmul.bf16.gmra.mxu1 %v3285_v20 }
 0xadc   : > { %3341 = vmatmul.bf16.gmra.mxu0 %v3284_v1 }
 0xadd   : > { %v4987_v14 = vpop.eup %4986 }
 0xade   : > { %v3414_v53 = vpop.trf.xlu0  ;;  %v4989_v49 = vpop.eup %4988 }
 0xae6   : > { %v7403_v3 = vpop.trf.xlu0 }
 0xaeb   : > { %4526 = vmatmul.msk.bf16.vlgmr.msrb.gmra.mxu1 %vm277_vm0, %v3410_v44 }
 0xaec   : > { %4510 = vmatmul.msk.bf16.vlgmr.msrb.gmra.mxu0 %vm277_vm0, %v3410_v44 }
 0xaee   : > { %v3416_v60 = vpop.trf.xlu0 }
 0xaf6   : > { %v7409_v33 = vpop.trf.xlu0 }
 0xafb   : > { %4527 = vmatmul.msk.bf16.gmra.mxu1 %vm277_vm0, %v3412_v34 }
 0xafc   : > { %4511 = vmatmul.msk.bf16.gmra.mxu0 %vm277_vm0, %v3412_v34 }
 0xafe   : > { %v3418_v59 = vpop.trf.xlu0 }
 0xb06   : > { %v7413_v8 = vpop.trf.xlu0 }
 0xb0b   : > { %4528 = vmatmul.msk.bf16.gmra.mxu1 %vm277_vm0, %v3414_v53 }
 0xb0c   : > { %4512 = vmatmul.msk.bf16.gmra.mxu0 %vm277_vm0, %v3414_v53 }
 0xb0e   : > { %v3420_v10 = vpop.trf.xlu0 }
 0xb16   : > { %v7424_v17 = vpop.trf.xlu0 }
 0xb1b   : > { %4529 = vmatmul.msk.bf16.gmra.mxu1 %vm277_vm0, %v3416_v60 }
 0xb1c   : > { %4513 = vmatmul.msk.bf16.gmra.mxu0 %vm277_vm0, %v3416_v60 }
 0xb1e   : > { %v3422_v18 = vpop.trf.xlu0 }
 0xb26   : > { %v3423_v16 = vpop.trf.xlu0 }
 0xb28   : > { %v3318_v21 = vpop.f32.mrf.mxu1 }
 0xb29   : > { %v3299_v54 = vpop.f32.mrf.mxu0 }
 0xb2a   : > { %v3319_v12 = vadd.f32 %v3318_v21, %v3299_v54  ;;  %v8433_v54 = vld [vmem:[#allocation55_spill] sm:$0xff] }
 0xb2b   : > { %4530 = vmatmul.msk.bf16.gmra.mxu1 %vm277_vm0, %v3418_v59 }
 0xb2c   : > { %4514 = vmatmul.msk.bf16.gmra.mxu0 %vm277_vm0, %v3418_v59  ;;  %v3366_v55 = vmul.f32 %v4987_v14, %v3319_v12 }
 0xb2e   : > { %v7418_v23 = vadd.f32 %v3366_v55, %v8419_v39  ;;  %v3424_v34 = vpop.trf.xlu0 }
 0xb30   : > { %8420 = vst [vmem:[#allocation11_spill] sm:$0xff] %v7418_v23  ;;  %v3320_v1 = vpop.f32.mrf.mxu1 }
 0xb31   : > { %v3301_v46 = vpop.f32.mrf.mxu0 }
 0xb32   : > { %v3321_v4 = vadd.f32 %v3320_v1, %v3301_v46 }
 0xb34   : > { %v3368_v20 = vmul.f32 %v4987_v14, %v3321_v4 }
 0xb36   : > { %v7421_v35 = vadd.f32 %v3368_v20, %v8421_v15 }
 0xb38   : > { %8422 = vst [vmem:[#allocation53_spill] sm:$0xff] %v7421_v35  ;;  %v3323_v38 = vpop.f32.mrf.mxu1 }
 0xb39   : > { %v3304_v40 = vpop.f32.mrf.mxu0 }
 0xb3a   : > { %v3324_v13 = vadd.f32 %v3323_v38, %v3304_v40 }
 0xb3b   : > { %4531 = vmatmul.msk.bf16.gmra.mxu1 %vm277_vm0, %v3420_v10 }
 0xb3c   : > { %4515 = vmatmul.msk.bf16.gmra.mxu0 %vm277_vm0, %v3420_v10  ;;  %v3370_v29 = vmul.f32 %v4987_v14, %v3324_v13 }
 0xb3e   : > { %v7428_v63 = vadd.f32 %v3370_v29, %v8423_v32 }
 0xb40   : > { %8424 = vst [vmem:[#allocation8_spill] sm:$0xff] %v7428_v63  ;;  %v3325_v36 = vpop.f32.mrf.mxu1 }
 0xb41   : > { %v3306_v57 = vpop.f32.mrf.mxu0 }
 0xb42   : > { %v3326_v25 = vadd.f32 %v3325_v36, %v3306_v57 }
 0xb44   : > { %v3372_v50 = vmul.f32 %v4987_v14, %v3326_v25 }
 0xb46   : > { %v7431_v61 = vadd.f32 %v3372_v50, %v8425_v45  ;;  %v3425_v50 = vpop.trf.xlu0 }
 0xb48   : > { %8426 = vst [vmem:[#allocation44_spill] sm:$0xff] %v7431_v61  ;;  %v3356_v41 = vpop.f32.mrf.mxu1 }
 0xb49   : > { %v3337_v42 = vpop.f32.mrf.mxu0 }
 0xb4a   : > { %v3357_v26 = vadd.f32 %v3356_v41, %v3337_v42 }
 0xb4b   : > { %4532 = vmatmul.msk.bf16.gmra.mxu1 %vm277_vm0, %v3422_v18 }
 0xb4c   : > { %4516 = vmatmul.msk.bf16.gmra.mxu0 %vm277_vm0, %v3422_v18  ;;  %v3367_v52 = vmul.f32 %v4989_v49, %v3357_v26 }
 0xb4e   : > { %v7436_v5 = vadd.f32 %v3367_v52, %v8427_v0 }
 0xb50   : > { %8428 = vst [vmem:[#allocation45_spill] sm:$0xff] %v7436_v5  ;;  %v3358_v31 = vpop.f32.mrf.mxu1 }
 0xb51   : > { %v3339_v37 = vpop.f32.mrf.mxu0 }
 0xb52   : > { %v3359_v6 = vadd.f32 %v3358_v31, %v3339_v37 }
 0xb54   : > { %v3369_v22 = vmul.f32 %v4989_v49, %v3359_v6 }
 0xb56   : > { %v7439_v58 = vadd.f32 %v3369_v22, %v8429_v48 }
 0xb58   : > { %8430 = vst [vmem:[#allocation20_spill] sm:$0xff] %v7439_v58  ;;  %v3361_v53 = vpop.f32.mrf.mxu1 }
 0xb59   : > { %v3342_v44 = vpop.f32.mrf.mxu0 }
 0xb5a   : > { %v3362_v60 = vadd.f32 %v3361_v53, %v3342_v44 }
 0xb5b   : > { %4533 = vmatmul.msk.bf16.gmra.mxu1 %vm277_vm0, %v3424_v34 }
 0xb5c   : > { %4517 = vmatmul.msk.bf16.gmra.mxu0 %vm277_vm0, %v3424_v34  ;;  %v3371_v51 = vmul.f32 %v4989_v49, %v3362_v60 }
 0xb5e   : > { %v7444_v56 = vadd.f32 %v3371_v51, %v8431_v19 }
 0xb60   : > { %8432 = vst [vmem:[#allocation22_spill] sm:$0xff] %v7444_v56  ;;  %v3363_v59 = vpop.f32.mrf.mxu1 }
 0xb61   : > { %v3344_v9 = vpop.f32.mrf.mxu0 }
 0xb62   : > { %v3364_v47 = vadd.f32 %v3363_v59, %v3344_v9 }
 0xb64   : > { %v3373_v2 = vmul.f32 %v4989_v49, %v3364_v47 }
 0xb66   : > { %v7447_v21 = vadd.f32 %v3373_v2, %v8433_v54 }
 0xb68   : > { %8434 = vst [vmem:[#allocation21_spill] sm:$0xff] %v7447_v21  ;;  %v7451_v14 = vpop.f32.mrf.mxu1 }
 0xb69   : > { %v7449_v12 = vpop.f32.mrf.mxu0 }
 0xb6b   : > { %4534 = vmatmul.msk.bf16.gmra.mxu1 %vm277_vm0, %v7395_v27 }
 0xb6c   : > { %4518 = vmatmul.msk.bf16.gmra.mxu0 %vm277_vm0, %v7395_v27 }
 0xb70   : > { %v7459_v43 = vpop.f32.mrf.mxu1 }
 0xb71   : > { %v7457_v55 = vpop.f32.mrf.mxu0  ;;  %8435 = vst [vmem:[#allocation46_spill] sm:$0xff] %v7459_v43 }
 0xb78   : > { %v7463_v46 = vpop.f32.mrf.mxu1 }
 0xb79   : > { %v7461_v39 = vpop.f32.mrf.mxu0  ;;  %8437 = vst [vmem:[#allocation48_spill] sm:$0xff] %v7463_v46 }
 0xb7a   : > { %8436 = vst [vmem:[#allocation47_spill] sm:$0xff] %v7461_v39 }
 0xb7b   : > { %4535 = vmatmul.msk.bf16.gmra.mxu1 %vm277_vm0, %v7398_v28 }
 0xb7c   : > { %4519 = vmatmul.msk.bf16.gmra.mxu0 %vm277_vm0, %v7398_v28 }
 0xb80   : > { %v7471_v1 = vpop.f32.mrf.mxu1 }
 0xb81   : > { %v7469_v10 = vpop.f32.mrf.mxu0  ;;  %8439 = vst [vmem:[#allocation26_spill] sm:$0xff] %v7471_v1 }
 0xb82   : > { %8438 = vst [vmem:[#allocation12_spill] sm:$0xff] %v7469_v10  ;;  %v3673_v21 = vmax.f32 %v7457_v55, %v7469_v10 }
 0xb88   : > { %v7475_v27 = vpop.f32.mrf.mxu1 }
 0xb89   : > { %v7473_v62 = vpop.f32.mrf.mxu0 }
 0xb8a   : > { %8440 = vst [vmem:[#allocation27_spill] sm:$0xff] %v7473_v62 }
 0xb8b   : > { %4536 = vmatmul.msk.bf16.gmra.mxu1 %vm277_vm0, %v7403_v3 }
 0xb8c   : > { %4520 = vmatmul.msk.bf16.gmra.mxu0 %vm277_vm0, %v7403_v3 }
 0xb90   : > { %v7483_v20 = vpop.f32.mrf.mxu1 }
 0xb91   : > { %v7481_v4 = vpop.f32.mrf.mxu0 }
 0xb92   : > { %8441 = vst [vmem:[#allocation24_spill] sm:$0xff] %v7481_v4  ;;  %v3675_v58 = vmax.f32 %v3673_v21, %v7481_v4 }
 0xb98   : > { %v7487_v28 = vpop.f32.mrf.mxu1 }
 0xb99   : > { %v7485_v24 = vpop.f32.mrf.mxu0 }
 0xb9a   : > { %8442 = vst [vmem:[#allocation23_spill] sm:$0xff] %v7485_v24 }
 0xb9b   : > { %4537 = vmatmul.msk.bf16.gmra.mxu1 %vm277_vm0, %v7409_v33 }
 0xb9c   : > { %4521 = vmatmul.msk.bf16.gmra.mxu0 %vm277_vm0, %v7409_v33 }
 0xba0   : > { %v7495_v40 = vpop.f32.mrf.mxu1 }
 0xba1   : > { %v7493_v15 = vpop.f32.mrf.mxu0  ;;  %8443 = vst [vmem:[#allocation6_spill] sm:$0xff] %v7495_v40 }
 0xba2   : > { %v3677_v35 = vmax.f32 %v3675_v58, %v7493_v15 }
 0xba8   : > { %v7499_v3 = vpop.f32.mrf.mxu1 }
 0xba9   : > { %v7497_v38 = vpop.f32.mrf.mxu0 }
 0xbab   : > { %4538 = vmatmul.msk.bf16.gmra.mxu1 %vm277_vm0, %v7413_v8 }
 0xbac   : > { %4522 = vmatmul.msk.bf16.gmra.mxu0 %vm277_vm0, %v7413_v8 }
 0xbb0   : > { %v7507_v13 = vpop.f32.mrf.mxu1 }
 0xbb1   : > { %v7505_v11 = vpop.f32.mrf.mxu0  ;;  %8444 = vst [vmem:[#allocation2_spill] sm:$0xff] %v7507_v13 }
 0xbb8   : > { %v7511_v33 = vpop.f32.mrf.mxu1 }
 0xbb9   : > { %v7509_v29 = vpop.f32.mrf.mxu0 }
 0xbbb   : > { %4539 = vmatmul.msk.bf16.gmra.mxu1 %vm277_vm0, %v7424_v17 }
 0xbbc   : > { %4523 = vmatmul.msk.bf16.gmra.mxu0 %vm277_vm0, %v7424_v17 }
 0xbc0   : > { %v7519_v32 = vpop.f32.mrf.mxu1 }
 0xbc1   : > { %v7517_v7 = vpop.f32.mrf.mxu0  ;;  %8445 = vst [vmem:[#allocation58_spill] sm:$0xff] %v7519_v32 }
 0xbc8   : > { %v7523_v8 = vpop.f32.mrf.mxu1 }
 0xbc9   : > { %v7521_v57 = vpop.f32.mrf.mxu0 }
 0xbcb   : > { %4540 = vmatmul.msk.bf16.gmra.mxu1 %vm277_vm0, %v3423_v16 }
 0xbcc   : > { %4524 = vmatmul.msk.bf16.gmra.mxu0 %vm277_vm0, %v3423_v16 }
 0xbd0   : > { %v7529_v30 = vpop.f32.mrf.mxu1 }
 0xbd1   : > { %v7527_v36 = vpop.f32.mrf.mxu0  ;;  %8446 = vst [vmem:[#allocation28_spill] sm:$0xff] %v7529_v30 }
 0xbd8   : > { %v7533_v17 = vpop.f32.mrf.mxu1 }
 0xbd9   : > { %v7531_v25 = vpop.f32.mrf.mxu0 }
 0xbdb   : > { %4541 = vmatmul.msk.bf16.gmra.mxu1 %vm277_vm0, %v3425_v50 }
 0xbdc   : > { %4525 = vmatmul.msk.bf16.gmra.mxu0 %vm277_vm0, %v3425_v50  ;;  %v3672_v50 = vmax.f32 %v7449_v12, %v7461_v39 }
 0xbde   : > { %v3674_v56 = vmax.f32 %v3672_v50, %v7473_v62 }
 0xbe0   : > { %v7539_v45 = vpop.f32.mrf.mxu1  ;;  %v3676_v63 = vmax.f32 %v3674_v56, %v7485_v24 }
 0xbe1   : > { %v7537_v18 = vpop.f32.mrf.mxu0 }
 0xbe2   : > { %v3678_v23 = vmax.f32 %v3676_v63, %v7497_v38 }
 0xbe4   : > { %v3680_v39 = vmax.f32 %v3678_v23, %v7509_v29 }
 0xbe6   : > { %v3682_v50 = vmax.f32 %v3680_v39, %v7521_v57  ;;  %v3710_v39 = vmax.f32 %v7459_v43, %v7471_v1 }
 0xbe8   : > { %v7543_v41 = vpop.f32.mrf.mxu1  ;;  %v3684_v62 = vmax.f32 %v3682_v50, %v7531_v25 }
 0xbe9   : > { %v7541_v42 = vpop.f32.mrf.mxu0 }
 0xbea   : > { %v3686_v63 = vmax.f32 %v3684_v62, %v7541_v42  ;;  %v3712_v62 = vmax.f32 %v3710_v39, %v7483_v20 }
 0xbf0   : > { %v7547_v49 = vpop.f32.mrf.mxu1 }
 0xbf1   : > { %v7545_v26 = vpop.f32.mrf.mxu0  ;;  %8447 = vst [vmem:[#allocation25_spill] sm:$0xff] %v7547_v49 }
 0xbf8   : > { %v7551_v16 = vpop.f32.mrf.mxu1 }
 0xbf9   : > { %v7549_v52 = vpop.f32.mrf.mxu0 }
 0xbfa   : > { %v3688_v23 = vmax.f32 %v3686_v63, %v7549_v52 }
 0xc00   : > { %v7555_v37 = vpop.f32.mrf.mxu1 }
 0xc01   : > { %v7553_v0 = vpop.f32.mrf.mxu0 }
 0xc02   : > { %8448 = vst [vmem:[#allocation32_spill] sm:$0xff] %v7553_v0 }
 0xc08   : > { %v7559_v6 = vpop.f32.mrf.mxu1 }
 0xc09   : > { %v7557_v31 = vpop.f32.mrf.mxu0 }
 0xc10   : > { %v7563_v48 = vpop.f32.mrf.mxu1 }
 0xc11   : > { %v7561_v22 = vpop.f32.mrf.mxu0  ;;  %8449 = vst [vmem:[#allocation34_spill] sm:$0xff] %v7563_v48 }
 0xc18   : > { %v7567_v34 = vpop.f32.mrf.mxu1 }
 0xc19   : > { %v7565_v44 = vpop.f32.mrf.mxu0 }
 0xc20   : > { %v7571_v60 = vpop.f32.mrf.mxu1 }
 0xc21   : > { %v7569_v53 = vpop.f32.mrf.mxu0  ;;  %8450 = vst [vmem:[#allocation33_spill] sm:$0xff] %v7571_v60 }
 0xc28   : > { %v7575_v19 = vpop.f32.mrf.mxu1 }
 0xc29   : > { %v7573_v51 = vpop.f32.mrf.mxu0  ;;  %8451 = vst [vmem:[#allocation7_spill] sm:$0xff] %v7575_v19 }
 0xc30   : > { %v7579_v59 = vpop.f32.mrf.mxu1 }
 0xc31   : > { %v7577_v9 = vpop.f32.mrf.mxu0  ;;  %8452 = vst [vmem:[#allocation42_spill] sm:$0xff] %v7579_v59 }
 0xc38   : > { %v7583_v2 = vpop.f32.mrf.mxu1 }
 0xc39   : > { %v7581_v47 = vpop.f32.mrf.mxu0  ;;  %8453 = vst [vmem:[#allocation4_spill] sm:$0xff] %v7583_v2  ;;  %v3679_v2 = vmax.f32 %v3677_v35, %v7505_v11 }
 0xc3b   : > { %v3681_v10 = vmax.f32 %v3679_v2, %v7517_v7 }
 0xc3d   : > { %v3683_v21 = vmax.f32 %v3681_v10, %v7527_v36  ;;  %v3690_v10 = vmax.f32 %v3688_v23, %v7557_v31 }
 0xc3f   : > { %v3685_v56 = vmax.f32 %v3683_v21, %v7537_v18  ;;  %v3709_v21 = vmax.f32 %v7451_v14, %v7463_v46 }
 0xc40   : > { %v7593_v5 = vpop.f32.mrf.mxu1 }
 0xc41   : > { %v7585_v54 = vpop.f32.mrf.mxu0  ;;  %v3687_v35 = vmax.f32 %v3685_v56, %v7545_v26  ;;  %v3692_v56 = vmax.f32 %v3690_v10, %v7565_v44 }
 0xc43   : > { %v3689_v58 = vmax.f32 %v3687_v35, %v7553_v0  ;;  %v3711_v35 = vmax.f32 %v3709_v21, %v7475_v27  ;;  %v3714_v0 = vmax.f32 %v3712_v62, %v7495_v40  ;;  %v3694_v1 = vmax.f32 %v3692_v56, %v7573_v51 }
 0xc45   : > { %v3691_v2 = vmax.f32 %v3689_v58, %v7561_v22  ;;  %v3713_v43 = vmax.f32 %v3711_v35, %v7487_v28  ;;  %v3716_v46 = vmax.f32 %v3714_v0, %v7507_v13  ;;  %v3696_v39 = vmax.f32 %v3694_v1, %v7581_v47 }
 0xc47   : > { %v3693_v63 = vmax.f32 %v3691_v2, %v7569_v53  ;;  %v3715_v2 = vmax.f32 %v3713_v43, %v7499_v3  ;;  %v3718_v21 = vmax.f32 %v3716_v46, %v7519_v32 }
 0xc48   : > { %v7609_v24 = vpop.f32.mrf.mxu1 }
 0xc49   : > { %v7595_v61 = vpop.f32.mrf.mxu0  ;;  %v3695_v23 = vmax.f32 %v3693_v63, %v7577_v9  ;;  %v3717_v63 = vmax.f32 %v3715_v2, %v7511_v33  ;;  %v3720_v35 = vmax.f32 %v3718_v21, %v7529_v30 }
 0xc4a   : > { %v3698_v62 = vmax.f32 %v3696_v39, %v7595_v61 }
 0xc4b   : > { %v3697_v10 = vmax.f32 %v3695_v23, %v7585_v54  ;;  %v3719_v23 = vmax.f32 %v3717_v63, %v7523_v8  ;;  %v3722_v43 = vmax.f32 %v3720_v35, %v7539_v45 }
 0xc4d   : > { %v3721_v46 = vmax.f32 %v3719_v23, %v7533_v17  ;;  %v3724_v39 = vmax.f32 %v3722_v43, %v7547_v49 }
 0xc4f   : > { %v3723_v2 = vmax.f32 %v3721_v46, %v7543_v41  ;;  %v3726_v21 = vmax.f32 %v3724_v39, %v7555_v37 }
 0xc50   : > { %v7630_v58 = vpop.f32.mrf.mxu1 }
 0xc51   : > { %v7605_v4 = vpop.f32.mrf.mxu0 }
 0xc52   : > { %v3699_v56 = vmax.f32 %v3697_v10, %v7605_v4 }
 0xc58   : > { %v7650_v32 = vpop.f32.mrf.mxu1 }
 0xc59   : > { %v7619_v50 = vpop.f32.mrf.mxu0 }
 0xc5a   : > { %v3700_v0 = vmax.f32 %v3698_v62, %v7619_v50  ;;  %v3725_v62 = vmax.f32 %v3723_v2, %v7551_v16 }
 0xc5c   : > { %v3727_v35 = vmax.f32 %v3725_v62, %v7559_v6 }
 0xc5e   : > { %v3729_v23 = vmax.f32 %v3727_v35, %v7567_v34 }
 0xc60   : > { %v3731_v46 = vmax.f32 %v3729_v23, %v7575_v19  ;;  %v8459_v19 = vld [vmem:[#allocation23_spill] sm:$0xff] }
 0xc61   : > { %v7640_v40 = vpop.f32.mrf.mxu0 }
 0xc62   : > { %v3701_v1 = vmax.f32 %v3699_v56, %v7640_v40  ;;  %v3728_v56 = vmax.f32 %v3726_v21, %v7563_v48 }
 0xc64   : > { %v3702_v13 = vmax.f32 %v3700_v0, %v3701_v1  ;;  %v3730_v0 = vmax.f32 %v3728_v56, %v7571_v60 }
 0xc66   : > { %v3703_v10 = vrot.slane %v3702_v13, 4  ;;  %v3732_v43 = vmax.f32 %v3730_v0, %v7579_v59  ;;  %v8455_v0 = vld [vmem:[#allocation47_spill] sm:$0xff] }
 0xc68   : > { %v3704_v30 = vmax.f32 %v3702_v13, %v3703_v10  ;;  %v3734_v39 = vmax.f32 %v3732_v43, %v7593_v5  ;;  %v7662_v13 = vpop.f32.mrf.mxu1  ;;  %v8454_v10 = vld [vmem:[#allocation4_spill] sm:$0xff] }
 0xc69   : > { %v3733_v2 = vmax.f32 %v3731_v46, %v8454_v10  ;;  %v8456_v46 = vld [vmem:[#allocation12_spill] sm:$0xff] }
 0xc6a   : > { %v3705_v63 = vrot.slane %v3704_v30, 2  ;;  %v3736_v21 = vmax.f32 %v3734_v39, %v7630_v58 }
 0xc6b   : > { %v3735_v62 = vmax.f32 %v3733_v2, %v7609_v24  ;;  %v8457_v2 = vld [vmem:[#allocation27_spill] sm:$0xff] }
 0xc6c   : > { %v3706_v1 = vmax.f32 %v3704_v30, %v3705_v63  ;;  %v3738_v30 = vmax.f32 %v3736_v21, %v7662_v13 }
 0xc6d   : > { %v3737_v56 = vmax.f32 %v3735_v62, %v7650_v32 }
 0xc6e   : > { %v3707_v49 = vrot.slane %v3706_v1, 1 }
 0xc6f   : > { %v3739_v43 = vmax.f32 %v3737_v56, %v3738_v30 }
 0xc70   : > { %v7666_v48 = vmax.f32 %v3706_v1, %v3707_v49 }
 0xc71   : > { %v3740_v62 = vrot.slane %v3739_v43, 4 }
 0xc72   : > { %v3746_v63 = vsub.f32 %v7449_v12, %v7666_v48  ;;  %v3748_v35 = vsub.f32 %v7457_v55, %v7666_v48  ;;  %v3750_v23 = vsub.f32 %v8455_v0, %v7666_v48  ;;  %v3752_v49 = vsub.f32 %v8456_v46, %v7666_v48  ;;  %v8458_v12 = vld [vmem:[#allocation24_spill] sm:$0xff] }
 0xc73   : > { %v3754_v21 = vsub.f32 %v8457_v2, %v7666_v48  ;;  %v3756_v59 = vsub.f32 %v8458_v12, %v7666_v48  ;;  %v3758_v0 = vsub.f32 %v8459_v19, %v7666_v48  ;;  %v3741_v56 = vmax.f32 %v3739_v43, %v3740_v62 }
 0xc74   : > { %v3810_v1 = vmul.f32 1.442695, %v3746_v63  ;;  %v3814_v39 = vmul.f32 1.442695, %v3748_v35  ;;  %v3818_v60 = vmul.f32 1.442695, %v3750_v23  ;;  %v3760_v63 = vsub.f32 %v7493_v15, %v7666_v48 }
 0xc75   : > { %v3822_v55 = vmul.f32 1.442695, %v3752_v49  ;;  %v3826_v30 = vmul.f32 1.442695, %v3754_v21  ;;  %v3830_v35 = vmul.f32 1.442695, %v3756_v59  ;;  %v3762_v23 = vsub.f32 %v7497_v38, %v7666_v48 }
 0xc76   : > { %4990 = vpow2.f32 %v3810_v1  ;;  %v3764_v49 = vsub.f32 %v7505_v11, %v7666_v48  ;;  %v3834_v19 = vmul.f32 1.442695, %v3758_v0  ;;  %v3742_v43 = vrot.slane %v3741_v56, 2 }
 0xc77   : > { %4992 = vpow2.f32 %v3814_v39  ;;  %v3768_v39 = vsub.f32 %v7517_v7, %v7666_v48  ;;  %v3838_v38 = vmul.f32 1.442695, %v3760_v63  ;;  %v3770_v2 = vsub.f32 %v7521_v57, %v7666_v48 }
 0xc78   : > { %4994 = vpow2.f32 %v3818_v60  ;;  %v3766_v60 = vsub.f32 %v7509_v29, %v7666_v48  ;;  %v3842_v11 = vmul.f32 1.442695, %v3762_v23  ;;  %v3772_v29 = vsub.f32 %v7527_v36, %v7666_v48 }
 0xc79   : > { %4996 = vpow2.f32 %v3822_v55  ;;  %v3846_v12 = vmul.f32 1.442695, %v3764_v49  ;;  %v3774_v55 = vsub.f32 %v7531_v25, %v7666_v48  ;;  %v3776_v57 = vsub.f32 %v7537_v18, %v7666_v48 }
 0xc7a   : > { %4998 = vpow2.f32 %v3826_v30  ;;  %v3850_v0 = vmul.f32 1.442695, %v3766_v60  ;;  %v3743_v30 = vmax.f32 %v3741_v56, %v3742_v43  ;;  %v3778_v23 = vsub.f32 %v7541_v42, %v7666_v48 }
 0xc7b   : > { %5000 = vpow2.f32 %v3830_v35  ;;  %v3854_v35 = vmul.f32 1.442695, %v3768_v39  ;;  %v3858_v36 = vmul.f32 1.442695, %v3770_v2  ;;  %v3780_v25 = vsub.f32 %v7545_v26, %v7666_v48  ;;  %v8462_v39 = vld [vmem:[#allocation32_spill] sm:$0xff] }
 0xc7c   : > { %v7687_v46 = vpop.eup %4990  ;;  %5002 = vpow2.f32 %v3834_v19  ;;  %v3782_v56 = vsub.f32 %v7549_v52, %v7666_v48  ;;  %v3862_v60 = vmul.f32 1.442695, %v3772_v29  ;;  %v3866_v18 = vmul.f32 1.442695, %v3774_v55 }
 0xc7d   : > { %8460 = vst [vmem:[#allocation5_spill] sm:$0xff] %v7687_v46  ;;  %v7691_v1 = vpop.eup %4992  ;;  %5004 = vpow2.f32 %v3838_v38  ;;  %v3744_v43 = vrot.slane %v3743_v30, 1  ;;  %v3784_v38 = vsub.f32 %v8462_v39, %v7666_v48  ;;  %v3870_v2 = vmul.f32 1.442695, %v3776_v57 }
 0xc7e   : > { %8461 = vst [vmem:[#allocation56_spill] sm:$0xff] %v7691_v1  ;;  %v3938_v15 = vadd.f32 %v7691_v1, %v7687_v46  ;;  %v7699_v59 = vpop.eup %4994  ;;  %5006 = vpow2.f32 %v3842_v11  ;;  %v3786_v26 = vsub.f32 %v7557_v31, %v7666_v48  ;;  %v3874_v11 = vmul.f32 1.442695, %v3778_v23 }
 0xc7f   : > { %v7706_v62 = vpop.eup %4996  ;;  %5008 = vpow2.f32 %v3846_v12  ;;  %v3788_v29 = vsub.f32 %v7561_v22, %v7666_v48  ;;  %v3790_v12 = vsub.f32 %v7565_v44, %v7666_v48  ;;  %v3878_v55 = vmul.f32 1.442695, %v3780_v25 }
 0xc80   : > { %v3939_v21 = vadd.f32 %v7699_v59, %v3938_v15  ;;  %v7713_v63 = vpop.eup %4998  ;;  %5010 = vpow2.f32 %v3850_v0  ;;  %v7743_v57 = vmax.f32 %v3743_v30, %v3744_v43  ;;  %v3802_v23 = vsub.f32 %v7595_v61, %v7666_v48 }
 0xc81   : > { %v7720_v19 = vpop.eup %5000  ;;  %5012 = vpow2.f32 %v3854_v35  ;;  %v3886_v22 = vmul.f32 1.442695, %v3784_v38  ;;  %v3806_v44 = vsub.f32 %v7619_v50, %v7666_v48  ;;  %v3808_v30 = vsub.f32 %v7640_v40, %v7666_v48  ;;  %v8463_v38 = vld [vmem:[#allocation46_spill] sm:$0xff] }
 0xc82   : > { %v3940_v7 = vadd.f32 %v7706_v62, %v3939_v21  ;;  %v7727_v42 = vpop.eup %5002  ;;  %5014 = vpow2.f32 %v3858_v36  ;;  %v3898_v61 = vmul.f32 1.442695, %v3790_v12  ;;  %v3747_v50 = vsub.f32 %v7451_v14, %v7743_v57  ;;  %v8464_v12 = vld [vmem:[#allocation48_spill] sm:$0xff] }
 0xc83   : > { %v7734_v21 = vpop.eup %5004  ;;  %5016 = vpow2.f32 %v3862_v60  ;;  %v3894_v60 = vmul.f32 1.442695, %v3788_v29  ;;  %v3922_v39 = vmul.f32 1.442695, %v3802_v23  ;;  %v3804_v40 = vsub.f32 %v7605_v4, %v7666_v48 }
 0xc84   : > { %v3941_v49 = vadd.f32 %v7713_v63, %v3940_v7  ;;  %v7740_v0 = vpop.eup %5006  ;;  %5018 = vpow2.f32 %v3866_v18  ;;  %v3882_v7 = vmul.f32 1.442695, %v3782_v56  ;;  %v3934_v14 = vmul.f32 1.442695, %v3808_v30 }
 0xc85   : > { %v7745_v35 = vpop.eup %5008  ;;  %5020 = vpow2.f32 %v3870_v2  ;;  %v3749_v2 = vsub.f32 %v8463_v38, %v7743_v57  ;;  %v3812_v4 = vmul.f32 1.442695, %v3747_v50  ;;  %v3755_v50 = vsub.f32 %v7475_v27, %v7743_v57 }
 0xc86   : > { %v3942_v15 = vadd.f32 %v7720_v19, %v3941_v49  ;;  %v7749_v36 = vpop.eup %5010  ;;  %5022 = vpow2.f32 %v3874_v11  ;;  %v3890_v49 = vmul.f32 1.442695, %v3786_v26  ;;  %v3930_v11 = vmul.f32 1.442695, %v3806_v44  ;;  %v8465_v44 = vld [vmem:[#allocation26_spill] sm:$0xff] }
 0xc87   : > { %v7754_v56 = vpop.eup %5012  ;;  %5024 = vpow2.f32 %v3878_v55  ;;  %v3751_v55 = vsub.f32 %v8464_v12, %v7743_v57  ;;  %v3796_v27 = vsub.f32 %v7577_v9, %v7666_v48 }
 0xc88   : > { %v3943_v52 = vadd.f32 %v7727_v42, %v3942_v15  ;;  %v7758_v18 = vpop.eup %5014  ;;  %5026 = vpow2.f32 %v3882_v7 }
 0xc89   : > { %v7763_v43 = vpop.eup %5016  ;;  %5028 = vpow2.f32 %v3886_v22  ;;  %v3910_v46 = vmul.f32 1.442695, %v3796_v27 }
 0xc8a   : > { %v3944_v31 = vadd.f32 %v7734_v21, %v3943_v52  ;;  %v7767_v26 = vpop.eup %5018  ;;  %5030 = vpow2.f32 %v3890_v49  ;;  %v3753_v49 = vsub.f32 %v8465_v44, %v7743_v57  ;;  %v3759_v44 = vsub.f32 %v7487_v28, %v7743_v57 }
 0xc8b   : > { %v7772_v29 = vpop.eup %5020  ;;  %5032 = vpow2.f32 %v3894_v60  ;;  %v3800_v60 = vsub.f32 %v7585_v54, %v7666_v48 }
 0xc8c   : > { %v3945_v25 = vadd.f32 %v7740_v0, %v3944_v31  ;;  %v7776_v7 = vpop.eup %5022  ;;  %v3798_v31 = vsub.f32 %v7581_v47, %v7666_v48  ;;  %5034 = vpow2.f32 %v3898_v61 }
 0xc8d   : > { %v7781_v22 = vpop.eup %5024  ;;  %5036 = vpow2.f32 %v3922_v39  ;;  %v3820_v39 = vmul.f32 1.442695, %v3751_v55  ;;  %v3918_v55 = vmul.f32 1.442695, %v3800_v60 }
 0xc8e   : > { %v3946_v15 = vadd.f32 %v7745_v35, %v3945_v25  ;;  %v3816_v25 = vmul.f32 1.442695, %v3749_v2  ;;  %v7785_v30 = vpop.eup %5026  ;;  %5038 = vpow2.f32 %v3930_v11  ;;  %v3794_v2 = vsub.f32 %v7573_v51, %v7666_v48 }
 0xc8f   : > { %v7790_v61 = vpop.eup %5028  ;;  %5040 = vpow2.f32 %v3934_v14  ;;  %v3824_v11 = vmul.f32 1.442695, %v3753_v49  ;;  %v3792_v49 = vsub.f32 %v7569_v53, %v7666_v48  ;;  %v4028_v53 = vpack.c.bf16 %v7772_v29, %v7767_v26 }
 0xc90   : > { %v3947_v52 = vadd.f32 %v7749_v36, %v3946_v15  ;;  %v3926_v15 = vmul.f32 1.442695, %v3804_v40  ;;  %v7794_v38 = vpop.eup %5030  ;;  %5042 = vpow2.f32 %v3812_v4  ;;  %v3757_v40 = vsub.f32 %v7483_v20, %v7743_v57  ;;  %v8469_v4 = vld [vmem:[#allocation6_spill] sm:$0xff] }
 0xc91   : > { %v7799_v54 = vpop.eup %5032  ;;  %5044 = vpow2.f32 %v3816_v25  ;;  %v3828_v20 = vmul.f32 1.442695, %v3755_v50  ;;  %v3761_v28 = vsub.f32 %v8469_v4, %v7743_v57  ;;  %v3902_v4 = vmul.f32 1.442695, %v3792_v49  ;;  %4066 = vmatpush.bf16.msrb.mxu2 %v4028_v53 }
 0xc92   : > { %v3948_v23 = vadd.f32 %v7754_v56, %v3947_v52  ;;  %v3914_v52 = vmul.f32 1.442695, %v3798_v31  ;;  %v7803_v14 = vpop.eup %5034  ;;  %5046 = vpow2.f32 %v3926_v15  ;;  %v8467_v15 = vld [vmem:[#allocation41_spill] sm:$0xff]  ;;  %v3832_v50 = vmul.f32 1.442695, %v3757_v40 }
 0xc93   : > { %v7808_v31 = vpop.eup %5036  ;;  %5048 = vpow2.f32 %v3820_v39 }
 0xc94   : > { %v3949_v47 = vadd.f32 %v7758_v18, %v3948_v23  ;;  %v8466_v23 = vld [vmem:[#allocation38_spill] sm:$0xff]  ;;  %v7813_v25 = vpop.eup %5038  ;;  %5050 = vpow2.f32 %v3914_v52  ;;  %v3763_v52 = vsub.f32 %v7499_v3, %v7743_v57 }
 0xc95   : > { %v7818_v60 = vpop.eup %5040  ;;  %5052 = vpow2.f32 %v3824_v11  ;;  %v8471_v3 = vld [vmem:[#allocation2_spill] sm:$0xff] }
 0xc96   : > { %v3950_v12 = vadd.f32 %v7763_v43, %v3949_v47  ;;  %v3906_v47 = vmul.f32 1.442695, %v3794_v2  ;;  %v7826_v39 = vpop.eup %5042  ;;  %5054 = vpow2.f32 %v3918_v55  ;;  %v4044_v11 = vpack.c.bf16 %v7818_v60, %v7813_v25 }
 0xc97   : > { %v7831_v2 = vpop.eup %5044  ;;  %5056 = vpow2.f32 %v3828_v20  ;;  %v3840_v20 = vmul.f32 1.442695, %v3761_v28  ;;  %v3844_v53 = vmul.f32 1.442695, %v3763_v52 }
 0xc98   : > { %v3951_v51 = vadd.f32 %v7767_v26, %v3950_v12  ;;  %v8468_v12 = vld [vmem:[#allocation39_spill] sm:$0xff]  ;;  %8470 = vst [vmem:[#allocation3_spill] sm:$0xff] %v7831_v2  ;;  %v7837_v40 = vpop.eup %5046  ;;  %5058 = vpow2.f32 %v3906_v47  ;;  %v3975_v55 = vadd.f32 %v7831_v2, %v7826_v39  ;;  %4085 = vmatpush.bf16.msrb.mxu3 %v4044_v11  ;;  %v3807_v2 = vsub.f32 %v7650_v32, %v7743_v57 }
 0xc99   : > { %v7822_v1 = vpack.c.bf16 %v8468_v12, %v8467_v15  ;;  %v7842_v26 = vpop.eup %5048  ;;  %5060 = vpow2.f32 %v3832_v50  ;;  %v4026_v15 = vpack.c.bf16 %v7763_v43, %v7758_v18  ;;  %v4042_v28 = vpack.c.bf16 %v7837_v40, %v7808_v31  ;;  %v8473_v43 = vld [vmem:[#allocation28_spill] sm:$0xff] }
 0xc9a   : > { %v3952_v9 = vadd.f32 %v7772_v29, %v3951_v51  ;;  %v3836_v51 = vmul.f32 1.442695, %v3759_v44  ;;  %v3765_v44 = vsub.f32 %v8471_v3, %v7743_v57  ;;  %5062 = vpow2.f32 %v3910_v46 }
 0xc9b   : > { %v3976_v47 = vadd.f32 %v7842_v26, %v3975_v55  ;;  %4067 = vmatpush.bf16.msrb.mxu2 %v4026_v15  ;;  %v3773_v29 = vsub.f32 %v8473_v43, %v7743_v57 }
 0xc9c   : > { %v3953_v48 = vadd.f32 %v7776_v7, %v3952_v9  ;;  %v7847_v9 = vpop.eup %5050  ;;  %5064 = vpow2.f32 %v3836_v51  ;;  %v3848_v51 = vmul.f32 1.442695, %v3765_v44  ;;  %4086 = vmatpush.bf16.msrb.mxu3 %v4042_v28 }
 0xc9d   : > { %v7853_v12 = vpop.eup %5052  ;;  %5066 = vpow2.f32 %v3902_v4  ;;  %v3771_v4 = vsub.f32 %v7523_v8, %v7743_v57  ;;  %v3775_v8 = vsub.f32 %v7533_v17, %v7743_v57 }
 0xc9e   : > { %v3954_v27 = vadd.f32 %v7781_v22, %v3953_v48  ;;  %v3767_v48 = vsub.f32 %v7511_v33, %v7743_v57  ;;  %v7859_v50 = vpop.eup %5054  ;;  %v8472_v33 = vld [vmem:[#allocation58_spill] sm:$0xff]  ;;  %5068 = vpow2.f32 %v3840_v20 }
 0xc9f   : > { %v7864_v18 = vpop.eup %5056  ;;  %v3769_v52 = vsub.f32 %v8472_v33, %v7743_v57  ;;  %5070 = vpow2.f32 %v3844_v53  ;;  %v4040_v44 = vpack.c.bf16 %v7859_v50, %v7847_v9  ;;  %v8474_v53 = vld [vmem:[#allocation25_spill] sm:$0xff] }
 0xca0   : > { %v3955_v49 = vadd.f32 %v7785_v30, %v3954_v27  ;;  %v3977_v27 = vadd.f32 %v7853_v12, %v3976_v47  ;;  %v5059_v55 = vpop.eup %5058  ;;  %v4024_v47 = vpack.c.bf16 %v7754_v56, %v7749_v36  ;;  %v3852_v20 = vmul.f32 1.442695, %v3767_v48 }
 0xca1   : > { %v7875_v15 = vpop.eup %5060  ;;  %v3779_v48 = vsub.f32 %v7543_v41, %v7743_v57  ;;  %v3781_v43 = vsub.f32 %v8474_v53, %v7743_v57  ;;  %5072 = vpow2.f32 %v3848_v51  ;;  %v3856_v33 = vmul.f32 1.442695, %v3769_v52  ;;  %4087 = vmatpush.bf16.msrb.mxu3 %v4040_v44 }
 0xca2   : > { %v3956_v11 = vadd.f32 %v7790_v61, %v3955_v49  ;;  %v3978_v49 = vadd.f32 %v7864_v18, %v3977_v27  ;;  %v5063_v28 = vpop.eup %5062  ;;  %v3777_v27 = vsub.f32 %v7539_v45, %v7743_v57  ;;  %4068 = vmatpush.bf16.msrb.mxu2 %v4024_v47  ;;  %v3783_v45 = vsub.f32 %v7551_v16, %v7743_v57 }
 0xca3   : > { %v7887_v56 = vpop.eup %5064  ;;  %v4022_v47 = vpack.c.bf16 %v7745_v35, %v7740_v0  ;;  %v3785_v41 = vsub.f32 %v7555_v37, %v7743_v57  ;;  %5074 = vpow2.f32 %v3852_v20  ;;  %v3860_v51 = vmul.f32 1.442695, %v3771_v4  ;;  %v8475_v0 = vld [vmem:[#allocation34_spill] sm:$0xff] }
 0xca4   : > { %v3957_v3 = vadd.f32 %v7794_v38, %v3956_v11  ;;  %v3979_v36 = vadd.f32 %v7875_v15, %v3978_v49  ;;  %v4038_v52 = vpack.c.bf16 %v5063_v28, %v5059_v55  ;;  %v3864_v53 = vmul.f32 1.442695, %v3773_v29 }
 0xca5   : > { %5076 = vpow2.f32 %v3856_v33  ;;  %v3868_v37 = vmul.f32 1.442695, %v3775_v8  ;;  %v3872_v20 = vmul.f32 1.442695, %v3777_v27  ;;  %v4020_v29 = vpack.c.bf16 %v7734_v21, %v7727_v42 }
 0xca6   : > { %v3958_v11 = vadd.f32 %v7799_v54, %v3957_v3  ;;  %v5067_v3 = vpop.eup %5066  ;;  %v3980_v49 = vadd.f32 %v7887_v56, %v3979_v36  ;;  %4069 = vmatpush.bf16.msrb.mxu2 %v4022_v47  ;;  %4088 = vmatpush.bf16.msrb.mxu3 %v4038_v52  ;;  %v3803_v47 = vsub.f32 %v7609_v24, %v7743_v57  ;;  %5078 = vpow2.f32 %v3860_v51 }
 0xca7   : > { %v7899_v46 = vpop.eup %5068  ;;  %v3809_v35 = vsub.f32 %v7662_v13, %v7743_v57  ;;  %v4036_v32 = vpack.c.bf16 %v5067_v3, %v7803_v14  ;;  %5080 = vpow2.f32 %v3864_v53  ;;  %v3805_v42 = vsub.f32 %v7630_v58, %v7743_v57 }
 0xca8   : > { %v3959_v17 = vadd.f32 %v7803_v14, %v3958_v11  ;;  %v3787_v11 = vsub.f32 %v7559_v6, %v7743_v57  ;;  %v3981_v16 = vadd.f32 %v7899_v46, %v3980_v49  ;;  %v7906_v36 = vpop.eup %5070  ;;  %5082 = vpow2.f32 %v3868_v37 }
 0xca9   : > { %v7915_v49 = vpop.eup %5072  ;;  %v3880_v21 = vmul.f32 1.442695, %v3781_v43  ;;  %v3932_v24 = vmul.f32 1.442695, %v3807_v2  ;;  %5084 = vpow2.f32 %v3872_v20  ;;  %v3799_v58 = vsub.f32 %v8454_v10, %v7743_v57 }
 0xcaa   : > { %v3960_v44 = vadd.f32 %v5067_v3, %v3959_v17  ;;  %v3982_v17 = vadd.f32 %v7906_v36, %v3981_v16  ;;  %4070 = vmatpush.bf16.msrb.mxu2 %v4020_v29  ;;  %v7923_v33 = vpop.eup %5074  ;;  %4089 = vmatpush.bf16.msrb.mxu3 %v4036_v32  ;;  %v3791_v3 = vsub.f32 %v7567_v34, %v7743_v57  ;;  %v3936_v51 = vmul.f32 1.442695, %v3809_v35  ;;  %v8476_v35 = vld [vmem:[#allocation7_spill] sm:$0xff]  ;;  %v8477_v29 = vld [vmem:[#allocation42_spill] sm:$0xff]  ;;  %v8479_v32 = vld [vmem:[#allocation56_spill] sm:$0xff] }
 0xcab   : > { %v4034_v2 = vpack.c.bf16 %v7799_v54, %v7794_v38  ;;  %v3924_v43 = vmul.f32 1.442695, %v3803_v47  ;;  %v3928_v53 = vmul.f32 1.442695, %v3805_v42  ;;  %v4016_v54 = vpack.c.bf16 %v7706_v62, %v7699_v59 }
 0xcac   : > { %v3961_v4 = vadd.f32 %v5059_v55, %v3960_v44  ;;  %v3876_v55 = vmul.f32 1.442695, %v3779_v48  ;;  %v3983_v27 = vadd.f32 %v7915_v49, %v3982_v17  ;;  %v7931_v48 = vpop.eup %5076  ;;  %v3884_v44 = vmul.f32 1.442695, %v3783_v45 }
 0xcad   : > { %v3795_v37 = vsub.f32 %v8476_v35, %v7743_v57  ;;  %v3916_v17 = vmul.f32 1.442695, %v3799_v58  ;;  %v3797_v47 = vsub.f32 %v8477_v29, %v7743_v57  ;;  %v3892_v59 = vmul.f32 1.442695, %v3787_v11 }
 0xcae   : > { %v3962_v8 = vadd.f32 %v5063_v28, %v3961_v4  ;;  %v3984_v14 = vadd.f32 %v7923_v33, %v3983_v27  ;;  %v4018_v28 = vpack.c.bf16 %v7720_v19, %v7713_v63  ;;  %5086 = vpow2.f32 %v3876_v55  ;;  %v7941_v63 = vpop.eup %5078  ;;  %4090 = vmatpush.bf16.msrb.mxu3 %v4034_v2 }
 0xcaf   : > { %v3801_v19 = vsub.f32 %v7593_v5, %v7743_v57  ;;  %5088 = vpow2.f32 %v3880_v21  ;;  %v5081_v10 = vpop.eup %5080  ;;  %v3888_v4 = vmul.f32 1.442695, %v3785_v41  ;;  %v4032_v5 = vpack.c.bf16 %v7790_v61, %v7785_v30 }
 0xcb0   : > { %v3963_v13 = vadd.f32 %v7847_v9, %v3962_v8  ;;  %v3985_v52 = vadd.f32 %v7931_v48, %v3984_v14  ;;  %4071 = vmatpush.bf16.msrb.mxu2 %v4018_v28  ;;  %5090 = vpow2.f32 %v3932_v24  ;;  %v8480_v27 = vsub.f32 %v8475_v0, %v7743_v57 }
 0xcb1   : > { %5092 = vpow2.f32 %v3936_v51  ;;  %v3920_v62 = vmul.f32 1.442695, %v3801_v19  ;;  %v4030_v11 = vpack.c.bf16 %v7781_v22, %v7776_v7  ;;  %v3908_v24 = vmul.f32 1.442695, %v3795_v37  ;;  %v8483_v7 = vld [vmem:[#allocation33_spill] sm:$0xff] }
 0xcb2   : > { %v3964_v9 = vadd.f32 %v7859_v50, %v3963_v13  ;;  %v3986_v38 = vadd.f32 %v7941_v63, %v3985_v52  ;;  %v5083_v50 = vpop.eup %5082  ;;  %5094 = vpow2.f32 %v3924_v43  ;;  %4091 = vmatpush.bf16.msrb.mxu3 %v4032_v5  ;;  %v3896_v6 = vmul.f32 1.442695, %v8480_v27  ;;  %v8487_v5 = vld [vmem:[#allocation51_spill] sm:$0xff] }
 0xcb3   : > { %v5085_v45 = vpop.eup %5084  ;;  %5096 = vpow2.f32 %v3928_v53  ;;  %v8481_v28 = vunpack.c.l.b16 %v8466_v23  ;;  %v8482_v0 = vunpack.c.l.b16 %v7822_v1  ;;  %v3793_v22 = vsub.f32 %v8483_v7, %v7743_v57 }
 0xcb4   : > { %v3965_v16 = vadd.f32 %v7808_v31, %v3964_v9  ;;  %v3987_v31 = vadd.f32 %v5081_v10, %v3986_v38  ;;  %4072 = vmatpush.bf16.msrb.mxu2 %v4016_v54  ;;  %v7959_v41 = vpop.eup %5086  ;;  %5098 = vpow2.f32 %v3884_v44  ;;  %v4029_v42 = vpack.c.bf16 %v5085_v45, %v5083_v50 }
 0xcb5   : > { %v7964_v55 = vpop.eup %5088  ;;  %5100 = vpow2.f32 %v3888_v4  ;;  %v7982_v58 = vpack.c.b16 %v8482_v0, %v8481_v28  ;;  %v3912_v51 = vmul.f32 1.442695, %v3797_v47  ;;  %v8484_v52 = vunpack.c.h.b16 %v8466_v23  ;;  %v8486_v4 = vld [vmem:[#allocation49_spill] sm:$0xff] }
 0xcb6   : > { %v3966_v20 = vadd.f32 %v7837_v40, %v3965_v16  ;;  %v3988_v61 = vadd.f32 %v5083_v50, %v3987_v31  ;;  %v8478_v40 = vld [vmem:[#allocation5_spill] sm:$0xff]  ;;  %v7971_v21 = vpop.eup %5090  ;;  %5102 = vpow2.f32 %v3916_v17  ;;  %4092 = vmatpush.bf16.msrb.mxu3 %v4030_v11  ;;  %v8485_v19 = vunpack.c.h.b16 %v7822_v1 }
 0xcb7   : > { %v4014_v8 = vpack.c.bf16 %v8479_v32, %v8478_v40  ;;  %v7976_v14 = vpop.eup %5092  ;;  %5104 = vpow2.f32 %v3920_v62  ;;  %v3900_v53 = vmul.f32 1.442695, %v3791_v3  ;;  %v4027_v16 = vpack.c.bf16 %v5081_v10, %v7941_v63 }
 0xcb8   : > { %v3967_v30 = vadd.f32 %v7813_v25, %v3966_v20  ;;  %v3989_v13 = vadd.f32 %v5085_v45, %v3988_v61  ;;  %5106 = vpow2.f32 %v3892_v59  ;;  %v4045_v9 = vpack.c.bf16 %v7976_v14, %v7971_v21 }
 0xcb9   : > { %4073 = vmatpush.bf16.msrb.mxu2 %v4014_v8  ;;  %v7997_v44 = vpack.c.b16 %v8485_v19, %v8484_v52  ;;  %5108 = vpow2.f32 %v3896_v6  ;;  %v3904_v23 = vmul.f32 1.442695, %v3793_v22  ;;  %v4025_v3 = vpack.c.bf16 %v7931_v48, %v7923_v33  ;;  %v8488_v33 = vld [vmem:[#allocation43_spill] sm:$0xff] }
 0xcba   : > { %v7974_v25 = vadd.f32 %v7818_v60, %v3967_v30  ;;  %v7986_v60 = vpop.eup %5094  ;;  %v3990_v2 = vadd.f32 %v7959_v41, %v3989_v13  ;;  %5110 = vpow2.f32 %v3908_v24  ;;  %4123 = vmatpush.bf16.msra.mxu3 %v4045_v9  ;;  %v1061_v45 = vpack.c.bf16 %v8487_v5, %v8486_v4 }
 0xcbb   : > { %v7991_v43 = vpop.eup %5096  ;;  %5112 = vpow2.f32 %v3912_v51  ;;  %4093 = vmatmul.bf16.vlgmr.msrb.gmra.mxu3 %v7997_v44  ;;  %v4023_v47 = vpack.c.bf16 %v7915_v49, %v7906_v36  ;;  %v4054_v48 = vunpack.c.l.b16 %v8488_v33  ;;  %v4055_v8 = vunpack.c.h.b16 %v8488_v33 }
 0xcbc   : > { %4074 = vmatmul.bf16.vlgmr.msrb.gmra.mxu2 %v7982_v58  ;;  %v5099_v38 = vpop.eup %5098  ;;  %v3991_v54 = vadd.f32 %v7964_v55, %v3990_v2  ;;  %v4043_v34 = vpack.c.bf16 %v7991_v43, %v7986_v60  ;;  %5114 = vpow2.f32 %v3900_v53  ;;  %v4056_v30 = vunpack.c.l.b16 %v1061_v45  ;;  %v8489_v2 = vld [vmem:[#allocation3_spill] sm:$0xff] }
 0xcbd   : > { %4104 = vmatpush.bf16.msra.mxu2 %v4029_v42  ;;  %v5101_v50 = vpop.eup %5100  ;;  %5116 = vpow2.f32 %v3904_v23  ;;  %v4057_v27 = vunpack.c.h.b16 %v1061_v45  ;;  %v4021_v6 = vpack.c.bf16 %v7899_v46, %v7887_v56  ;;  %v4019_v13 = vpack.c.bf16 %v7875_v15, %v7864_v18 }
 0xcbe   : > { %v5103_v1 = vpop.eup %5102  ;;  %v3992_v35 = vadd.f32 %v5099_v38, %v3991_v54  ;;  %4124 = vmatpush.bf16.msra.mxu3 %v4043_v34  ;;  %v4060_v36 = vpack.c.b16 %v4056_v30, %v4054_v48  ;;  %v4017_v46 = vpack.c.bf16 %v7853_v12, %v7842_v26  ;;  %v4033_v51 = vpack.c.bf16 %v5101_v50, %v5099_v38  ;;  %v8490_v38 = vld [vmem:[#allocation11_spill] sm:$0xff] }
 0xcbf   : > { %v5105_v57 = vpop.eup %5104  ;;  %v4061_v24 = vpack.c.b16 %v4057_v27, %v4055_v8  ;;  %v4015_v9 = vpack.c.bf16 %v8489_v2, %v7826_v39  ;;  %v4031_v52 = vpack.c.bf16 %v7964_v55, %v7959_v41  ;;  %v3969_v39 = vrot.slane %v7974_v25, 4 }
 0xcc0   : > { %v5107_v63 = vpop.eup %5106  ;;  %v3993_v10 = vadd.f32 %v5101_v50, %v3992_v35  ;;  %v4041_v31 = vpack.c.bf16 %v5105_v57, %v5103_v1 }
 0xcc1   : > { %4105 = vmatpush.bf16.msra.mxu2 %v4027_v16  ;;  %v5109_v37 = vpop.eup %5108  ;;  %v3970_v12 = vadd.f32 %v3969_v39, %v7974_v25  ;;  %v4165_v25 = vpop.permute.xlu2 %4164  ;;  %v8496_v39 = vld [vmem:[#allocation22_spill] sm:$0xff] }
 0xcc2   : > { %v5111_v20 = vpop.eup %5110  ;;  %v3994_v17 = vadd.f32 %v5107_v63, %v3993_v10  ;;  %4125 = vmatpush.bf16.msra.mxu3 %v4041_v31  ;;  %v4035_v7 = vpack.c.bf16 %v5109_v37, %v5107_v63  ;;  %v4170_v10 = vpop.permute.xlu1 %4169 }
 0xcc3   : > { %v5113_v29 = vpop.eup %5112 }
 0xcc4   : > { %v3995_v59 = vadd.f32 %v5109_v37, %v3994_v17  ;;  %v5115_v62 = vpop.eup %5114  ;;  %v4039_v40 = vpack.c.bf16 %v5113_v29, %v5111_v20 }
 0xcc5   : > { %4106 = vmatpush.bf16.msra.mxu2 %v4025_v3  ;;  %v5117_v32 = vpop.eup %5116  ;;  %v8491_v3 = vld [vmem:[#allocation53_spill] sm:$0xff] }
 0xcc6   : > { %v3996_v61 = vadd.f32 %v5115_v62, %v3995_v59  ;;  %4126 = vmatpush.bf16.msra.mxu3 %v4039_v40  ;;  %v4037_v42 = vpack.c.bf16 %v5117_v32, %v5115_v62  ;;  %v4175_v59 = vpop.permute.xlu0 %4174 }
 0xcc8   : > { %v3997_v11 = vadd.f32 %v5117_v32, %v3996_v61  ;;  %v8493_v32 = vld [vmem:[#allocation44_spill] sm:$0xff] }
 0xcc9   : > { %4107 = vmatpush.bf16.msra.mxu2 %v4023_v47 }
 0xcca   : > { %v3998_v49 = vadd.f32 %v5111_v20, %v3997_v11  ;;  %4127 = vmatpush.bf16.msra.mxu3 %v4037_v42  ;;  %v4180_v27 = vpop.permute.xlu1 %4179 }
 0xccb   : > { %4098 = vmatmul.bf16.gmra.mxu3 %v4061_v24 }
 0xccc   : > { %4079 = vmatmul.bf16.gmra.mxu2 %v4060_v36  ;;  %v3999_v28 = vadd.f32 %v5113_v29, %v3998_v49  ;;  %v8492_v29 = vld [vmem:[#allocation8_spill] sm:$0xff] }
 0xccd   : > { %4108 = vmatpush.bf16.msra.mxu2 %v4021_v6 }
 0xcce   : > { %v4000_v0 = vadd.f32 %v5103_v1, %v3999_v28  ;;  %4128 = vmatpush.bf16.msra.mxu3 %v4035_v7 }
 0xcd0   : > { %v4001_v56 = vadd.f32 %v5105_v57, %v4000_v0 }
 0xcd1   : > { %4109 = vmatpush.bf16.msra.mxu2 %v4019_v13  ;;  %v8494_v13 = vld [vmem:[#allocation45_spill] sm:$0xff] }
 0xcd2   : > { %v4002_v22 = vadd.f32 %v7986_v60, %v4001_v56  ;;  %4129 = vmatpush.bf16.msra.mxu3 %v4033_v51  ;;  %v3971_v60 = vrot.slane %v3970_v12, 2  ;;  %v8495_v51 = vld [vmem:[#allocation20_spill] sm:$0xff] }
 0xcd4   : > { %v4003_v18 = vadd.f32 %v7991_v43, %v4002_v22  ;;  %v3972_v43 = vadd.f32 %v3971_v60, %v3970_v12 }
 0xcd5   : > { %4110 = vmatpush.bf16.msra.mxu2 %v4017_v46 }
 0xcd6   : > { %v4004_v15 = vadd.f32 %v7971_v21, %v4003_v18  ;;  %4130 = vmatpush.bf16.msra.mxu3 %v4031_v52  ;;  %v3973_v21 = vrot.slane %v3972_v43, 1 }
 0xcd8   : > { %v4005_v26 = vadd.f32 %v7976_v14, %v4004_v15  ;;  %v3974_v19 = vadd.f32 %v3973_v21, %v3972_v43 }
 0xcd9   : > { %4111 = vmatpush.bf16.msra.mxu2 %v4015_v9 }
 0xcda   : > { %5118 = vrcp.f32 %v3974_v19 }
 0xcdb   : > { %4131 = vmatmul.bf16.vlgmr.msra.gmra.mxu3 %v7997_v44 }
 0xcdc   : > { %4112 = vmatmul.bf16.vlgmr.msra.gmra.mxu2 %v7982_v58  ;;  %v4006_v58 = vrot.slane %v4005_v26, 4 }
 0xcde   : > { %v4007_v23 = vadd.f32 %v4006_v58, %v4005_v26 }
 0xce0   : > { %v5119_v53 = vpop.eup %5118  ;;  %v4008_v57 = vrot.slane %v4007_v23, 2 }
 0xce2   : > { %v4009_v5 = vadd.f32 %v4008_v57, %v4007_v23 }
 0xce4   : > { %v4010_v31 = vrot.slane %v4009_v5, 1 }
 0xce6   : > { %v4011_v48 = vadd.f32 %v4010_v31, %v4009_v5 }
 0xce8   : > { %5120 = vrcp.f32 %v4011_v48 }
 0xceb   : > { %4136 = vmatmul.bf16.gmra.mxu3 %v4061_v24 }
 0xcec   : > { %4117 = vmatmul.bf16.gmra.mxu2 %v4060_v36 }
 0xcee   : > { %v5121_v42 = vpop.eup %5120 }
 0xd3e   : > { %v4094_v55 = vpop.f32.mrf.mxu3 }
 0xd3f   : > { %v4075_v41 = vpop.f32.mrf.mxu2 }
 0xd40   : > { %v4095_v14 = vadd.f32 %v4094_v55, %v4075_v41  ;;  %v8497_v55 = vld [vmem:[#allocation21_spill] sm:$0xff] }
 0xd42   : > { %v4142_v16 = vmul.f32 %v5119_v53, %v4095_v14 }
 0xd44   : > { %v4150_v44 = vadd.f32 %v4142_v16, %v8490_v38 }
 0xd46   : > { %v4182_v50 = vadd.f32 %v4165_v25, %v4150_v44  ;;  %v4096_v1 = vpop.f32.mrf.mxu3 }
 0xd47   : > { %v4077_v54 = vpop.f32.mrf.mxu2 }
 0xd48   : > { %4190 = vst [vmem:[%s8040_s25] sm:$0xff] %v4182_v50  ;;  %v4097_v35 = vadd.f32 %v4096_v1, %v4077_v54 }
 0xd4a   : > { %v4144_v34 = vmul.f32 %v5119_v53, %v4097_v35 }
 0xd4c   : > { %v4152_v63 = vadd.f32 %v4144_v34, %v8491_v3 }
 0xd4e   : > { %v4184_v4 = vadd.f32 %v4170_v10, %v4152_v63  ;;  %v4099_v45 = vpop.f32.mrf.mxu3 }
 0xd4f   : > { %v4080_v37 = vpop.f32.mrf.mxu2 }
 0xd50   : > { %4192 = vst [vmem:[%s8040_s25 + $0x10] sm:$0xff] %v4184_v4  ;;  %v4100_v20 = vadd.f32 %v4099_v45, %v4080_v37 }
 0xd52   : > { %v4146_v17 = vmul.f32 %v5119_v53, %v4100_v20 }
 0xd54   : > { %v4154_v47 = vadd.f32 %v4146_v17, %v8492_v29 }
 0xd56   : > { %v4186_v33 = vadd.f32 %v4175_v59, %v4154_v47  ;;  %v4101_v30 = vpop.f32.mrf.mxu3 }
 0xd57   : > { %v4082_v62 = vpop.f32.mrf.mxu2 }
 0xd58   : > { %4194 = vst [vmem:[%s8040_s25 + $0x20] sm:$0xff] %v4186_v33  ;;  %v4102_v61 = vadd.f32 %v4101_v30, %v4082_v62 }
 0xd5a   : > { %v4148_v40 = vmul.f32 %v5119_v53, %v4102_v61 }
 0xd5c   : > { %v4156_v8 = vadd.f32 %v4148_v40, %v8493_v32 }
 0xd5e   : > { %v4188_v11 = vadd.f32 %v4180_v27, %v4156_v8  ;;  %v4132_v36 = vpop.f32.mrf.mxu3 }
 0xd5f   : > { %v4113_v6 = vpop.f32.mrf.mxu2 }
 0xd60   : > { %4196 = vst [vmem:[%s8040_s25 + $0x30] sm:$0xff] %v4188_v11  ;;  %v4133_v49 = vadd.f32 %v4132_v36, %v4113_v6 }
 0xd62   : > { %v4143_v24 = vmul.f32 %v5121_v42, %v4133_v49 }
 0xd64   : > { %v4151_v28 = vadd.f32 %v4143_v24, %v8494_v13 }
 0xd66   : > { %v4183_v7 = vadd.f32 %v4165_v25, %v4151_v28  ;;  %v4134_v46 = vpop.f32.mrf.mxu3 }
 0xd67   : > { %v4115_v0 = vpop.f32.mrf.mxu2 }
 0xd68   : > { %4191 = vst [vmem:[%s8040_s25 + $0x8] sm:$0xff] %v4183_v7  ;;  %v4135_v56 = vadd.f32 %v4134_v46, %v4115_v0 }
 0xd6a   : > { %v4145_v22 = vmul.f32 %v5121_v42, %v4135_v56 }
 0xd6c   : > { %v4153_v2 = vadd.f32 %v4145_v22, %v8495_v51 }
 0xd6e   : > { %v4185_v18 = vadd.f32 %v4170_v10, %v4153_v2  ;;  %v4137_v15 = vpop.f32.mrf.mxu3 }
 0xd6f   : > { %v4118_v9 = vpop.f32.mrf.mxu2 }
 0xd70   : > { %4193 = vst [vmem:[%s8040_s25 + $0x18] sm:$0xff] %v4185_v18  ;;  %v4138_v52 = vadd.f32 %v4137_v15, %v4118_v9 }
 0xd72   : > { %v4147_v26 = vmul.f32 %v5121_v42, %v4138_v52 }
 0xd74   : > { %v4155_v12 = vadd.f32 %v4147_v26, %v8496_v39 }
 0xd76   : > { %v4187_v43 = vadd.f32 %v4175_v59, %v4155_v12  ;;  %v4139_v21 = vpop.f32.mrf.mxu3 }
 0xd77   : > { %v4120_v60 = vpop.f32.mrf.mxu2 }
 0xd78   : > { %4195 = vst [vmem:[%s8040_s25 + $0x28] sm:$0xff] %v4187_v43  ;;  %v4140_v19 = vadd.f32 %v4139_v21, %v4120_v60 }
 0xd7a   : > { %v4149_v41 = vmul.f32 %v5121_v42, %v4140_v19 }
 0xd7c   : > { %v4157_v14 = vadd.f32 %v4149_v41, %v8497_v55 }
 0xd7e   : > { %v4189_v53 = vadd.f32 %v4180_v27, %v4157_v14 }
 0xd80   : > { %4197 = vst [vmem:[%s8040_s25 + $0x38] sm:$0xff] %v4189_v53 }
 0xd81 PF: > { %s16_s21 = sadd.s32 1, %s5128_s21  }
 0xd82   : > { %p13_p4 = scmp.ge.s32.totalorder %s16_s21, 4  }
 0xd84   :  { %15 = sbr.rel (!%p13_p4) target bundleno = 1 (0x1), region = 74 }

</bundles_post_ra>
